<compile_context>
chip_gen: v6e
topology: v6e:2x2x1
jax: 0.10.0
libtpu: 0.0.40
codegen_flags: <defaults>
</compile_context>

<pallas_src>
import jax
import jax.numpy as jnp
from jax import lax
from jax.experimental import pallas as pl
from jax.experimental.pallas import tpu as pltpu

IN_FEATURES = 4096
HIDDEN = 512
BN_EPS = 1e-5
TK = 2048  # K-tile for the streamed fc1 reduction -> IN_FEATURES // TK = 2 grid steps


def _bn_relu(y, gamma, beta):
    """Training-mode BatchNorm1d + ReLU, folded to a per-feature scale/shift."""
    mu = jnp.mean(y, axis=0, keepdims=True)
    d = y - mu
    var = jnp.mean(d * d, axis=0, keepdims=True)          # biased var, as PyTorch BN forward
    scale = gamma * lax.rsqrt(var + BN_EPS)                # rsqrt -> EUP slot (free-ish)
    shift = beta - mu * scale
    return jnp.maximum(y * scale + shift, 0.0)             # mul + add + max on VPU


def img_branch_kernel(x_ref, w1_ref, w2_ref, w3_ref, bn_ref, o_ref):
    k = pl.program_id(0)

    # o_ref is f32 and resident across the whole K-reduction (constant block index),
    # so it doubles as the fc1 accumulator -- no separate VMEM scratch needed.
    @pl.when(k == 0)
    def _():
        o_ref[...] = jnp.zeros_like(o_ref)

    # Streamed, double-buffered K-reduction for fc1 (bf16 MXU inputs, f32 accumulate).
    o_ref[...] += jnp.dot(x_ref[...], w1_ref[...],
                          preferred_element_type=jnp.float32)

    @pl.when(k == pl.num_programs(0) - 1)
    def _():
        bn = bn_ref[...]  # (6, HIDDEN) f32 rows: [g1, be1, g2, be2, g3, be3]

        # x = relu(bn1(fc1(x)))   (linear bias cancels under batch-stat BN)
        h = _bn_relu(o_ref[...], bn[0:1, :], bn[1:2, :])

        # x_res = relu(nb2(fc2(x))); x = x_res + x
        y2 = jnp.dot(h.astype(jnp.bfloat16), w2_ref[...],
                     preferred_element_type=jnp.float32)
        h = _bn_relu(y2, bn[2:3, :], bn[3:4, :]) + h

        # x_res = relu(nb3(fc3(x))); x = x_res + x
        y3 = jnp.dot(h.astype(jnp.bfloat16), w3_ref[...],
                     preferred_element_type=jnp.float32)
        h = _bn_relu(y3, bn[4:5, :], bn[5:6, :]) + h

        o_ref[...] = h  # overwrite the accumulator with the final activations


def img_branch(x, params, *, tk=TK):
    """x: (B, 4096) float32.  params: bf16 weights pre-transposed to (in, out) + packed BN."""
    B, K = x.shape
    assert K == IN_FEATURES, f"expected {IN_FEATURES} input features, got {K}"
    assert IN_FEATURES % tk == 0, "TK must divide IN_FEATURES"
    # BN statistics are computed over the full batch inside one invocation; the batch
    # dimension must therefore never be tiled or split across cores.
    x_bf16 = x.astype(jnp.bfloat16)

    in_specs = [
        pl.BlockSpec((B, tk), lambda k: (0, k)),             # x: stream K tiles
        pl.BlockSpec((tk, HIDDEN), lambda k: (k, 0)),        # w1: stream K tiles (double-buffered)
        pl.BlockSpec((HIDDEN, HIDDEN), lambda k: (0, 0)),    # w2: resident
        pl.BlockSpec((HIDDEN, HIDDEN), lambda k: (0, 0)),    # w3: resident
        pl.BlockSpec((6, HIDDEN), lambda k: (0, 0)),         # packed BN gammas/betas
    ]
    out_specs = pl.BlockSpec((B, HIDDEN), lambda k: (0, 0))  # resident accumulator/output

    return pl.pallas_call(
        img_branch_kernel,
        out_shape=jax.ShapeDtypeStruct((B, HIDDEN), jnp.float32),
        grid_spec=pltpu.PrefetchScalarGridSpec(
            num_scalar_prefetch=0,
            grid=(IN_FEATURES // tk,),
            in_specs=in_specs,
            out_specs=out_specs,
            scratch_shapes=[],
        ),
        compiler_params=pltpu.CompilerParams(
            dimension_semantics=("arbitrary",),          # K-reduction axis
            vmem_limit_bytes=32 * 1024 * 1024,           # <= 64 MiB so legal on v7x
        ),
    )(x_bf16, params["w1"], params["w2"], params["w3"], params["bn"])


def init_params(key):
    """Deterministic synthetic parameters matching the PyTorch module's shapes."""
    ks = jax.random.split(key, 6)

    def linear(kw, kb, fan_in, fan_out):
        bound = 1.0 / jnp.sqrt(fan_in)
        w = jax.random.uniform(kw, (fan_out, fan_in), jnp.float32, -bound, bound)
        b = jax.random.uniform(kb, (fan_out,), jnp.float32, -bound, bound)
        # pre-transpose to (in, out); bias as (1, out) row
        return w.T, b.reshape(1, fan_out)

    w1, b1 = linear(ks[0], ks[1], IN_FEATURES, HIDDEN)
    w2, b2 = linear(ks[2], ks[3], HIDDEN, HIDDEN)
    w3, b3 = linear(ks[4], ks[5], HIDDEN, HIDDEN)

    ones = jnp.ones((HIDDEN,), jnp.float32)
    zeros = jnp.zeros((HIDDEN,), jnp.float32)
    bn = jnp.stack([ones, zeros, ones, zeros, ones, zeros], axis=0)  # (6, HIDDEN)

    return {
        "w1": w1.astype(jnp.bfloat16),
        "w2": w2.astype(jnp.bfloat16),
        "w3": w3.astype(jnp.bfloat16),
        "bn": bn,
        # f32 biases are used only by the reference; they cancel under batch-stat BN
        "b1": b1, "b2": b2, "b3": b3,
    }


def img_branch_ref(x, p):
    """Pure-JAX reference of the PyTorch forward (training-mode BN, bf16 matmul inputs)."""
    def block(h, w_bf16, b, g, be):
        y = jnp.dot(h.astype(jnp.bfloat16), w_bf16,
                    preferred_element_type=jnp.float32) + b
        mu = jnp.mean(y, axis=0, keepdims=True)
        var = jnp.mean((y - mu) ** 2, axis=0, keepdims=True)
        return jnp.maximum((y - mu) / jnp.sqrt(var + BN_EPS) * g + be, 0.0)

    bn = p["bn"]
    h = block(x, p["w1"], p["b1"], bn[0:1, :], bn[1:2, :])
    h = block(h, p["w2"], p["b2"], bn[2:3, :], bn[3:4, :]) + h
    h = block(h, p["w3"], p["b3"], bn[4:5, :], bn[5:6, :]) + h
    return h


if __name__ == "__main__":
    key = jax.random.PRNGKey(0)
    k_x, k_p = jax.random.split(key)

    # Batch is never tiled (full-batch BN stats); multiple of 16 for bf16 sublane packing.
    B = 16
    x = jax.random.normal(k_x, (B, IN_FEATURES), jnp.float32)
    params = init_params(k_p)

    out = jax.block_until_ready(img_branch(x, params))
    ref = img_branch_ref(x, params)

    assert out.shape == (B, HIDDEN)
    assert jnp.allclose(out, ref, atol=5e-3, rtol=5e-3), \
        f"mismatch vs JAX reference, max abs err = {float(jnp.max(jnp.abs(out - ref)))}"

    print("KERNEL_OK")
</pallas_src>

<mosaic_0001>
module attributes {stable_mosaic.version = 11 : i64} {
  func.func @img_branch_kernel(%arg0: i32, %arg1: memref<16x2048xbf16, #tpu.memory_space<vmem>>, %arg2: memref<2048x512xbf16, #tpu.memory_space<vmem>>, %arg3: memref<512x512xbf16, #tpu.memory_space<vmem>>, %arg4: memref<512x512xbf16, #tpu.memory_space<vmem>>, %arg5: memref<6x512xf32, #tpu.memory_space<vmem>>, %arg6: memref<16x512xf32, #tpu.memory_space<vmem>>) attributes {dimension_semantics = [#tpu.dimension_semantics<arbitrary>], iteration_bounds = array<i64: 2>, scalar_prefetch = 0 : i64, scratch_operands = 0 : i64, tpu.core_type = #tpu.core_type<tc>, window_params = [{transform_indices = @transform_0, window_bounds = array<i64: 16, 2048>}, {transform_indices = @transform_1, window_bounds = array<i64: 2048, 512>}, {pipeline_mode = #tpu.pipeline_mode<synchronous>, transform_indices = @transform_2, window_bounds = array<i64: 512, 512>}, {pipeline_mode = #tpu.pipeline_mode<synchronous>, transform_indices = @transform_3, window_bounds = array<i64: 512, 512>}, {pipeline_mode = #tpu.pipeline_mode<synchronous>, transform_indices = @transform_4, window_bounds = array<i64: 6, 512>}, {pipeline_mode = #tpu.pipeline_mode<synchronous>, transform_indices = @transform_5, window_bounds = array<i64: 16, 512>}]} {
    %c0_i32 = arith.constant 0 : i32
    %0 = arith.cmpi eq, %arg0, %c0_i32 : i32
    %1 = arith.extui %0 : i1 to i32
    %c0_i32_0 = arith.constant 0 : i32
    %2 = arith.cmpi ne, %1, %c0_i32_0 : i32
    scf.if %2 {
      %cst_9 = arith.constant 0.000000e+00 : f32
      %12 = vector.broadcast %cst_9 : f32 to vector<16x512xf32>
      %c0_10 = arith.constant 0 : index
      %c0_11 = arith.constant 0 : index
      %13 = vector.load %arg6[%c0_10, %c0_11] : memref<16x512xf32, #tpu.memory_space<vmem>>, vector<16x512xf32>
      tpu.vector_store %arg6[%c0_10, %c0_11], %12 {strides = array<i32>} : memref<16x512xf32, #tpu.memory_space<vmem>>, vector<16x512xf32>,
    } else {
    }
    %c0 = arith.constant 0 : index
    %c0_1 = arith.constant 0 : index
    %3 = vector.load %arg6[%c0, %c0_1] : memref<16x512xf32, #tpu.memory_space<vmem>>, vector<16x512xf32>
    %c0_2 = arith.constant 0 : index
    %c0_3 = arith.constant 0 : index
    %4 = vector.load %arg1[%c0_2, %c0_3] : memref<16x2048xbf16, #tpu.memory_space<vmem>>, vector<16x2048xbf16>
    %c0_4 = arith.constant 0 : index
    %c0_5 = arith.constant 0 : index
    %5 = vector.load %arg2[%c0_4, %c0_5] : memref<2048x512xbf16, #tpu.memory_space<vmem>>, vector<2048x512xbf16>
    %cst = arith.constant dense<0.000000e+00> : vector<16x512xf32>
    %6 = tpu.matmul %4, %5, %cst {dimension_numbers = #tpu.dot_dimension_numbers<[1], [0], [0], [1], [0, 0, 1, 1], [], []>} : vector<16x2048xbf16>, vector<2048x512xbf16>, vector<16x512xf32> -> vector<16x512xf32>
    %7 = arith.addf %3, %6 : vector<16x512xf32>
    %c0_6 = arith.constant 0 : index
    %c0_7 = arith.constant 0 : index
    %8 = vector.load %arg6[%c0_6, %c0_7] : memref<16x512xf32, #tpu.memory_space<vmem>>, vector<16x512xf32>
    tpu.vector_store %arg6[%c0_6, %c0_7], %7 {strides = array<i32>} : memref<16x512xf32, #tpu.memory_space<vmem>>, vector<16x512xf32>,
    %c1_i32 = arith.constant 1 : i32
    %9 = arith.cmpi eq, %arg0, %c1_i32 : i32
    %10 = arith.extui %9 : i1 to i32
    %c0_i32_8 = arith.constant 0 : i32
    %11 = arith.cmpi ne, %10, %c0_i32_8 : i32
    scf.if %11 {
      %c0_9 = arith.constant 0 : index
      %c0_10 = arith.constant 0 : index
      %12 = vector.load %arg5[%c0_9, %c0_10] : memref<6x512xf32, #tpu.memory_space<vmem>>, vector<6x512xf32>
      %c0_11 = arith.constant 0 : index
      %c0_12 = arith.constant 0 : index
      %13 = vector.load %arg6[%c0_11, %c0_12] : memref<16x512xf32, #tpu.memory_space<vmem>>, vector<16x512xf32>
      %14 = vector.extract_strided_slice %12 {offsets = [0, 0], sizes = [1, 512], strides = [1, 1]} : vector<6x512xf32> to vector<1x512xf32>
      %15 = vector.extract_strided_slice %12 {offsets = [1, 0], sizes = [1, 512], strides = [1, 1]} : vector<6x512xf32> to vector<1x512xf32>
      %cst_13 = arith.constant dense<0.000000e+00> : vector<512xf32>
      %16 = vector.multi_reduction <add>, %13, %cst_13 [0] : vector<16x512xf32> to vector<512xf32>
      %17 = vector.shape_cast %16 : vector<512xf32> to vector<1x512xf32>
      %cst_14 = arith.constant 1.600000e+01 : f32
      %18 = vector.broadcast %cst_14 : f32 to vector<1x512xf32>
      %19 = arith.divf %17, %18 : vector<1x512xf32>
      %20 = vector.broadcast %19 : vector<1x512xf32> to vector<16x512xf32>
      %21 = arith.subf %13, %20 : vector<16x512xf32>
      %22 = arith.mulf %21, %21 : vector<16x512xf32>
      %cst_15 = arith.constant dense<0.000000e+00> : vector<512xf32>
      %23 = vector.multi_reduction <add>, %22, %cst_15 [0] : vector<16x512xf32> to vector<512xf32>
      %24 = vector.shape_cast %23 : vector<512xf32> to vector<1x512xf32>
      %cst_16 = arith.constant 1.600000e+01 : f32
      %25 = vector.broadcast %cst_16 : f32 to vector<1x512xf32>
      %26 = arith.divf %24, %25 : vector<1x512xf32>
      %cst_17 = arith.constant 9.99999974E-6 : f32
      %27 = vector.broadcast %cst_17 : f32 to vector<1x512xf32>
      %28 = arith.addf %26, %27 : vector<1x512xf32>
      %29 = math.rsqrt %28 : vector<1x512xf32>
      %30 = arith.mulf %14, %29 : vector<1x512xf32>
      %31 = arith.mulf %19, %30 : vector<1x512xf32>
      %32 = arith.subf %15, %31 : vector<1x512xf32>
      %33 = vector.broadcast %30 : vector<1x512xf32> to vector<16x512xf32>
      %34 = arith.mulf %13, %33 : vector<16x512xf32>
      %35 = vector.broadcast %32 : vector<1x512xf32> to vector<16x512xf32>
      %36 = arith.addf %34, %35 : vector<16x512xf32>
      %cst_18 = arith.constant 0.000000e+00 : f32
      %37 = vector.broadcast %cst_18 : f32 to vector<16x512xf32>
      %38 = arith.maximumf %36, %37 : vector<16x512xf32>
      %39 = arith.truncf %38 : vector<16x512xf32> to vector<16x512xbf16>
      %c0_19 = arith.constant 0 : index
      %c0_20 = arith.constant 0 : index
      %40 = vector.load %arg3[%c0_19, %c0_20] : memref<512x512xbf16, #tpu.memory_space<vmem>>, vector<512x512xbf16>
      %cst_21 = arith.constant dense<0.000000e+00> : vector<16x512xf32>
      %41 = tpu.matmul %39, %40, %cst_21 {dimension_numbers = #tpu.dot_dimension_numbers<[1], [0], [0], [1], [0, 0, 1, 1], [], []>} : vector<16x512xbf16>, vector<512x512xbf16>, vector<16x512xf32> -> vector<16x512xf32>
      %42 = vector.extract_strided_slice %12 {offsets = [2, 0], sizes = [1, 512], strides = [1, 1]} : vector<6x512xf32> to vector<1x512xf32>
      %43 = vector.extract_strided_slice %12 {offsets = [3, 0], sizes = [1, 512], strides = [1, 1]} : vector<6x512xf32> to vector<1x512xf32>
      %cst_22 = arith.constant dense<0.000000e+00> : vector<512xf32>
      %44 = vector.multi_reduction <add>, %41, %cst_22 [0] : vector<16x512xf32> to vector<512xf32>
      %45 = vector.shape_cast %44 : vector<512xf32> to vector<1x512xf32>
      %cst_23 = arith.constant 1.600000e+01 : f32
      %46 = vector.broadcast %cst_23 : f32 to vector<1x512xf32>
      %47 = arith.divf %45, %46 : vector<1x512xf32>
      %48 = vector.broadcast %47 : vector<1x512xf32> to vector<16x512xf32>
      %49 = arith.subf %41, %48 : vector<16x512xf32>
      %50 = arith.mulf %49, %49 : vector<16x512xf32>
      %cst_24 = arith.constant dense<0.000000e+00> : vector<512xf32>
      %51 = vector.multi_reduction <add>, %50, %cst_24 [0] : vector<16x512xf32> to vector<512xf32>
      %52 = vector.shape_cast %51 : vector<512xf32> to vector<1x512xf32>
      %cst_25 = arith.constant 1.600000e+01 : f32
      %53 = vector.broadcast %cst_25 : f32 to vector<1x512xf32>
      %54 = arith.divf %52, %53 : vector<1x512xf32>
      %cst_26 = arith.constant 9.99999974E-6 : f32
      %55 = vector.broadcast %cst_26 : f32 to vector<1x512xf32>
      %56 = arith.addf %54, %55 : vector<1x512xf32>
      %57 = math.rsqrt %56 : vector<1x512xf32>
      %58 = arith.mulf %42, %57 : vector<1x512xf32>
      %59 = arith.mulf %47, %58 : vector<1x512xf32>
      %60 = arith.subf %43, %59 : vector<1x512xf32>
      %61 = vector.broadcast %58 : vector<1x512xf32> to vector<16x512xf32>
      %62 = arith.mulf %41, %61 : vector<16x512xf32>
      %63 = vector.broadcast %60 : vector<1x512xf32> to vector<16x512xf32>
      %64 = arith.addf %62, %63 : vector<16x512xf32>
      %cst_27 = arith.constant 0.000000e+00 : f32
      %65 = vector.broadcast %cst_27 : f32 to vector<16x512xf32>
      %66 = arith.maximumf %64, %65 : vector<16x512xf32>
      %67 = arith.addf %66, %38 : vector<16x512xf32>
      %68 = arith.truncf %67 : vector<16x512xf32> to vector<16x512xbf16>
      %c0_28 = arith.constant 0 : index
      %c0_29 = arith.constant 0 : index
      %69 = vector.load %arg4[%c0_28, %c0_29] : memref<512x512xbf16, #tpu.memory_space<vmem>>, vector<512x512xbf16>
      %cst_30 = arith.constant dense<0.000000e+00> : vector<16x512xf32>
      %70 = tpu.matmul %68, %69, %cst_30 {dimension_numbers = #tpu.dot_dimension_numbers<[1], [0], [0], [1], [0, 0, 1, 1], [], []>} : vector<16x512xbf16>, vector<512x512xbf16>, vector<16x512xf32> -> vector<16x512xf32>
      %71 = vector.extract_strided_slice %12 {offsets = [4, 0], sizes = [1, 512], strides = [1, 1]} : vector<6x512xf32> to vector<1x512xf32>
      %72 = vector.extract_strided_slice %12 {offsets = [5, 0], sizes = [1, 512], strides = [1, 1]} : vector<6x512xf32> to vector<1x512xf32>
      %cst_31 = arith.constant dense<0.000000e+00> : vector<512xf32>
      %73 = vector.multi_reduction <add>, %70, %cst_31 [0] : vector<16x512xf32> to vector<512xf32>
      %74 = vector.shape_cast %73 : vector<512xf32> to vector<1x512xf32>
      %cst_32 = arith.constant 1.600000e+01 : f32
      %75 = vector.broadcast %cst_32 : f32 to vector<1x512xf32>
      %76 = arith.divf %74, %75 : vector<1x512xf32>
      %77 = vector.broadcast %76 : vector<1x512xf32> to vector<16x512xf32>
      %78 = arith.subf %70, %77 : vector<16x512xf32>
      %79 = arith.mulf %78, %78 : vector<16x512xf32>
      %cst_33 = arith.constant dense<0.000000e+00> : vector<512xf32>
      %80 = vector.multi_reduction <add>, %79, %cst_33 [0] : vector<16x512xf32> to vector<512xf32>
      %81 = vector.shape_cast %80 : vector<512xf32> to vector<1x512xf32>
      %cst_34 = arith.constant 1.600000e+01 : f32
      %82 = vector.broadcast %cst_34 : f32 to vector<1x512xf32>
      %83 = arith.divf %81, %82 : vector<1x512xf32>
      %cst_35 = arith.constant 9.99999974E-6 : f32
      %84 = vector.broadcast %cst_35 : f32 to vector<1x512xf32>
      %85 = arith.addf %83, %84 : vector<1x512xf32>
      %86 = math.rsqrt %85 : vector<1x512xf32>
      %87 = arith.mulf %71, %86 : vector<1x512xf32>
      %88 = arith.mulf %76, %87 : vector<1x512xf32>
      %89 = arith.subf %72, %88 : vector<1x512xf32>
      %90 = vector.broadcast %87 : vector<1x512xf32> to vector<16x512xf32>
      %91 = arith.mulf %70, %90 : vector<16x512xf32>
      %92 = vector.broadcast %89 : vector<1x512xf32> to vector<16x512xf32>
      %93 = arith.addf %91, %92 : vector<16x512xf32>
      %cst_36 = arith.constant 0.000000e+00 : f32
      %94 = vector.broadcast %cst_36 : f32 to vector<16x512xf32>
      %95 = arith.maximumf %93, %94 : vector<16x512xf32>
      %96 = arith.addf %95, %67 : vector<16x512xf32>
      %c0_37 = arith.constant 0 : index
      %c0_38 = arith.constant 0 : index
      %97 = vector.load %arg6[%c0_37, %c0_38] : memref<16x512xf32, #tpu.memory_space<vmem>>, vector<16x512xf32>
      tpu.vector_store %arg6[%c0_37, %c0_38], %96 {strides = array<i32>} : memref<16x512xf32, #tpu.memory_space<vmem>>, vector<16x512xf32>,
    } else {
    }
    return
  }
  func.func @transform_0(%arg0: i32) -> (i32, i32) {
    %c0_i32 = arith.constant 0 : i32
    %c0_i32_0 = arith.constant 0 : i32
    return %c0_i32, %arg0 : i32, i32
  }
  func.func @transform_1(%arg0: i32) -> (i32, i32) {
    %c0_i32 = arith.constant 0 : i32
    %c0_i32_0 = arith.constant 0 : i32
    return %arg0, %c0_i32 : i32, i32
  }
  func.func @transform_2(%arg0: i32) -> (i32, i32) {
    %c0_i32 = arith.constant 0 : i32
    %c0_i32_0 = arith.constant 0 : i32
    %c0_i32_1 = arith.constant 0 : i32
    return %c0_i32, %c0_i32_0 : i32, i32
  }
  func.func @transform_3(%arg0: i32) -> (i32, i32) {
    %c0_i32 = arith.constant 0 : i32
    %c0_i32_0 = arith.constant 0 : i32
    %c0_i32_1 = arith.constant 0 : i32
    return %c0_i32, %c0_i32_0 : i32, i32
  }
  func.func @transform_4(%arg0: i32) -> (i32, i32) {
    %c0_i32 = arith.constant 0 : i32
    %c0_i32_0 = arith.constant 0 : i32
    %c0_i32_1 = arith.constant 0 : i32
    return %c0_i32, %c0_i32_0 : i32, i32
  }
  func.func @transform_5(%arg0: i32) -> (i32, i32) {
    %c0_i32 = arith.constant 0 : i32
    %c0_i32_0 = arith.constant 0 : i32
    %c0_i32_1 = arith.constant 0 : i32
    return %c0_i32, %c0_i32_0 : i32, i32
  }
}

</mosaic_0001>

<bundles_post_ra>
// kernel: tpu_custom_call.1
= control target key start
LH: loop header
LB: loop body
LE: loop exit
PB: predicated region body
PF: predicated region fallthrough
CT: control target
= control target key end

     0   :  { %s10282_s0 = inlined_call_operand.hbm [shape: bf16[16,4096], index: 0, kind: input, shape index: {}]   ;;  %s10283_s1 = inlined_call_operand.hbm [shape: bf16[4096,512], index: 1, kind: input, shape index: {}]   ;;  %s10284_s2 = inlined_call_operand.hbm [shape: bf16[512,512], index: 2, kind: input, shape index: {}]   ;;  %s10285_s3 = inlined_call_operand.hbm [shape: bf16[512,512], index: 3, kind: input, shape index: {}]   ;;  %s10286_s4 = inlined_call_operand.hbm [shape: f32[6,512], index: 4, kind: input, shape index: {}]   ;;  %s10287_s5 = inlined_call_operand.hbm [shape: f32[16,512], index: 5, kind: output, shape index: {}]  }
   0x1   :  { %10292 = sst [smem:[#allocation17_spill]] %s10282_s0 }
   0x2   :  { %10 = vsyncpa [#allocation3], 0 }
   0x3   :  { %12 = vsyncpa [#allocation3 + $0x1], 0 }
   0x4   :  { %13 = vsyncpa [#allocation6], 0 }
   0x5   :  { %15 = vsyncpa [#allocation6 + $0x1], 0 }
   0x6   :  { %16 = vsyncpa [#allocation9], 0 }
   0x7   :  { %17 = vsyncpa [#allocation4], 0  ;;  %s9086_s18 = smov 0   ;;  %s9088_s19 = smov 0  }
   0x8   :  { %s9090_s20 = smov 0   ;;  %s9092_s21 = smov 0  }
   0x9 LB: > { %s9105_s22 = sadd.s32 4294967295, %s9040_s21   ;;  %s9108_s23 = sadd.s32 1, %s9040_s21   ;;  %s9040_s21 = sphi %s9092_s21, %s10310_s21   ;;  %s9036_s20 = sphi %s9090_s20, %s10309_s20   ;;  %s9032_s19 = sphi %s9088_s19, %s10308_s19   ;;  %s9028_s18 = sphi %s9086_s18, %s10307_s18  }
   0xa   : > { %s27_s24 = ssub.s32 %s9040_s21, %s9108_s23  ;;  %s30_s25 = sadd.s32 1, %s9036_s20 }
   0xb   : > { %p28_p0 = scmp.eq.s32.totalorder %s27_s24, 0  ;;  %p37_p1 = scmp.ne.s32.totalorder %s9036_s20, %s9032_s19 }
   0xc   : > { %p38_p2 = scmp.eq.s32.totalorder %s9040_s21, 0  ;;  %p43_p3 = scmp.ne.s32.totalorder %s9032_s19, %s9028_s18 }
   0xd   : > { %s9118_s26 = scalar_select %p28_p0, %s9036_s20, %s30_s25  }
   0xe   : > { %p9120_p4 = por %p38_p2, %p37_p1  ;;  %p10288_p5 = scmp.eq.s32.totalorder %s9105_s22, 0 }
   0xf   : > { %p6751_p6 = scmp.ge.s32.totalorder %s9040_s21, 1  ;;  %p164_p7 = scmp.lt.s32.totalorder %s9040_s21, 3 }
  0x10   : > { %p9129_p8 = por %p10288_p5, %p43_p3  ;;  %s9042_s30 = smov [#allocation7]  }
  0x11   : > { %p9134_p10 = pnand %p6751_p6, %p164_p7  ;;  %s176_s6 = sshll.u32 %s9042_s30, 4  ;;  %s177_s6 = int_to_ptr.vmem [resolvable:$true] %s176_s6 }
  0x12   : > { %s10294_s28 = scalar_select %p9129_p8, 1, 0 }
  0x13   : > { %p7582_p11 = pneg %p9134_p10  ;;  %p7602_p13 = scmp.lt.s32.totalorder %s9040_s21, 2 }
  0x14   : > { %s8843_s9 = scalar_lea.vmem %s177_s6, 16384  ;;  %p8851_p7 = scmp.lt.s32.totalorder %s177_s6, %s177_s6 }
  0x15   : > { %p9142_p12 = pnand %p7582_p11, %p10288_p5  ;;  %p9149_p0 = pnand %p7602_p13, %p9120_p4 }
  0x16   : > { %p8844_p2 = scmp.ne.s32.totalorder %s177_s6, %s8843_s9  ;;  %p8852_p11 = scmp.lt.s32.totalorder %s8843_s9, %s8843_s9 }
  0x17   : > { %p8834_p1 = pneg %p9142_p12 }
  0x18   : > { %p8853_p9 = por %p8852_p11, %p8851_p7 }
  0x19   : > { %p8846_p3 = pnand %p8844_p2, %p8834_p1 }
  0x1b   : > { %p8847_p6 = pneg %p8846_p3 }
  0x1d   : > { %p8854_p5 = pnand %p8853_p9, %p8847_p6 }
  0x1f   : > { %8857 = shalt.err (!%p8854_p5)
}
  0x20   : > { %s10290_s10 = smov 256   ;;  %s10291_s11 = smov 16  }
  0x21   : > { %7585 = dma.hbm_to_vmem [thread:$0]  (!%p9142_p12), %s10284_s2, 16384, %s177_s6, [#allocation6], %s10290_s10, %s10290_s10, %s10291_s11  }
  0x22   : > { %s9045_s14 = smov [#allocation8]   ;;  %s9046_s16 = smov [#allocation10]  }
  0x23   : > { %s189_s15 = sshll.u32 %s9045_s14, 4  ;;  %s203_s17 = sshll.u32 %s9046_s16, 4  ;;  %s190_s15 = int_to_ptr.vmem [resolvable:$true] %s189_s15  ;;  %s204_s17 = int_to_ptr.vmem [resolvable:$true] %s203_s17 }
  0x24   : > { %s8869_s18 = scalar_lea.vmem %s190_s15, 16384  ;;  %p8877_p13 = scmp.lt.s32.totalorder %s190_s15, %s190_s15 }
  0x25   : > { %p8870_p4 = scmp.ne.s32.totalorder %s190_s15, %s8869_s18  ;;  %p8878_p2 = scmp.lt.s32.totalorder %s8869_s18, %s8869_s18 }
  0x27   : > { %p8872_p5 = pnand %p8870_p4, %p8834_p1  ;;  %p8879_p3 = por %p8878_p2, %p8877_p13 }
  0x29   : > { %p8873_p9 = pneg %p8872_p5 }
  0x2b   : > { %p8880_p6 = pnand %p8879_p3, %p8873_p9 }
  0x2d   : > { %8883 = shalt.err (!%p8880_p6)
}
  0x2e   : > { %7588 = dma.hbm_to_vmem [thread:$0]  (!%p9142_p12), %s10285_s3, 16384, %s190_s15, [#allocation9], %s10290_s10, %s10290_s10, %s10291_s11  }
  0x2f   : > { %s9178_s27 = sand.u32 1, %s9036_s20   ;;  %s8895_s30 = scalar_lea.vmem %s204_s17, 512 }
  0x30   : > { %p8896_p7 = scmp.ne.s32.totalorder %s204_s17, %s8895_s30  ;;  %p8903_p5 = scmp.lt.s32.totalorder %s204_s17, %s204_s17 }
  0x31   : > { %p8904_p9 = scmp.lt.s32.totalorder %s8895_s30, %s8895_s30 }
  0x32   : > { %p8898_p11 = pnand %p8896_p7, %p8834_p1 }
  0x33   : > { %p8905_p13 = por %p8904_p9, %p8903_p5 }
  0x34   : > { %p8899_p4 = pneg %p8898_p11 }
  0x36   : > { %p8906_p2 = pnand %p8905_p13, %p8899_p4 }
  0x38   : > { %8909 = shalt.err (!%p8906_p2)
}
  0x39   : > { %7591 = dma.hbm_to_vmem [thread:$0]  (!%p9142_p12), %s10286_s4, 512, %s204_s17, [#allocation9]  }
  0x3a   : > { %s6756_s12 = sshll.u32 %s9178_s27, 7  ;;  %s7559_s13 = sshll.u32 %s9040_s21, 10 }
  0x3b   : > { %s10298_s0 = sld [smem:[#allocation17_spill]]  ;;  %s218_s7 = scalar_lea.vmem [#allocation2], %s6756_s12 }
  0x3c   : > { %s225_s18 = sshll.u32 %s218_s7, 4  ;;  %s215_s24 = scalar_lea.sflag [#allocation3], %s9178_s27  ;;  %s9195_s18 = int_to_ptr.vmem [resolvable:$true] %s225_s18 }
  0x3d   : > { %p8912_p3 = pneg %p9149_p0 }
  0x41   : > { %s9193_s16 = scalar_lea.hbm %s10298_s0, %s7559_s13  ;;  %s8915_s6 = scalar_lea.hbm %s10298_s0, 4096 }
  0x42   : > { %s8910_s25 = scalar_lea.hbm %s9193_s16, 2048  ;;  %p8916_p7 = scmp.lt.s32.totalorder %s9193_s16, %s10298_s0 }
  0x43   : > { %p8911_p1 = scmp.ne.s32.totalorder %s9193_s16, %s8910_s25  ;;  %p8917_p11 = scmp.lt.s32.totalorder %s8915_s6, %s8910_s25 }
  0x45   : > { %p8913_p12 = pnand %p8912_p3, %p8911_p1  ;;  %p8918_p4 = por %p8917_p11, %p8916_p7 }
  0x47   : > { %p8914_p6 = pneg %p8913_p12 }
  0x49   : > { %p8919_p5 = pnand %p8918_p4, %p8914_p6 }
  0x4b   : > { %8922 = shalt.err (!%p8919_p5)
}
  0x4c   : > { %s8923_s12 = scalar_lea.vmem %s9195_s18, 2048  ;;  %s9047_s14 = smov [#allocation2]  }
  0x4d   : > { %p8924_p9 = scmp.ne.s32.totalorder %s9195_s18, %s8923_s12  ;;  %s8928_s15 = sshll.u32 %s9047_s14, 4  ;;  %s8929_s15 = int_to_ptr.vmem [resolvable:$false] %s8928_s15 }
  0x4e   : > { %s8930_s7 = scalar_lea.vmem %s8929_s15, 4096  ;;  %p8931_p1 = scmp.lt.s32.totalorder %s9195_s18, %s8929_s15 }
  0x4f   : > { %p8926_p13 = pnand %p8924_p9, %p8912_p3  ;;  %p8932_p12 = scmp.lt.s32.totalorder %s8930_s7, %s8923_s12 }
  0x51   : > { %p8927_p2 = pneg %p8926_p13  ;;  %p8933_p8 = por %p8932_p12, %p8931_p1 }
  0x53   : > { %p8934_p7 = pnand %p8933_p8, %p8927_p2 }
  0x55   : > { %8937 = shalt.err (!%p8934_p7)
}
  0x56   : > { %s9048_s25 = smov 2048   ;;  %s9049_s17 = smov 1024  }
  0x57   : > { %s9050_s30 = smov 64   ;;  %s235_s6 = sand.u32 1, %s9040_s21  }
  0x58   : > { %7595 = dma.hbm_to_vmem [thread:$0]  (!%p9149_p0), %s9193_s16, 2048, %s9195_s18, %s215_s24, %s9048_s25, %s9049_s17, %s9050_s30  }
  0x59   : > { %s6759_s9 = sshll.u32 %s9178_s27, 12  ;;  %s7561_s13 = sshll.u32 %s9040_s21, 16 }
  0x5a   : > { %s239_s12 = scalar_lea.vmem [#allocation5], %s6759_s9  ;;  %s9230_s10 = scalar_lea.hbm %s10283_s1, %s7561_s13 }
  0x5b   : > { %s247_s14 = sshll.u32 %s239_s12, 4  ;;  %s236_s11 = scalar_lea.sflag [#allocation6], %s235_s6  ;;  %s9232_s14 = int_to_ptr.vmem [resolvable:$true] %s247_s14 }
  0x5c   : > { %s8938_s0 = scalar_lea.hbm %s9230_s10, 65536  ;;  %s8943_s16 = scalar_lea.hbm %s10283_s1, 131072 }
  0x5d   : > { %p8939_p8 = scmp.ne.s32.totalorder %s9230_s10, %s8938_s0  ;;  %p8944_p4 = scmp.lt.s32.totalorder %s9230_s10, %s10283_s1 }
  0x5e   : > { %p8945_p5 = scmp.lt.s32.totalorder %s8943_s16, %s8938_s0 }
  0x5f   : > { %p8941_p6 = pnand %p8939_p8, %p8912_p3 }
  0x60   : > { %p8946_p9 = por %p8945_p5, %p8944_p4 }
  0x61   : > { %p8942_p11 = pneg %p8941_p6 }
  0x63   : > { %p8947_p13 = pnand %p8946_p9, %p8942_p11 }
  0x65   : > { %8950 = shalt.err (!%p8947_p13)
}
  0x66   : > { %s8951_s25 = scalar_lea.vmem %s9232_s14, 65536  ;;  %s9051_s17 = smov [#allocation5]  }
  0x67   : > { %p8952_p2 = scmp.ne.s32.totalorder %s9232_s14, %s8951_s25  ;;  %s8956_s30 = sshll.u32 %s9051_s17, 4  ;;  %s8957_s30 = int_to_ptr.vmem [resolvable:$false] %s8956_s30 }
  0x68   : > { %s8958_s6 = scalar_lea.vmem %s8957_s30, 131072  ;;  %p8959_p7 = scmp.lt.s32.totalorder %s9232_s14, %s8957_s30 }
  0x69   : > { %p8954_p1 = pnand %p8952_p2, %p8912_p3  ;;  %p8960_p8 = scmp.lt.s32.totalorder %s8958_s6, %s8951_s25 }
  0x6b   : > { %p8955_p12 = pneg %p8954_p1  ;;  %p8961_p6 = por %p8960_p8, %p8959_p7 }
  0x6d   : > { %p8962_p4 = pnand %p8961_p6, %p8955_p12 }
  0x6f   : > { %8965 = shalt.err (!%p8962_p4)
}
  0x70   : > { %s10299_s0 = smov 16   ;;  %s10300_s9 = smov 256  }
  0x71   : > { %7598 = dma.hbm_to_vmem [thread:$0]  (!%p9149_p0), %s9230_s10, 65536, %s9232_s14, %s236_s11, %s10300_s9, %s10300_s9, %s10299_s0  }
  0x72   : > { %259 = sbr.rel (%p9134_p10) target bundleno = 1651 (0x673), region = 40  ;;  %s261_s13 = sand.u32 (!%p9134_p10), 1, %s9032_s19  }
  0x73   : > { %s6764_s12 = sshll.u32 (!%p9134_p10), %s261_s13, 7  ;;  %s262_s15 = scalar_lea.sflag (!%p9134_p10), [#allocation3], %s261_s13 }
  0x74   : > { %s9262_s7 = scalar_lea.vmem (!%p9134_p10), [#allocation2], %s6764_s12  ;;  %p10301_p3 = scmp.ne.s32.totalorder (!%p9134_p10), %s10294_s28, 0 }
  0x77   : > { %9007 = dma.done.wait (%p10301_p3), %s262_s15, 2048  }
  0x78   : > { %9009 = vsyncadd (%p10301_p3), %s262_s15, 4294965248  ;;  %s270_s8 = sand.u32 1, %s9105_s22   ;;  %s6765_s21 = sshll.u32 %s261_s13, 12 }
  0x79   : > { %s271_s10 = scalar_lea.sflag [#allocation6], %s270_s8  ;;  %s9269_s11 = scalar_lea.vmem [#allocation5], %s6765_s21 }
  0x7a   : > { %9011 = dma.done.wait (%p10301_p3), %s271_s10, 65536  }
  0x7b   : > { %9013 = vsyncadd (%p10301_p3), %s271_s10, 4294901760  ;;  %p10302_p10 = scmp.eq.s32.totalorder %s9105_s22, 0 }
  0x7d   : > { %9015 = dma.done.wait (%p10302_p10), [#allocation6], 16384   ;;  %p10303_p0 = pmov %p10302_p10 }
  0x7f   : > { %9017 = vsyncadd (%p10303_p0), [#allocation6], 4294950912  ;;  %p10304_p11 = pmov %p10303_p0 }
  0x80   : > { %p10305_p5 = pmov %p10303_p0 }
  0x81   : > { %9019 = dma.done.wait (%p10304_p11), [#allocation9], 16896  }
  0x82   : > { %9021 = vsyncadd (%p10305_p5), [#allocation9], 4294950400  ;;  %p10306_p9 = scmp.ne.s32.totalorder %s9105_s22, 0 }
  0x84   : > { %318 = sbr.rel (%p10306_p9) target bundleno = 142 (0x8e), region = 64 }
  0x89   : > { %v9052_v0 = vmov 0.0  }
  0x8a   : > { %319 = vst [vmem:[#allocation11] sm:$0xff] %v9052_v0  ;;  %320 = vst [vmem:[#allocation11 + $0x8] sm:$0xff] %v9052_v0 }
  0x8b   : > { %321 = vst [vmem:[#allocation11 + $0x10] sm:$0xff] %v9052_v0  ;;  %322 = vst [vmem:[#allocation11 + $0x18] sm:$0xff] %v9052_v0 }
  0x8c   : > { %323 = vst [vmem:[#allocation11 + $0x20] sm:$0xff] %v9052_v0  ;;  %324 = vst [vmem:[#allocation11 + $0x28] sm:$0xff] %v9052_v0 }
  0x8d   : > { %325 = vst [vmem:[#allocation11 + $0x30] sm:$0xff] %v9052_v0  ;;  %326 = vst [vmem:[#allocation11 + $0x38] sm:$0xff] %v9052_v0 }
  0x8e PF: > { %v7652_v1 = vld [vmem:[%s9269_s11 + $0xe4] ss:$16 sps:$4 sm:$0xff]   ;;  %v7656_v3 = vld [vmem:[%s9269_s11 + $0xe0] ss:$16 sps:$4 sm:$0xff]   ;;  %v336_v51 = vld [vmem:[%s9262_s7 + $0x8] sm:$0xff]  ;;  %p7298_p13 = scmp.ne.s32.totalorder %s9105_s22, 1 }
  0x8f   : > { %v7654_v2 = vld [vmem:[%s9269_s11 + $0x2e4] ss:$16 sps:$4 sm:$0xff]   ;;  %3503 = vmatprep.subr.bf16.mxu0 %v7652_v1  ;;  %v7657_v4 = vld [vmem:[%s9269_s11 + $0x2e0] ss:$16 sps:$4 sm:$0xff]   ;;  %v344_v52 = vld [vmem:[%s9262_s7 + $0x48] sm:$0xff] }
  0x90   : > { %3546 = vmatprep.subr.bf16.mxu1 %v7654_v2  ;;  %v7658_v5 = vld [vmem:[%s9269_s11 + $0xc4] ss:$16 sps:$4 sm:$0xff]   ;;  %3504 = vmatpush1.bf16.msra.mxu0 %v7656_v3  ;;  %v7662_v7 = vld [vmem:[%s9269_s11 + $0xc0] ss:$16 sps:$4 sm:$0xff]   ;;  %v9341_v56 = vcombine.high %v336_v51, %v344_v52 }
  0x91   : > { %3547 = vmatpush1.bf16.msra.mxu1 %v7657_v4  ;;  %v7660_v6 = vld [vmem:[%s9269_s11 + $0x2c4] ss:$16 sps:$4 sm:$0xff]   ;;  %3505 = vmatprep.subr.bf16.mxu0 %v7658_v5  ;;  %v7663_v8 = vld [vmem:[%s9269_s11 + $0x2c0] ss:$16 sps:$4 sm:$0xff]  }
  0x92   : > { %3548 = vmatprep.subr.bf16.mxu1 %v7660_v6  ;;  %v7664_v9 = vld [vmem:[%s9269_s11 + $0xa4] ss:$16 sps:$4 sm:$0xff]   ;;  %v7668_v11 = vld [vmem:[%s9269_s11 + $0xa0] ss:$16 sps:$4 sm:$0xff]   ;;  %3578 = vmatprep.mubr.bf16.mxu1 %v9341_v56 }
  0x93   : > { %v7666_v10 = vld [vmem:[%s9269_s11 + $0x2a4] ss:$16 sps:$4 sm:$0xff]   ;;  %v7669_v12 = vld [vmem:[%s9269_s11 + $0x2a0] ss:$16 sps:$4 sm:$0xff]  }
  0x94   : > { %3506 = vmatpush1.bf16.msra.mxu0 %v7662_v7  ;;  %v7670_v13 = vld [vmem:[%s9269_s11 + $0x84] ss:$16 sps:$4 sm:$0xff]   ;;  %v7674_v15 = vld [vmem:[%s9269_s11 + $0x80] ss:$16 sps:$4 sm:$0xff]  }
  0x95   : > { %3549 = vmatpush1.bf16.msra.mxu1 %v7663_v8  ;;  %3507 = vmatprep.subr.bf16.mxu0 %v7664_v9  ;;  %v7672_v14 = vld [vmem:[%s9269_s11 + $0x284] ss:$16 sps:$4 sm:$0xff]   ;;  %v7675_v16 = vld [vmem:[%s9269_s11 + $0x280] ss:$16 sps:$4 sm:$0xff]  }
  0x96   : > { %3550 = vmatprep.subr.bf16.mxu1 %v7666_v10  ;;  %v7676_v17 = vld [vmem:[%s9269_s11 + $0x64] ss:$16 sps:$4 sm:$0xff]   ;;  %v7680_v19 = vld [vmem:[%s9269_s11 + $0x60] ss:$16 sps:$4 sm:$0xff]   ;;  %v9363_v10 = vcombine.low %v336_v51, %v344_v52 }
  0x97   : > { %v7678_v18 = vld [vmem:[%s9269_s11 + $0x264] ss:$16 sps:$4 sm:$0xff]   ;;  %v7681_v20 = vld [vmem:[%s9269_s11 + $0x260] ss:$16 sps:$4 sm:$0xff]  }
  0x98   : > { %3508 = vmatpush1.bf16.msra.mxu0 %v7668_v11  ;;  %v7682_v21 = vld [vmem:[%s9269_s11 + $0x44] ss:$16 sps:$4 sm:$0xff]   ;;  %v7686_v23 = vld [vmem:[%s9269_s11 + $0x40] ss:$16 sps:$4 sm:$0xff]  }
  0x99   : > { %3551 = vmatpush1.bf16.msra.mxu1 %v7669_v12  ;;  %3509 = vmatprep.subr.bf16.mxu0 %v7670_v13  ;;  %v7684_v22 = vld [vmem:[%s9269_s11 + $0x244] ss:$16 sps:$4 sm:$0xff]   ;;  %v7687_v24 = vld [vmem:[%s9269_s11 + $0x240] ss:$16 sps:$4 sm:$0xff]  }
  0x9a   : > { %3552 = vmatprep.subr.bf16.mxu1 %v7672_v14  ;;  %v7688_v25 = vld [vmem:[%s9269_s11 + $0x24] ss:$16 sps:$4 sm:$0xff]   ;;  %v7692_v27 = vld [vmem:[%s9269_s11 + $0x20] ss:$16 sps:$4 sm:$0xff]  }
  0x9b   : > { %v7690_v26 = vld [vmem:[%s9269_s11 + $0x224] ss:$16 sps:$4 sm:$0xff]   ;;  %v7693_v28 = vld [vmem:[%s9269_s11 + $0x220] ss:$16 sps:$4 sm:$0xff]  }
  0x9c   : > { %3510 = vmatpush1.bf16.msra.mxu0 %v7674_v15  ;;  %v7694_v29 = vld [vmem:[%s9269_s11 + $0x4] ss:$16 sps:$4 sm:$0xff]   ;;  %v7698_v31 = vld [vmem:[%s9269_s11] ss:$16 sps:$4 sm:$0xff]  }
  0x9d   : > { %3553 = vmatpush1.bf16.msra.mxu1 %v7675_v16  ;;  %3511 = vmatprep.subr.bf16.mxu0 %v7676_v17  ;;  %v7696_v30 = vld [vmem:[%s9269_s11 + $0x204] ss:$16 sps:$4 sm:$0xff]   ;;  %v7699_v32 = vld [vmem:[%s9269_s11 + $0x200] ss:$16 sps:$4 sm:$0xff]  }
  0x9e   : > { %3554 = vmatprep.subr.bf16.mxu1 %v7678_v18  ;;  %v7700_v33 = vld [vmem:[%s9269_s11 + $0x1e4] ss:$16 sps:$4 sm:$0xff]   ;;  %v7704_v35 = vld [vmem:[%s9269_s11 + $0x1e0] ss:$16 sps:$4 sm:$0xff]  }
  0x9f   : > { %v7702_v34 = vld [vmem:[%s9269_s11 + $0x3e4] ss:$16 sps:$4 sm:$0xff]   ;;  %v7705_v36 = vld [vmem:[%s9269_s11 + $0x3e0] ss:$16 sps:$4 sm:$0xff]  }
  0xa0   : > { %3512 = vmatpush1.bf16.msra.mxu0 %v7680_v19  ;;  %v7706_v37 = vld [vmem:[%s9269_s11 + $0x1c4] ss:$16 sps:$4 sm:$0xff]   ;;  %v7710_v39 = vld [vmem:[%s9269_s11 + $0x1c0] ss:$16 sps:$4 sm:$0xff]  }
  0xa1   : > { %3555 = vmatpush1.bf16.msra.mxu1 %v7681_v20  ;;  %3513 = vmatprep.subr.bf16.mxu0 %v7682_v21  ;;  %v7708_v38 = vld [vmem:[%s9269_s11 + $0x3c4] ss:$16 sps:$4 sm:$0xff]   ;;  %v7711_v40 = vld [vmem:[%s9269_s11 + $0x3c0] ss:$16 sps:$4 sm:$0xff]  }
  0xa2   : > { %3556 = vmatprep.subr.bf16.mxu1 %v7684_v22  ;;  %v7712_v41 = vld [vmem:[%s9269_s11 + $0x1a4] ss:$16 sps:$4 sm:$0xff]   ;;  %v7716_v43 = vld [vmem:[%s9269_s11 + $0x1a0] ss:$16 sps:$4 sm:$0xff]  }
  0xa3   : > { %v7714_v42 = vld [vmem:[%s9269_s11 + $0x3a4] ss:$16 sps:$4 sm:$0xff]   ;;  %v7717_v44 = vld [vmem:[%s9269_s11 + $0x3a0] ss:$16 sps:$4 sm:$0xff]  }
  0xa4   : > { %3514 = vmatpush1.bf16.msra.mxu0 %v7686_v23  ;;  %v7718_v45 = vld [vmem:[%s9269_s11 + $0x184] ss:$16 sps:$4 sm:$0xff]   ;;  %v7722_v47 = vld [vmem:[%s9269_s11 + $0x180] ss:$16 sps:$4 sm:$0xff]  }
  0xa5   : > { %3557 = vmatpush1.bf16.msra.mxu1 %v7687_v24  ;;  %3515 = vmatprep.subr.bf16.mxu0 %v7688_v25  ;;  %v7720_v46 = vld [vmem:[%s9269_s11 + $0x384] ss:$16 sps:$4 sm:$0xff]   ;;  %v7723_v48 = vld [vmem:[%s9269_s11 + $0x380] ss:$16 sps:$4 sm:$0xff]  }
  0xa6   : > { %3558 = vmatprep.subr.bf16.mxu1 %v7690_v26  ;;  %v335_v49 = vld [vmem:[%s9262_s7] sm:$0xff] }
  0xa7   : > { %v343_v50 = vld [vmem:[%s9262_s7 + $0x40] sm:$0xff] }
  0xa8   : > { %3516 = vmatpush1.bf16.msra.mxu0 %v7692_v27  ;;  %v7724_v53 = vld [vmem:[%s9269_s11 + $0x164] ss:$16 sps:$4 sm:$0xff]   ;;  %v9338_v54 = vcombine.high %v335_v49, %v343_v50  ;;  %v7728_v57 = vld [vmem:[%s9269_s11 + $0x160] ss:$16 sps:$4 sm:$0xff]   ;;  %v9361_v9 = vcombine.low %v335_v49, %v343_v50 }
  0xa9   : > { %3559 = vmatpush1.bf16.msra.mxu1 %v7693_v28  ;;  %3517 = vmatprep.subr.bf16.mxu0 %v7694_v29  ;;  %v7726_v55 = vld [vmem:[%s9269_s11 + $0x364] ss:$16 sps:$4 sm:$0xff]   ;;  %v7729_v58 = vld [vmem:[%s9269_s11 + $0x360] ss:$16 sps:$4 sm:$0xff]  }
  0xaa   : > { %3560 = vmatprep.subr.bf16.mxu1 %v7696_v30  ;;  %3535 = vmatprep.mubr.bf16.mxu0 %v9338_v54  ;;  %v7730_v59 = vld [vmem:[%s9269_s11 + $0x144] ss:$16 sps:$4 sm:$0xff]   ;;  %v7734_v61 = vld [vmem:[%s9269_s11 + $0x140] ss:$16 sps:$4 sm:$0xff]  }
  0xab   : > { %v7732_v60 = vld [vmem:[%s9269_s11 + $0x344] ss:$16 sps:$4 sm:$0xff]   ;;  %v7735_v62 = vld [vmem:[%s9269_s11 + $0x340] ss:$16 sps:$4 sm:$0xff]  }
  0xac   : > { %3518 = vmatpush1.bf16.msra.mxu0 %v7698_v31  ;;  %v7736_v63 = vld [vmem:[%s9269_s11 + $0x124] ss:$16 sps:$4 sm:$0xff]   ;;  %v7740_v1 = vld [vmem:[%s9269_s11 + $0x120] ss:$16 sps:$4 sm:$0xff]  }
  0xad   : > { %3561 = vmatpush1.bf16.msra.mxu1 %v7699_v32  ;;  %3519 = vmatprep.subr.bf16.mxu0 %v7700_v33  ;;  %v7738_v0 = vld [vmem:[%s9269_s11 + $0x324] ss:$16 sps:$4 sm:$0xff]   ;;  %v7741_v2 = vld [vmem:[%s9269_s11 + $0x320] ss:$16 sps:$4 sm:$0xff]  }
  0xae   : > { %3562 = vmatprep.subr.bf16.mxu1 %v7702_v34  ;;  %v7742_v3 = vld [vmem:[%s9269_s11 + $0x104] ss:$16 sps:$4 sm:$0xff]   ;;  %v7746_v5 = vld [vmem:[%s9269_s11 + $0x100] ss:$16 sps:$4 sm:$0xff]  }
  0xaf   : > { %v7744_v4 = vld [vmem:[%s9269_s11 + $0x304] ss:$16 sps:$4 sm:$0xff]   ;;  %v7747_v6 = vld [vmem:[%s9269_s11 + $0x300] ss:$16 sps:$4 sm:$0xff]  }
  0xb0   : > { %3520 = vmatpush2.bf16.msra.mxu0 %v7704_v35  ;;  %v7750_v7 = vld [vmem:[%s9269_s11 + $0x4e4] ss:$16 sps:$4 sm:$0xff]   ;;  %v7748_v11 = vld [vmem:[%s9269_s11 + $0x4e0] ss:$16 sps:$4 sm:$0xff]  }
  0xb1   : > { %3563 = vmatpush2.bf16.msra.mxu1 %v7705_v36  ;;  %3521 = vmatprep.subr.bf16.mxu0 %v7706_v37  ;;  %v7753_v8 = vld [vmem:[%s9269_s11 + $0x6e4] ss:$16 sps:$4 sm:$0xff]   ;;  %v7751_v12 = vld [vmem:[%s9269_s11 + $0x6e0] ss:$16 sps:$4 sm:$0xff]  }
  0xb2   : > { %3564 = vmatprep.subr.bf16.mxu1 %v7708_v38  ;;  %v7756_v13 = vld [vmem:[%s9269_s11 + $0x4c4] ss:$16 sps:$4 sm:$0xff]   ;;  %v7754_v15 = vld [vmem:[%s9269_s11 + $0x4c0] ss:$16 sps:$4 sm:$0xff]  }
  0xb3   : > { %v7759_v14 = vld [vmem:[%s9269_s11 + $0x6c4] ss:$16 sps:$4 sm:$0xff]   ;;  %v7757_v16 = vld [vmem:[%s9269_s11 + $0x6c0] ss:$16 sps:$4 sm:$0xff]  }
  0xb4   : > { %3522 = vmatpush2.bf16.msra.mxu0 %v7710_v39  ;;  %v7762_v17 = vld [vmem:[%s9269_s11 + $0x4a4] ss:$16 sps:$4 sm:$0xff]   ;;  %v7760_v19 = vld [vmem:[%s9269_s11 + $0x4a0] ss:$16 sps:$4 sm:$0xff]   ;;  %v9400_v39 = vld [vmem:[%s9262_s7 + $0x18] sm:$0xff] }
  0xb5   : > { %3565 = vmatpush2.bf16.msra.mxu1 %v7711_v40  ;;  %3523 = vmatprep.subr.bf16.mxu0 %v7712_v41  ;;  %v7765_v18 = vld [vmem:[%s9269_s11 + $0x6a4] ss:$16 sps:$4 sm:$0xff]   ;;  %v7763_v20 = vld [vmem:[%s9269_s11 + $0x6a0] ss:$16 sps:$4 sm:$0xff]   ;;  %v9403_v40 = vld [vmem:[%s9262_s7 + $0x58] sm:$0xff] }
  0xb6   : > { %3566 = vmatprep.subr.bf16.mxu1 %v7714_v42  ;;  %v7768_v21 = vld [vmem:[%s9269_s11 + $0x484] ss:$16 sps:$4 sm:$0xff]   ;;  %v7766_v23 = vld [vmem:[%s9269_s11 + $0x480] ss:$16 sps:$4 sm:$0xff]  }
  0xb7   : > { %v7771_v22 = vld [vmem:[%s9269_s11 + $0x684] ss:$16 sps:$4 sm:$0xff]   ;;  %v7769_v24 = vld [vmem:[%s9269_s11 + $0x680] ss:$16 sps:$4 sm:$0xff]  }
  0xb8   : > { %3524 = vmatpush2.bf16.msra.mxu0 %v7716_v43  ;;  %v7774_v25 = vld [vmem:[%s9269_s11 + $0x464] ss:$16 sps:$4 sm:$0xff]   ;;  %v7772_v27 = vld [vmem:[%s9269_s11 + $0x460] ss:$16 sps:$4 sm:$0xff]  }
  0xb9   : > { %3567 = vmatpush2.bf16.msra.mxu1 %v7717_v44  ;;  %3525 = vmatprep.subr.bf16.mxu0 %v7718_v45  ;;  %v7777_v26 = vld [vmem:[%s9269_s11 + $0x664] ss:$16 sps:$4 sm:$0xff]   ;;  %v7775_v28 = vld [vmem:[%s9269_s11 + $0x660] ss:$16 sps:$4 sm:$0xff]   ;;  %v9413_v44 = vcombine.high %v9400_v39, %v9403_v40 }
  0xba   : > { %3568 = vmatprep.subr.bf16.mxu1 %v7720_v46  ;;  %v7780_v29 = vld [vmem:[%s9269_s11 + $0x444] ss:$16 sps:$4 sm:$0xff]   ;;  %v7778_v31 = vld [vmem:[%s9269_s11 + $0x440] ss:$16 sps:$4 sm:$0xff]  }
  0xbb   : > { %v7783_v30 = vld [vmem:[%s9269_s11 + $0x644] ss:$16 sps:$4 sm:$0xff]   ;;  %v7781_v32 = vld [vmem:[%s9269_s11 + $0x640] ss:$16 sps:$4 sm:$0xff]  }
  0xbc   : > { %3526 = vmatpush2.bf16.msra.mxu0 %v7722_v47  ;;  %v7786_v33 = vld [vmem:[%s9269_s11 + $0x424] ss:$16 sps:$4 sm:$0xff]   ;;  %v7784_v35 = vld [vmem:[%s9269_s11 + $0x420] ss:$16 sps:$4 sm:$0xff]  }
  0xbd   : > { %3569 = vmatpush2.bf16.msra.mxu1 %v7723_v48  ;;  %3527 = vmatprep.subr.bf16.mxu0 %v7724_v53  ;;  %v7789_v34 = vld [vmem:[%s9269_s11 + $0x624] ss:$16 sps:$4 sm:$0xff]   ;;  %v7787_v36 = vld [vmem:[%s9269_s11 + $0x620] ss:$16 sps:$4 sm:$0xff]  }
  0xbe   : > { %3570 = vmatprep.subr.bf16.mxu1 %v7726_v55  ;;  %v9394_v37 = vld [vmem:[%s9262_s7 + $0x10] sm:$0xff] }
  0xbf   : > { %v9397_v38 = vld [vmem:[%s9262_s7 + $0x50] sm:$0xff] }
  0xc0   : > { %3528 = vmatpush2.bf16.msra.mxu0 %v7728_v57  ;;  %v7792_v41 = vld [vmem:[%s9269_s11 + $0x404] ss:$16 sps:$4 sm:$0xff]   ;;  %v9408_v42 = vcombine.high %v9394_v37, %v9397_v38  ;;  %v7790_v45 = vld [vmem:[%s9269_s11 + $0x400] ss:$16 sps:$4 sm:$0xff]  }
  0xc1   : > { %3571 = vmatpush2.bf16.msra.mxu1 %v7729_v58  ;;  %3529 = vmatprep.subr.bf16.mxu0 %v7730_v59  ;;  %v7795_v43 = vld [vmem:[%s9269_s11 + $0x604] ss:$16 sps:$4 sm:$0xff]   ;;  %v7793_v46 = vld [vmem:[%s9269_s11 + $0x600] ss:$16 sps:$4 sm:$0xff]  }
  0xc2   : > { %3572 = vmatprep.subr.bf16.mxu1 %v7732_v60  ;;  %v7798_v47 = vld [vmem:[%s9269_s11 + $0x5e4] ss:$16 sps:$4 sm:$0xff]   ;;  %v7796_v49 = vld [vmem:[%s9269_s11 + $0x5e0] ss:$16 sps:$4 sm:$0xff]  }
  0xc3   : > { %v7801_v48 = vld [vmem:[%s9269_s11 + $0x7e4] ss:$16 sps:$4 sm:$0xff]   ;;  %v7799_v50 = vld [vmem:[%s9269_s11 + $0x7e0] ss:$16 sps:$4 sm:$0xff]  }
  0xc4   : > { %3530 = vmatpush2.bf16.msra.mxu0 %v7734_v61  ;;  %v7804_v51 = vld [vmem:[%s9269_s11 + $0x5c4] ss:$16 sps:$4 sm:$0xff]   ;;  %v7802_v53 = vld [vmem:[%s9269_s11 + $0x5c0] ss:$16 sps:$4 sm:$0xff]  }
  0xc5   : > { %3573 = vmatpush2.bf16.msra.mxu1 %v7735_v62  ;;  %3531 = vmatprep.subr.bf16.mxu0 %v7736_v63  ;;  %v7807_v52 = vld [vmem:[%s9269_s11 + $0x7c4] ss:$16 sps:$4 sm:$0xff]   ;;  %v7805_v55 = vld [vmem:[%s9269_s11 + $0x7c0] ss:$16 sps:$4 sm:$0xff]  }
  0xc6   : > { %3574 = vmatprep.subr.bf16.mxu1 %v7738_v0  ;;  %v7810_v57 = vld [vmem:[%s9269_s11 + $0x5a4] ss:$16 sps:$4 sm:$0xff]   ;;  %v7808_v59 = vld [vmem:[%s9269_s11 + $0x5a0] ss:$16 sps:$4 sm:$0xff]  }
  0xc7   : > { %v7813_v58 = vld [vmem:[%s9269_s11 + $0x7a4] ss:$16 sps:$4 sm:$0xff]   ;;  %v7811_v60 = vld [vmem:[%s9269_s11 + $0x7a0] ss:$16 sps:$4 sm:$0xff]  }
  0xc8   : > { %3532 = vmatpush2.bf16.msra.mxu0 %v7740_v1  ;;  %v7816_v61 = vld [vmem:[%s9269_s11 + $0x584] ss:$16 sps:$4 sm:$0xff]   ;;  %v7814_v63 = vld [vmem:[%s9269_s11 + $0x580] ss:$16 sps:$4 sm:$0xff]  }
  0xc9   : > { %3575 = vmatpush2.bf16.msra.mxu1 %v7741_v2  ;;  %3533 = vmatprep.subr.bf16.mxu0 %v7742_v3  ;;  %v7819_v62 = vld [vmem:[%s9269_s11 + $0x784] ss:$16 sps:$4 sm:$0xff]   ;;  %v7817_v0 = vld [vmem:[%s9269_s11 + $0x780] ss:$16 sps:$4 sm:$0xff]  }
  0xca   : > { %3576 = vmatprep.subr.bf16.mxu1 %v7744_v4  ;;  %v7822_v1 = vld [vmem:[%s9269_s11 + $0x564] ss:$16 sps:$4 sm:$0xff]   ;;  %v7820_v3 = vld [vmem:[%s9269_s11 + $0x560] ss:$16 sps:$4 sm:$0xff]  }
  0xcb   : > { %v7825_v2 = vld [vmem:[%s9269_s11 + $0x764] ss:$16 sps:$4 sm:$0xff]   ;;  %v7823_v4 = vld [vmem:[%s9269_s11 + $0x760] ss:$16 sps:$4 sm:$0xff]  }
  0xcc   : > { %3534 = vmatpush2.bf16.msra.mxu0 %v7746_v5  ;;  %v7828_v5 = vld [vmem:[%s9269_s11 + $0x544] ss:$16 sps:$4 sm:$0xff]  }
  0xcd   : > { %3577 = vmatpush2.bf16.msra.mxu1 %v7747_v6  ;;  %3589 = vmatprep.subr.bf16.mxu0 %v7750_v7  ;;  %v7831_v6 = vld [vmem:[%s9269_s11 + $0x744] ss:$16 sps:$4 sm:$0xff]   ;;  %v7826_v7 = vld [vmem:[%s9269_s11 + $0x540] ss:$16 sps:$4 sm:$0xff]  }
  0xce   : > { %3632 = vmatprep.subr.bf16.mxu1 %v7753_v8  ;;  %v7829_v8 = vld [vmem:[%s9269_s11 + $0x740] ss:$16 sps:$4 sm:$0xff]  }
  0xcf   : > { %3536 = vmatmul.mubr.bf16.vlgmr.msra.gmra.mxu0 %v9361_v9 }
  0xd0   : > { %3579 = vmatmul.mubr.bf16.vlgmr.msra.gmra.mxu1 %v9363_v10  ;;  %3590 = vmatpush1.bf16.msra.mxu0 %v7748_v11  ;;  %v7834_v11 = vld [vmem:[%s9269_s11 + $0x524] ss:$16 sps:$4 sm:$0xff]  }
  0xd1   : > { %3633 = vmatpush1.bf16.msra.mxu1 %v7751_v12  ;;  %3591 = vmatprep.subr.bf16.mxu0 %v7756_v13  ;;  %v7837_v12 = vld [vmem:[%s9269_s11 + $0x724] ss:$16 sps:$4 sm:$0xff]   ;;  %v7832_v13 = vld [vmem:[%s9269_s11 + $0x520] ss:$16 sps:$4 sm:$0xff]  }
  0xd2   : > { %3634 = vmatprep.subr.bf16.mxu1 %v7759_v14  ;;  %3621 = vmatprep.mubr.bf16.mxu0 %v9408_v42  ;;  %v7835_v14 = vld [vmem:[%s9269_s11 + $0x720] ss:$16 sps:$4 sm:$0xff]  }
  0xd3   : > { %3664 = vmatprep.mubr.bf16.mxu1 %v9413_v44 }
  0xd4   : > { %3592 = vmatpush1.bf16.msra.mxu0 %v7754_v15  ;;  %v7840_v15 = vld [vmem:[%s9269_s11 + $0x504] ss:$16 sps:$4 sm:$0xff]  }
  0xd5   : > { %3635 = vmatpush1.bf16.msra.mxu1 %v7757_v16  ;;  %3593 = vmatprep.subr.bf16.mxu0 %v7762_v17  ;;  %v7843_v16 = vld [vmem:[%s9269_s11 + $0x704] ss:$16 sps:$4 sm:$0xff]   ;;  %v7838_v17 = vld [vmem:[%s9269_s11 + $0x500] ss:$16 sps:$4 sm:$0xff]  }
  0xd6   : > { %3636 = vmatprep.subr.bf16.mxu1 %v7765_v18  ;;  %v7841_v18 = vld [vmem:[%s9269_s11 + $0x700] ss:$16 sps:$4 sm:$0xff]  }
  0xd8   : > { %3594 = vmatpush1.bf16.msra.mxu0 %v7760_v19  ;;  %v7846_v19 = vld [vmem:[%s9269_s11 + $0x8e4] ss:$16 sps:$4 sm:$0xff]  }
  0xd9   : > { %3637 = vmatpush1.bf16.msra.mxu1 %v7763_v20  ;;  %3595 = vmatprep.subr.bf16.mxu0 %v7768_v21  ;;  %v7849_v20 = vld [vmem:[%s9269_s11 + $0xae4] ss:$16 sps:$4 sm:$0xff]   ;;  %v9455_v21 = vcombine.low %v9394_v37, %v9397_v38  ;;  %v7856_v37 = vld [vmem:[%s9269_s11 + $0x8a0] ss:$16 sps:$4 sm:$0xff]  }
  0xda   : > { %3638 = vmatprep.subr.bf16.mxu1 %v7771_v22  ;;  %v9459_v22 = vcombine.low %v9400_v39, %v9403_v40  ;;  %v7859_v38 = vld [vmem:[%s9269_s11 + $0xaa0] ss:$16 sps:$4 sm:$0xff]   ;;  %v7864_v39 = vld [vmem:[%s9269_s11 + $0x884] ss:$16 sps:$4 sm:$0xff]  }
  0xdb   : > { %v7867_v40 = vld [vmem:[%s9269_s11 + $0xa84] ss:$16 sps:$4 sm:$0xff]  }
  0xdc   : > { %3596 = vmatpush1.bf16.msra.mxu0 %v7766_v23  ;;  %v7844_v23 = vld [vmem:[%s9269_s11 + $0x8e0] ss:$16 sps:$4 sm:$0xff]  }
  0xdd   : > { %3639 = vmatpush1.bf16.msra.mxu1 %v7769_v24  ;;  %3597 = vmatprep.subr.bf16.mxu0 %v7774_v25  ;;  %v7847_v24 = vld [vmem:[%s9269_s11 + $0xae0] ss:$16 sps:$4 sm:$0xff]   ;;  %v7852_v25 = vld [vmem:[%s9269_s11 + $0x8c4] ss:$16 sps:$4 sm:$0xff]  }
  0xde   : > { %3640 = vmatprep.subr.bf16.mxu1 %v7777_v26  ;;  %v7855_v26 = vld [vmem:[%s9269_s11 + $0xac4] ss:$16 sps:$4 sm:$0xff]  }
  0xe0   : > { %3598 = vmatpush1.bf16.msra.mxu0 %v7772_v27  ;;  %v7850_v27 = vld [vmem:[%s9269_s11 + $0x8c0] ss:$16 sps:$4 sm:$0xff]  }
  0xe1   : > { %3641 = vmatpush1.bf16.msra.mxu1 %v7775_v28  ;;  %3599 = vmatprep.subr.bf16.mxu0 %v7780_v29  ;;  %v7853_v28 = vld [vmem:[%s9269_s11 + $0xac0] ss:$16 sps:$4 sm:$0xff]  }
  0xe2   : > { %3642 = vmatprep.subr.bf16.mxu1 %v7783_v30  ;;  %v9468_v29 = vld [vmem:[%s9262_s7 + $0x20] sm:$0xff] }
  0xe3   : > { %v9473_v30 = vld [vmem:[%s9262_s7 + $0x60] sm:$0xff] }
  0xe4   : > { %3600 = vmatpush1.bf16.msra.mxu0 %v7778_v31  ;;  %v9476_v31 = vld [vmem:[%s9262_s7 + $0x28] sm:$0xff] }
  0xe5   : > { %3643 = vmatpush1.bf16.msra.mxu1 %v7781_v32  ;;  %3601 = vmatprep.subr.bf16.mxu0 %v7786_v33  ;;  %v9479_v32 = vld [vmem:[%s9262_s7 + $0x68] sm:$0xff]  ;;  %v7858_v33 = vld [vmem:[%s9269_s11 + $0x8a4] ss:$16 sps:$4 sm:$0xff]  }
  0xe6   : > { %3644 = vmatprep.subr.bf16.mxu1 %v7789_v34  ;;  %v9484_v34 = vcombine.high %v9468_v29, %v9473_v30 }
  0xe8   : > { %3602 = vmatpush1.bf16.msra.mxu0 %v7784_v35  ;;  %v7861_v35 = vld [vmem:[%s9269_s11 + $0xaa4] ss:$16 sps:$4 sm:$0xff]  }
  0xe9   : > { %3645 = vmatpush1.bf16.msra.mxu1 %v7787_v36  ;;  %3603 = vmatprep.subr.bf16.mxu0 %v7792_v41  ;;  %v9489_v36 = vcombine.high %v9476_v31, %v9479_v32  ;;  %v7862_v41 = vld [vmem:[%s9269_s11 + $0x880] ss:$16 sps:$4 sm:$0xff]  }
  0xea   : > { %3646 = vmatprep.subr.bf16.mxu1 %v7795_v43  ;;  %v7865_v43 = vld [vmem:[%s9269_s11 + $0xa80] ss:$16 sps:$4 sm:$0xff]  }
  0xec   : > { %3604 = vmatpush1.bf16.msra.mxu0 %v7790_v45  ;;  %v7870_v45 = vld [vmem:[%s9269_s11 + $0x864] ss:$16 sps:$4 sm:$0xff]  }
  0xed   : > { %3647 = vmatpush1.bf16.msra.mxu1 %v7793_v46  ;;  %3605 = vmatprep.subr.bf16.mxu0 %v7798_v47  ;;  %v7873_v46 = vld [vmem:[%s9269_s11 + $0xa64] ss:$16 sps:$4 sm:$0xff]   ;;  %v7868_v47 = vld [vmem:[%s9269_s11 + $0x860] ss:$16 sps:$4 sm:$0xff]  }
  0xee   : > { %3648 = vmatprep.subr.bf16.mxu1 %v7801_v48  ;;  %v7871_v48 = vld [vmem:[%s9269_s11 + $0xa60] ss:$16 sps:$4 sm:$0xff]  }
  0xf0   : > { %3606 = vmatpush2.bf16.msra.mxu0 %v7796_v49  ;;  %v7876_v49 = vld [vmem:[%s9269_s11 + $0x844] ss:$16 sps:$4 sm:$0xff]  }
  0xf1   : > { %3649 = vmatpush2.bf16.msra.mxu1 %v7799_v50  ;;  %3607 = vmatprep.subr.bf16.mxu0 %v7804_v51  ;;  %v7879_v50 = vld [vmem:[%s9269_s11 + $0xa44] ss:$16 sps:$4 sm:$0xff]   ;;  %v7874_v51 = vld [vmem:[%s9269_s11 + $0x840] ss:$16 sps:$4 sm:$0xff]  }
  0xf2   : > { %3650 = vmatprep.subr.bf16.mxu1 %v7807_v52  ;;  %v7877_v52 = vld [vmem:[%s9269_s11 + $0xa40] ss:$16 sps:$4 sm:$0xff]  }
  0xf4   : > { %3608 = vmatpush2.bf16.msra.mxu0 %v7802_v53  ;;  %v7882_v53 = vld [vmem:[%s9269_s11 + $0x824] ss:$16 sps:$4 sm:$0xff]  }
  0xf5   : > { %3651 = vmatpush2.bf16.msra.mxu1 %v7805_v55  ;;  %3609 = vmatprep.subr.bf16.mxu0 %v7810_v57  ;;  %v7885_v55 = vld [vmem:[%s9269_s11 + $0xa24] ss:$16 sps:$4 sm:$0xff]   ;;  %v7880_v57 = vld [vmem:[%s9269_s11 + $0x820] ss:$16 sps:$4 sm:$0xff]  }
  0xf6   : > { %3652 = vmatprep.subr.bf16.mxu1 %v7813_v58  ;;  %v7883_v58 = vld [vmem:[%s9269_s11 + $0xa20] ss:$16 sps:$4 sm:$0xff]  }
  0xf8   : > { %3610 = vmatpush2.bf16.msra.mxu0 %v7808_v59  ;;  %v7888_v59 = vld [vmem:[%s9269_s11 + $0x804] ss:$16 sps:$4 sm:$0xff]  }
  0xf9   : > { %3653 = vmatpush2.bf16.msra.mxu1 %v7811_v60  ;;  %3611 = vmatprep.subr.bf16.mxu0 %v7816_v61  ;;  %v7891_v60 = vld [vmem:[%s9269_s11 + $0xa04] ss:$16 sps:$4 sm:$0xff]   ;;  %v7886_v61 = vld [vmem:[%s9269_s11 + $0x800] ss:$16 sps:$4 sm:$0xff]  }
  0xfa   : > { %3654 = vmatprep.subr.bf16.mxu1 %v7819_v62  ;;  %v7889_v62 = vld [vmem:[%s9269_s11 + $0xa00] ss:$16 sps:$4 sm:$0xff]  }
  0xfc   : > { %3612 = vmatpush2.bf16.msra.mxu0 %v7814_v63  ;;  %v7894_v63 = vld [vmem:[%s9269_s11 + $0x9e4] ss:$16 sps:$4 sm:$0xff]  }
  0xfd   : > { %3655 = vmatpush2.bf16.msra.mxu1 %v7817_v0  ;;  %3613 = vmatprep.subr.bf16.mxu0 %v7822_v1  ;;  %v7897_v0 = vld [vmem:[%s9269_s11 + $0xbe4] ss:$16 sps:$4 sm:$0xff]   ;;  %v7892_v1 = vld [vmem:[%s9269_s11 + $0x9e0] ss:$16 sps:$4 sm:$0xff]  }
  0xfe   : > { %3656 = vmatprep.subr.bf16.mxu1 %v7825_v2  ;;  %v7895_v2 = vld [vmem:[%s9269_s11 + $0xbe0] ss:$16 sps:$4 sm:$0xff]  }
 0x100   : > { %3614 = vmatpush2.bf16.msra.mxu0 %v7820_v3  ;;  %v7900_v3 = vld [vmem:[%s9269_s11 + $0x9c4] ss:$16 sps:$4 sm:$0xff]  }
 0x101   : > { %3657 = vmatpush2.bf16.msra.mxu1 %v7823_v4  ;;  %3615 = vmatprep.subr.bf16.mxu0 %v7828_v5  ;;  %v7903_v4 = vld [vmem:[%s9269_s11 + $0xbc4] ss:$16 sps:$4 sm:$0xff]   ;;  %v7898_v5 = vld [vmem:[%s9269_s11 + $0x9c0] ss:$16 sps:$4 sm:$0xff]  }
 0x102   : > { %3658 = vmatprep.subr.bf16.mxu1 %v7831_v6  ;;  %v7901_v6 = vld [vmem:[%s9269_s11 + $0xbc0] ss:$16 sps:$4 sm:$0xff]  }
 0x104   : > { %3616 = vmatpush2.bf16.msra.mxu0 %v7826_v7  ;;  %v7906_v7 = vld [vmem:[%s9269_s11 + $0x9a4] ss:$16 sps:$4 sm:$0xff]  }
 0x105   : > { %3659 = vmatpush2.bf16.msra.mxu1 %v7829_v8  ;;  %3617 = vmatprep.subr.bf16.mxu0 %v7834_v11  ;;  %v7909_v8 = vld [vmem:[%s9269_s11 + $0xba4] ss:$16 sps:$4 sm:$0xff]   ;;  %v7904_v11 = vld [vmem:[%s9269_s11 + $0x9a0] ss:$16 sps:$4 sm:$0xff]  }
 0x106   : > { %3660 = vmatprep.subr.bf16.mxu1 %v7837_v12  ;;  %v7907_v12 = vld [vmem:[%s9269_s11 + $0xba0] ss:$16 sps:$4 sm:$0xff]  }
 0x108   : > { %3618 = vmatpush2.bf16.msra.mxu0 %v7832_v13  ;;  %v7912_v13 = vld [vmem:[%s9269_s11 + $0x984] ss:$16 sps:$4 sm:$0xff]  }
 0x109   : > { %3661 = vmatpush2.bf16.msra.mxu1 %v7835_v14  ;;  %3619 = vmatprep.subr.bf16.mxu0 %v7840_v15  ;;  %v7915_v14 = vld [vmem:[%s9269_s11 + $0xb84] ss:$16 sps:$4 sm:$0xff]   ;;  %v7910_v15 = vld [vmem:[%s9269_s11 + $0x980] ss:$16 sps:$4 sm:$0xff]  }
 0x10a   : > { %3662 = vmatprep.subr.bf16.mxu1 %v7843_v16  ;;  %v7913_v16 = vld [vmem:[%s9269_s11 + $0xb80] ss:$16 sps:$4 sm:$0xff]  }
 0x10c   : > { %3620 = vmatpush2.bf16.msra.mxu0 %v7838_v17  ;;  %v7918_v17 = vld [vmem:[%s9269_s11 + $0x964] ss:$16 sps:$4 sm:$0xff]  }
 0x10d   : > { %3663 = vmatpush2.bf16.msra.mxu1 %v7841_v18  ;;  %3675 = vmatprep.subr.bf16.mxu0 %v7846_v19  ;;  %v7921_v18 = vld [vmem:[%s9269_s11 + $0xb64] ss:$16 sps:$4 sm:$0xff]   ;;  %v7916_v19 = vld [vmem:[%s9269_s11 + $0x960] ss:$16 sps:$4 sm:$0xff]  }
 0x10e   : > { %3718 = vmatprep.subr.bf16.mxu1 %v7849_v20  ;;  %v7919_v20 = vld [vmem:[%s9269_s11 + $0xb60] ss:$16 sps:$4 sm:$0xff]  }
 0x10f   : > { %3622 = vmatmul.mubr.bf16.vlgmr.msra.gmra.mxu0 %v9455_v21 }
 0x110   : > { %3665 = vmatmul.mubr.bf16.vlgmr.msra.gmra.mxu1 %v9459_v22  ;;  %3676 = vmatpush1.bf16.msra.mxu0 %v7844_v23  ;;  %v7924_v23 = vld [vmem:[%s9269_s11 + $0x944] ss:$16 sps:$4 sm:$0xff]  }
 0x111   : > { %3719 = vmatpush1.bf16.msra.mxu1 %v7847_v24  ;;  %3677 = vmatprep.subr.bf16.mxu0 %v7852_v25  ;;  %v7927_v24 = vld [vmem:[%s9269_s11 + $0xb44] ss:$16 sps:$4 sm:$0xff]   ;;  %v7922_v25 = vld [vmem:[%s9269_s11 + $0x940] ss:$16 sps:$4 sm:$0xff]  }
 0x112   : > { %3720 = vmatprep.subr.bf16.mxu1 %v7855_v26  ;;  %3707 = vmatprep.mubr.bf16.mxu0 %v9484_v34  ;;  %v7925_v26 = vld [vmem:[%s9269_s11 + $0xb40] ss:$16 sps:$4 sm:$0xff]  }
 0x113   : > { %3750 = vmatprep.mubr.bf16.mxu1 %v9489_v36 }
 0x114   : > { %3678 = vmatpush1.bf16.msra.mxu0 %v7850_v27  ;;  %v7930_v27 = vld [vmem:[%s9269_s11 + $0x924] ss:$16 sps:$4 sm:$0xff]  }
 0x115   : > { %3721 = vmatpush1.bf16.msra.mxu1 %v7853_v28  ;;  %3679 = vmatprep.subr.bf16.mxu0 %v7858_v33  ;;  %v7933_v28 = vld [vmem:[%s9269_s11 + $0xb24] ss:$16 sps:$4 sm:$0xff]   ;;  %v7928_v33 = vld [vmem:[%s9269_s11 + $0x920] ss:$16 sps:$4 sm:$0xff]  }
 0x116   : > { %3722 = vmatprep.subr.bf16.mxu1 %v7861_v35  ;;  %v7931_v35 = vld [vmem:[%s9269_s11 + $0xb20] ss:$16 sps:$4 sm:$0xff]  }
 0x118   : > { %3680 = vmatpush1.bf16.msra.mxu0 %v7856_v37  ;;  %v7936_v37 = vld [vmem:[%s9269_s11 + $0x904] ss:$16 sps:$4 sm:$0xff]  }
 0x119   : > { %3723 = vmatpush1.bf16.msra.mxu1 %v7859_v38  ;;  %3681 = vmatprep.subr.bf16.mxu0 %v7864_v39  ;;  %v7939_v38 = vld [vmem:[%s9269_s11 + $0xb04] ss:$16 sps:$4 sm:$0xff]   ;;  %v7934_v39 = vld [vmem:[%s9269_s11 + $0x900] ss:$16 sps:$4 sm:$0xff]  }
 0x11a   : > { %3724 = vmatprep.subr.bf16.mxu1 %v7867_v40  ;;  %v7937_v40 = vld [vmem:[%s9269_s11 + $0xb00] ss:$16 sps:$4 sm:$0xff]  }
 0x11c   : > { %3682 = vmatpush1.bf16.msra.mxu0 %v7862_v41  ;;  %v7942_v41 = vld [vmem:[%s9269_s11 + $0xce4] ss:$16 sps:$4 sm:$0xff]  }
 0x11d   : > { %3725 = vmatpush1.bf16.msra.mxu1 %v7865_v43  ;;  %3683 = vmatprep.subr.bf16.mxu0 %v7870_v45  ;;  %v7945_v43 = vld [vmem:[%s9269_s11 + $0xee4] ss:$16 sps:$4 sm:$0xff]   ;;  %v7940_v45 = vld [vmem:[%s9269_s11 + $0xce0] ss:$16 sps:$4 sm:$0xff]  }
 0x11e   : > { %3726 = vmatprep.subr.bf16.mxu1 %v7873_v46  ;;  %v7943_v46 = vld [vmem:[%s9269_s11 + $0xee0] ss:$16 sps:$4 sm:$0xff]  }
 0x120   : > { %3684 = vmatpush1.bf16.msra.mxu0 %v7868_v47  ;;  %v9552_v47 = vld [vmem:[%s9262_s7 + $0x30] sm:$0xff] }
 0x121   : > { %3727 = vmatpush1.bf16.msra.mxu1 %v7871_v48  ;;  %3685 = vmatprep.subr.bf16.mxu0 %v7876_v49  ;;  %v9555_v48 = vld [vmem:[%s9262_s7 + $0x70] sm:$0xff]  ;;  %v9559_v49 = vcombine.low %v9468_v29, %v9473_v30 }
 0x122   : > { %3728 = vmatprep.subr.bf16.mxu1 %v7879_v50  ;;  %v9563_v50 = vcombine.low %v9476_v31, %v9479_v32  ;;  %v9575_v29 = vcombine.high %v9552_v47, %v9555_v48  ;;  %v7946_v31 = vld [vmem:[%s9269_s11 + $0xcc0] ss:$16 sps:$4 sm:$0xff]  }
 0x123   : > { %v7949_v32 = vld [vmem:[%s9269_s11 + $0xec0] ss:$16 sps:$4 sm:$0xff]  }
 0x124   : > { %3686 = vmatpush1.bf16.msra.mxu0 %v7874_v51  ;;  %v9566_v51 = vld [vmem:[%s9262_s7 + $0x38] sm:$0xff] }
 0x125   : > { %3729 = vmatpush1.bf16.msra.mxu1 %v7877_v52  ;;  %3687 = vmatprep.subr.bf16.mxu0 %v7882_v53  ;;  %v9569_v52 = vld [vmem:[%s9262_s7 + $0x78] sm:$0xff]  ;;  %v7948_v53 = vld [vmem:[%s9269_s11 + $0xcc4] ss:$16 sps:$4 sm:$0xff]  }
 0x126   : > { %3730 = vmatprep.subr.bf16.mxu1 %v7885_v55  ;;  %v7951_v55 = vld [vmem:[%s9269_s11 + $0xec4] ss:$16 sps:$4 sm:$0xff]   ;;  %v9579_v30 = vcombine.high %v9566_v51, %v9569_v52 }
 0x128   : > { %3688 = vmatpush1.bf16.msra.mxu0 %v7880_v57  ;;  %v7954_v57 = vld [vmem:[%s9269_s11 + $0xca4] ss:$16 sps:$4 sm:$0xff]  }
 0x129   : > { %3731 = vmatpush1.bf16.msra.mxu1 %v7883_v58  ;;  %3689 = vmatprep.subr.bf16.mxu0 %v7888_v59  ;;  %v7957_v58 = vld [vmem:[%s9269_s11 + $0xea4] ss:$16 sps:$4 sm:$0xff]   ;;  %v7952_v59 = vld [vmem:[%s9269_s11 + $0xca0] ss:$16 sps:$4 sm:$0xff]  }
 0x12a   : > { %3732 = vmatprep.subr.bf16.mxu1 %v7891_v60  ;;  %v7955_v60 = vld [vmem:[%s9269_s11 + $0xea0] ss:$16 sps:$4 sm:$0xff]  }
 0x12c   : > { %3690 = vmatpush1.bf16.msra.mxu0 %v7886_v61  ;;  %v7960_v61 = vld [vmem:[%s9269_s11 + $0xc84] ss:$16 sps:$4 sm:$0xff]  }
 0x12d   : > { %3733 = vmatpush1.bf16.msra.mxu1 %v7889_v62  ;;  %3691 = vmatprep.subr.bf16.mxu0 %v7894_v63  ;;  %v7963_v62 = vld [vmem:[%s9269_s11 + $0xe84] ss:$16 sps:$4 sm:$0xff]   ;;  %v7958_v63 = vld [vmem:[%s9269_s11 + $0xc80] ss:$16 sps:$4 sm:$0xff]  }
 0x12e   : > { %3734 = vmatprep.subr.bf16.mxu1 %v7897_v0  ;;  %v7961_v0 = vld [vmem:[%s9269_s11 + $0xe80] ss:$16 sps:$4 sm:$0xff]  }
 0x130   : > { %3692 = vmatpush2.bf16.msra.mxu0 %v7892_v1  ;;  %v7966_v1 = vld [vmem:[%s9269_s11 + $0xc64] ss:$16 sps:$4 sm:$0xff]  }
 0x131   : > { %3735 = vmatpush2.bf16.msra.mxu1 %v7895_v2  ;;  %3693 = vmatprep.subr.bf16.mxu0 %v7900_v3  ;;  %v7969_v2 = vld [vmem:[%s9269_s11 + $0xe64] ss:$16 sps:$4 sm:$0xff]   ;;  %v7964_v3 = vld [vmem:[%s9269_s11 + $0xc60] ss:$16 sps:$4 sm:$0xff]  }
 0x132   : > { %3736 = vmatprep.subr.bf16.mxu1 %v7903_v4  ;;  %v7967_v4 = vld [vmem:[%s9269_s11 + $0xe60] ss:$16 sps:$4 sm:$0xff]  }
 0x134   : > { %3694 = vmatpush2.bf16.msra.mxu0 %v7898_v5  ;;  %v7972_v5 = vld [vmem:[%s9269_s11 + $0xc44] ss:$16 sps:$4 sm:$0xff]  }
 0x135   : > { %3737 = vmatpush2.bf16.msra.mxu1 %v7901_v6  ;;  %3695 = vmatprep.subr.bf16.mxu0 %v7906_v7  ;;  %v7975_v6 = vld [vmem:[%s9269_s11 + $0xe44] ss:$16 sps:$4 sm:$0xff]   ;;  %v7970_v7 = vld [vmem:[%s9269_s11 + $0xc40] ss:$16 sps:$4 sm:$0xff]  }
 0x136   : > { %3738 = vmatprep.subr.bf16.mxu1 %v7909_v8  ;;  %v7973_v8 = vld [vmem:[%s9269_s11 + $0xe40] ss:$16 sps:$4 sm:$0xff]  }
 0x138   : > { %3696 = vmatpush2.bf16.msra.mxu0 %v7904_v11  ;;  %v7978_v11 = vld [vmem:[%s9269_s11 + $0xc24] ss:$16 sps:$4 sm:$0xff]  }
 0x139   : > { %3739 = vmatpush2.bf16.msra.mxu1 %v7907_v12  ;;  %3697 = vmatprep.subr.bf16.mxu0 %v7912_v13  ;;  %v7981_v12 = vld [vmem:[%s9269_s11 + $0xe24] ss:$16 sps:$4 sm:$0xff]   ;;  %v7976_v13 = vld [vmem:[%s9269_s11 + $0xc20] ss:$16 sps:$4 sm:$0xff]  }
 0x13a   : > { %3740 = vmatprep.subr.bf16.mxu1 %v7915_v14  ;;  %v7979_v14 = vld [vmem:[%s9269_s11 + $0xe20] ss:$16 sps:$4 sm:$0xff]  }
 0x13c   : > { %3698 = vmatpush2.bf16.msra.mxu0 %v7910_v15  ;;  %v7984_v15 = vld [vmem:[%s9269_s11 + $0xc04] ss:$16 sps:$4 sm:$0xff]  }
 0x13d   : > { %3741 = vmatpush2.bf16.msra.mxu1 %v7913_v16  ;;  %3699 = vmatprep.subr.bf16.mxu0 %v7918_v17  ;;  %v7987_v16 = vld [vmem:[%s9269_s11 + $0xe04] ss:$16 sps:$4 sm:$0xff]   ;;  %v7982_v17 = vld [vmem:[%s9269_s11 + $0xc00] ss:$16 sps:$4 sm:$0xff]  }
 0x13e   : > { %3742 = vmatprep.subr.bf16.mxu1 %v7921_v18  ;;  %v7985_v18 = vld [vmem:[%s9269_s11 + $0xe00] ss:$16 sps:$4 sm:$0xff]  }
 0x140   : > { %3700 = vmatpush2.bf16.msra.mxu0 %v7916_v19  ;;  %v7990_v19 = vld [vmem:[%s9269_s11 + $0xde4] ss:$16 sps:$4 sm:$0xff]  }
 0x141   : > { %3743 = vmatpush2.bf16.msra.mxu1 %v7919_v20  ;;  %3701 = vmatprep.subr.bf16.mxu0 %v7924_v23  ;;  %v7993_v20 = vld [vmem:[%s9269_s11 + $0xfe4] ss:$16 sps:$4 sm:$0xff]   ;;  %v7988_v23 = vld [vmem:[%s9269_s11 + $0xde0] ss:$16 sps:$4 sm:$0xff]  }
 0x142   : > { %3744 = vmatprep.subr.bf16.mxu1 %v7927_v24  ;;  %v7991_v24 = vld [vmem:[%s9269_s11 + $0xfe0] ss:$16 sps:$4 sm:$0xff]  }
 0x144   : > { %3702 = vmatpush2.bf16.msra.mxu0 %v7922_v25  ;;  %v7996_v25 = vld [vmem:[%s9269_s11 + $0xdc4] ss:$16 sps:$4 sm:$0xff]  }
 0x145   : > { %3745 = vmatpush2.bf16.msra.mxu1 %v7925_v26  ;;  %3703 = vmatprep.subr.bf16.mxu0 %v7930_v27  ;;  %v7999_v26 = vld [vmem:[%s9269_s11 + $0xfc4] ss:$16 sps:$4 sm:$0xff]   ;;  %v7994_v27 = vld [vmem:[%s9269_s11 + $0xdc0] ss:$16 sps:$4 sm:$0xff]  }
 0x146   : > { %3746 = vmatprep.subr.bf16.mxu1 %v7933_v28  ;;  %v7997_v28 = vld [vmem:[%s9269_s11 + $0xfc0] ss:$16 sps:$4 sm:$0xff]  }
 0x148   : > { %3704 = vmatpush2.bf16.msra.mxu0 %v7928_v33  ;;  %v8002_v33 = vld [vmem:[%s9269_s11 + $0xda4] ss:$16 sps:$4 sm:$0xff]  }
 0x149   : > { %3747 = vmatpush2.bf16.msra.mxu1 %v7931_v35  ;;  %3705 = vmatprep.subr.bf16.mxu0 %v7936_v37  ;;  %v8005_v35 = vld [vmem:[%s9269_s11 + $0xfa4] ss:$16 sps:$4 sm:$0xff]   ;;  %v8000_v37 = vld [vmem:[%s9269_s11 + $0xda0] ss:$16 sps:$4 sm:$0xff]  }
 0x14a   : > { %3748 = vmatprep.subr.bf16.mxu1 %v7939_v38  ;;  %v8003_v38 = vld [vmem:[%s9269_s11 + $0xfa0] ss:$16 sps:$4 sm:$0xff]  }
 0x14c   : > { %3706 = vmatpush2.bf16.msra.mxu0 %v7934_v39  ;;  %v8008_v39 = vld [vmem:[%s9269_s11 + $0xd84] ss:$16 sps:$4 sm:$0xff]  }
 0x14d   : > { %3749 = vmatpush2.bf16.msra.mxu1 %v7937_v40  ;;  %3761 = vmatprep.subr.bf16.mxu0 %v7942_v41  ;;  %v8011_v40 = vld [vmem:[%s9269_s11 + $0xf84] ss:$16 sps:$4 sm:$0xff]   ;;  %v8006_v41 = vld [vmem:[%s9269_s11 + $0xd80] ss:$16 sps:$4 sm:$0xff]  }
 0x14e   : > { %3804 = vmatprep.subr.bf16.mxu1 %v7945_v43  ;;  %v8009_v43 = vld [vmem:[%s9269_s11 + $0xf80] ss:$16 sps:$4 sm:$0xff]  }
 0x14f   : > { %3708 = vmatmul.mubr.bf16.vlgmr.msra.gmra.mxu0 %v9559_v49 }
 0x150   : > { %3751 = vmatmul.mubr.bf16.vlgmr.msra.gmra.mxu1 %v9563_v50  ;;  %3762 = vmatpush1.bf16.msra.mxu0 %v7940_v45  ;;  %v8014_v45 = vld [vmem:[%s9269_s11 + $0xd64] ss:$16 sps:$4 sm:$0xff]  }
 0x151   : > { %3805 = vmatpush1.bf16.msra.mxu1 %v7943_v46  ;;  %3763 = vmatprep.subr.bf16.mxu0 %v7948_v53  ;;  %v8017_v46 = vld [vmem:[%s9269_s11 + $0xf64] ss:$16 sps:$4 sm:$0xff]   ;;  %v8012_v53 = vld [vmem:[%s9269_s11 + $0xd60] ss:$16 sps:$4 sm:$0xff]  }
 0x152   : > { %3806 = vmatprep.subr.bf16.mxu1 %v7951_v55  ;;  %3793 = vmatprep.mubr.bf16.mxu0 %v9575_v29  ;;  %v8015_v55 = vld [vmem:[%s9269_s11 + $0xf60] ss:$16 sps:$4 sm:$0xff]  }
 0x153   : > { %3836 = vmatprep.mubr.bf16.mxu1 %v9579_v30 }
 0x154   : > { %3764 = vmatpush1.bf16.msra.mxu0 %v7946_v31  ;;  %v8020_v31 = vld [vmem:[%s9269_s11 + $0xd44] ss:$16 sps:$4 sm:$0xff]  }
 0x155   : > { %3807 = vmatpush1.bf16.msra.mxu1 %v7949_v32  ;;  %3765 = vmatprep.subr.bf16.mxu0 %v7954_v57  ;;  %v8023_v32 = vld [vmem:[%s9269_s11 + $0xf44] ss:$16 sps:$4 sm:$0xff]   ;;  %v8018_v57 = vld [vmem:[%s9269_s11 + $0xd40] ss:$16 sps:$4 sm:$0xff]  }
 0x156   : > { %3808 = vmatprep.subr.bf16.mxu1 %v7957_v58  ;;  %v8021_v58 = vld [vmem:[%s9269_s11 + $0xf40] ss:$16 sps:$4 sm:$0xff]  }
 0x158   : > { %3766 = vmatpush1.bf16.msra.mxu0 %v7952_v59  ;;  %v8026_v59 = vld [vmem:[%s9269_s11 + $0xd24] ss:$16 sps:$4 sm:$0xff]  }
 0x159   : > { %3809 = vmatpush1.bf16.msra.mxu1 %v7955_v60  ;;  %3767 = vmatprep.subr.bf16.mxu0 %v7960_v61  ;;  %v8029_v60 = vld [vmem:[%s9269_s11 + $0xf24] ss:$16 sps:$4 sm:$0xff]   ;;  %v8024_v61 = vld [vmem:[%s9269_s11 + $0xd20] ss:$16 sps:$4 sm:$0xff]  }
 0x15a   : > { %3810 = vmatprep.subr.bf16.mxu1 %v7963_v62  ;;  %v8027_v62 = vld [vmem:[%s9269_s11 + $0xf20] ss:$16 sps:$4 sm:$0xff]  }
 0x15c   : > { %3768 = vmatpush1.bf16.msra.mxu0 %v7958_v63  ;;  %v8032_v63 = vld [vmem:[%s9269_s11 + $0xd04] ss:$16 sps:$4 sm:$0xff]  }
 0x15d   : > { %3811 = vmatpush1.bf16.msra.mxu1 %v7961_v0  ;;  %3769 = vmatprep.subr.bf16.mxu0 %v7966_v1  ;;  %v8035_v0 = vld [vmem:[%s9269_s11 + $0xf04] ss:$16 sps:$4 sm:$0xff]   ;;  %v8030_v1 = vld [vmem:[%s9269_s11 + $0xd00] ss:$16 sps:$4 sm:$0xff]  }
 0x15e   : > { %3812 = vmatprep.subr.bf16.mxu1 %v7969_v2  ;;  %v8033_v2 = vld [vmem:[%s9269_s11 + $0xf00] ss:$16 sps:$4 sm:$0xff]  }
 0x160   : > { %3770 = vmatpush1.bf16.msra.mxu0 %v7964_v3  ;;  %v8038_v3 = vld [vmem:[%s9269_s11 + $0xec] ss:$16 sps:$4 sm:$0xff]  }
 0x161   : > { %3813 = vmatpush1.bf16.msra.mxu1 %v7967_v4  ;;  %3771 = vmatprep.subr.bf16.mxu0 %v7972_v5  ;;  %v8041_v4 = vld [vmem:[%s9269_s11 + $0x2ec] ss:$16 sps:$4 sm:$0xff]   ;;  %v9647_v5 = vcombine.low %v9552_v47, %v9555_v48  ;;  %v8042_v47 = vld [vmem:[%s9269_s11 + $0xc8] ss:$16 sps:$4 sm:$0xff]  }
 0x162   : > { %3814 = vmatprep.subr.bf16.mxu1 %v7975_v6  ;;  %v9651_v6 = vcombine.low %v9566_v51, %v9569_v52  ;;  %v8045_v48 = vld [vmem:[%s9269_s11 + $0x2c8] ss:$16 sps:$4 sm:$0xff]   ;;  %v8050_v51 = vld [vmem:[%s9269_s11 + $0xac] ss:$16 sps:$4 sm:$0xff]  }
 0x163   : > { %v8053_v52 = vld [vmem:[%s9269_s11 + $0x2ac] ss:$16 sps:$4 sm:$0xff]  }
 0x164   : > { %3772 = vmatpush1.bf16.msra.mxu0 %v7970_v7  ;;  %v8036_v7 = vld [vmem:[%s9269_s11 + $0xe8] ss:$16 sps:$4 sm:$0xff]  }
 0x165   : > { %3815 = vmatpush1.bf16.msra.mxu1 %v7973_v8  ;;  %3773 = vmatprep.subr.bf16.mxu0 %v7978_v11  ;;  %v8039_v8 = vld [vmem:[%s9269_s11 + $0x2e8] ss:$16 sps:$4 sm:$0xff]   ;;  %v8044_v11 = vld [vmem:[%s9269_s11 + $0xcc] ss:$16 sps:$4 sm:$0xff]  }
 0x166   : > { %3816 = vmatprep.subr.bf16.mxu1 %v7981_v12  ;;  %v8047_v12 = vld [vmem:[%s9269_s11 + $0x2cc] ss:$16 sps:$4 sm:$0xff]  }
 0x168   : > { %3774 = vmatpush1.bf16.msra.mxu0 %v7976_v13  ;;  %v8048_v13 = vld [vmem:[%s9269_s11 + $0xa8] ss:$16 sps:$4 sm:$0xff]  }
 0x169   : > { %3817 = vmatpush1.bf16.msra.mxu1 %v7979_v14  ;;  %3775 = vmatprep.subr.bf16.mxu0 %v7984_v15  ;;  %v8051_v14 = vld [vmem:[%s9269_s11 + $0x2a8] ss:$16 sps:$4 sm:$0xff]   ;;  %v8056_v15 = vld [vmem:[%s9269_s11 + $0x8c] ss:$16 sps:$4 sm:$0xff]  }
 0x16a   : > { %3818 = vmatprep.subr.bf16.mxu1 %v7987_v16  ;;  %v8059_v16 = vld [vmem:[%s9269_s11 + $0x28c] ss:$16 sps:$4 sm:$0xff]  }
 0x16c   : > { %3776 = vmatpush1.bf16.msra.mxu0 %v7982_v17  ;;  %v8054_v17 = vld [vmem:[%s9269_s11 + $0x88] ss:$16 sps:$4 sm:$0xff]  }
 0x16d   : > { %3819 = vmatpush1.bf16.msra.mxu1 %v7985_v18  ;;  %3777 = vmatprep.subr.bf16.mxu0 %v7990_v19  ;;  %v8057_v18 = vld [vmem:[%s9269_s11 + $0x288] ss:$16 sps:$4 sm:$0xff]  }
 0x16e   : > { %3820 = vmatprep.subr.bf16.mxu1 %v7993_v20  ;;  %v8060_v19 = vld [vmem:[%s9269_s11 + $0x68] ss:$16 sps:$4 sm:$0xff]  }
 0x16f   : > { %v8063_v20 = vld [vmem:[%s9269_s11 + $0x268] ss:$16 sps:$4 sm:$0xff]  }
 0x170   : > { %3778 = vmatpush2.bf16.msra.mxu0 %v7988_v23  ;;  %v8068_v23 = vld [vmem:[%s9269_s11 + $0x4c] ss:$16 sps:$4 sm:$0xff]  }
 0x171   : > { %3821 = vmatpush2.bf16.msra.mxu1 %v7991_v24  ;;  %3779 = vmatprep.subr.bf16.mxu0 %v7996_v25  ;;  %v8071_v24 = vld [vmem:[%s9269_s11 + $0x24c] ss:$16 sps:$4 sm:$0xff]   ;;  %v8066_v25 = vld [vmem:[%s9269_s11 + $0x48] ss:$16 sps:$4 sm:$0xff]  }
 0x172   : > { %3822 = vmatprep.subr.bf16.mxu1 %v7999_v26  ;;  %v8069_v26 = vld [vmem:[%s9269_s11 + $0x248] ss:$16 sps:$4 sm:$0xff]  }
 0x174   : > { %3780 = vmatpush2.bf16.msra.mxu0 %v7994_v27  ;;  %v8074_v27 = vld [vmem:[%s9269_s11 + $0x2c] ss:$16 sps:$4 sm:$0xff]  }
 0x175   : > { %3823 = vmatpush2.bf16.msra.mxu1 %v7997_v28  ;;  %3781 = vmatprep.subr.bf16.mxu0 %v8002_v33  ;;  %v8077_v28 = vld [vmem:[%s9269_s11 + $0x22c] ss:$16 sps:$4 sm:$0xff]   ;;  %v8072_v33 = vld [vmem:[%s9269_s11 + $0x28] ss:$16 sps:$4 sm:$0xff]  }
 0x176   : > { %3824 = vmatprep.subr.bf16.mxu1 %v8005_v35  ;;  %v8075_v35 = vld [vmem:[%s9269_s11 + $0x228] ss:$16 sps:$4 sm:$0xff]  }
 0x178   : > { %3782 = vmatpush2.bf16.msra.mxu0 %v8000_v37  ;;  %v8080_v37 = vld [vmem:[%s9269_s11 + $0xc] ss:$16 sps:$4 sm:$0xff]  }
 0x179   : > { %3825 = vmatpush2.bf16.msra.mxu1 %v8003_v38  ;;  %3783 = vmatprep.subr.bf16.mxu0 %v8008_v39  ;;  %v8083_v38 = vld [vmem:[%s9269_s11 + $0x20c] ss:$16 sps:$4 sm:$0xff]   ;;  %v8078_v39 = vld [vmem:[%s9269_s11 + $0x8] ss:$16 sps:$4 sm:$0xff]  }
 0x17a   : > { %3826 = vmatprep.subr.bf16.mxu1 %v8011_v40  ;;  %v8081_v40 = vld [vmem:[%s9269_s11 + $0x208] ss:$16 sps:$4 sm:$0xff]  }
 0x17c   : > { %3784 = vmatpush2.bf16.msra.mxu0 %v8006_v41  ;;  %v8086_v41 = vld [vmem:[%s9269_s11 + $0x1ec] ss:$16 sps:$4 sm:$0xff]  }
 0x17d   : > { %3827 = vmatpush2.bf16.msra.mxu1 %v8009_v43  ;;  %3785 = vmatprep.subr.bf16.mxu0 %v8014_v45  ;;  %v8089_v43 = vld [vmem:[%s9269_s11 + $0x3ec] ss:$16 sps:$4 sm:$0xff]   ;;  %v8084_v45 = vld [vmem:[%s9269_s11 + $0x1e8] ss:$16 sps:$4 sm:$0xff]  }
 0x17e   : > { %3828 = vmatprep.subr.bf16.mxu1 %v8017_v46  ;;  %v8087_v46 = vld [vmem:[%s9269_s11 + $0x3e8] ss:$16 sps:$4 sm:$0xff]  }
 0x180   : > { %3786 = vmatpush2.bf16.msra.mxu0 %v8012_v53  ;;  %v8092_v53 = vld [vmem:[%s9269_s11 + $0x1cc] ss:$16 sps:$4 sm:$0xff]  }
 0x181   : > { %3829 = vmatpush2.bf16.msra.mxu1 %v8015_v55  ;;  %3787 = vmatprep.subr.bf16.mxu0 %v8020_v31  ;;  %v8095_v55 = vld [vmem:[%s9269_s11 + $0x3cc] ss:$16 sps:$4 sm:$0xff]   ;;  %v8090_v31 = vld [vmem:[%s9269_s11 + $0x1c8] ss:$16 sps:$4 sm:$0xff]  }
 0x182   : > { %3830 = vmatprep.subr.bf16.mxu1 %v8023_v32  ;;  %v8093_v32 = vld [vmem:[%s9269_s11 + $0x3c8] ss:$16 sps:$4 sm:$0xff]  }
 0x184   : > { %3788 = vmatpush2.bf16.msra.mxu0 %v8018_v57  ;;  %v8098_v57 = vld [vmem:[%s9269_s11 + $0x1ac] ss:$16 sps:$4 sm:$0xff]  }
 0x185   : > { %3831 = vmatpush2.bf16.msra.mxu1 %v8021_v58  ;;  %3789 = vmatprep.subr.bf16.mxu0 %v8026_v59  ;;  %v8101_v58 = vld [vmem:[%s9269_s11 + $0x3ac] ss:$16 sps:$4 sm:$0xff]   ;;  %v8096_v59 = vld [vmem:[%s9269_s11 + $0x1a8] ss:$16 sps:$4 sm:$0xff]  }
 0x186   : > { %3832 = vmatprep.subr.bf16.mxu1 %v8029_v60  ;;  %v8099_v60 = vld [vmem:[%s9269_s11 + $0x3a8] ss:$16 sps:$4 sm:$0xff]  }
 0x188   : > { %3790 = vmatpush2.bf16.msra.mxu0 %v8024_v61  ;;  %v8104_v61 = vld [vmem:[%s9269_s11 + $0x18c] ss:$16 sps:$4 sm:$0xff]  }
 0x189   : > { %3833 = vmatpush2.bf16.msra.mxu1 %v8027_v62  ;;  %3791 = vmatprep.subr.bf16.mxu0 %v8032_v63  ;;  %v8107_v62 = vld [vmem:[%s9269_s11 + $0x38c] ss:$16 sps:$4 sm:$0xff]   ;;  %v8102_v63 = vld [vmem:[%s9269_s11 + $0x188] ss:$16 sps:$4 sm:$0xff]  }
 0x18a   : > { %3834 = vmatprep.subr.bf16.mxu1 %v8035_v0  ;;  %v8105_v0 = vld [vmem:[%s9269_s11 + $0x388] ss:$16 sps:$4 sm:$0xff]  }
 0x18c   : > { %3792 = vmatpush2.bf16.msra.mxu0 %v8030_v1  ;;  %v8110_v1 = vld [vmem:[%s9269_s11 + $0x16c] ss:$16 sps:$4 sm:$0xff]  }
 0x18d   : > { %3835 = vmatpush2.bf16.msra.mxu1 %v8033_v2  ;;  %3847 = vmatprep.subr.bf16.mxu0 %v8038_v3  ;;  %v8113_v2 = vld [vmem:[%s9269_s11 + $0x36c] ss:$16 sps:$4 sm:$0xff]   ;;  %v8108_v3 = vld [vmem:[%s9269_s11 + $0x168] ss:$16 sps:$4 sm:$0xff]  }
 0x18e   : > { %3890 = vmatprep.subr.bf16.mxu1 %v8041_v4  ;;  %v8111_v4 = vld [vmem:[%s9269_s11 + $0x368] ss:$16 sps:$4 sm:$0xff]  }
 0x18f   : > { %3794 = vmatmul.mubr.bf16.vlgmr.msra.gmra.mxu0 %v9647_v5 }
 0x190   : > { %3837 = vmatmul.mubr.bf16.vlgmr.msra.gmra.mxu1 %v9651_v6  ;;  %3848 = vmatpush1.bf16.msra.mxu0 %v8036_v7  ;;  %v8116_v7 = vld [vmem:[%s9269_s11 + $0x14c] ss:$16 sps:$4 sm:$0xff]  }
 0x191   : > { %3891 = vmatpush1.bf16.msra.mxu1 %v8039_v8  ;;  %3849 = vmatprep.subr.bf16.mxu0 %v8044_v11  ;;  %v8119_v8 = vld [vmem:[%s9269_s11 + $0x34c] ss:$16 sps:$4 sm:$0xff]   ;;  %v8114_v11 = vld [vmem:[%s9269_s11 + $0x148] ss:$16 sps:$4 sm:$0xff]  }
 0x192   : > { %3892 = vmatprep.subr.bf16.mxu1 %v8047_v12  ;;  %3879 = vmatprep.mubr.bf16.mxu0 %v9338_v54  ;;  %v8062_v54 = vld [vmem:[%s9269_s11 + $0x6c] ss:$16 sps:$4 sm:$0xff]   ;;  %v8117_v12 = vld [vmem:[%s9269_s11 + $0x348] ss:$16 sps:$4 sm:$0xff]  }
 0x193   : > { %3922 = vmatprep.mubr.bf16.mxu1 %v9341_v56  ;;  %v8065_v56 = vld [vmem:[%s9269_s11 + $0x26c] ss:$16 sps:$4 sm:$0xff]  }
 0x194   : > { %3850 = vmatpush1.bf16.msra.mxu0 %v8042_v47  ;;  %v8122_v47 = vld [vmem:[%s9269_s11 + $0x12c] ss:$16 sps:$4 sm:$0xff]  }
 0x195   : > { %3893 = vmatpush1.bf16.msra.mxu1 %v8045_v48  ;;  %3851 = vmatprep.subr.bf16.mxu0 %v8050_v51  ;;  %v8125_v48 = vld [vmem:[%s9269_s11 + $0x32c] ss:$16 sps:$4 sm:$0xff]   ;;  %v8120_v51 = vld [vmem:[%s9269_s11 + $0x128] ss:$16 sps:$4 sm:$0xff]  }
 0x196   : > { %3894 = vmatprep.subr.bf16.mxu1 %v8053_v52  ;;  %v8123_v52 = vld [vmem:[%s9269_s11 + $0x328] ss:$16 sps:$4 sm:$0xff]  }
 0x198   : > { %3852 = vmatpush1.bf16.msra.mxu0 %v8048_v13  ;;  %v8128_v13 = vld [vmem:[%s9269_s11 + $0x10c] ss:$16 sps:$4 sm:$0xff]  }
 0x199   : > { %3895 = vmatpush1.bf16.msra.mxu1 %v8051_v14  ;;  %3853 = vmatprep.subr.bf16.mxu0 %v8056_v15  ;;  %v8131_v14 = vld [vmem:[%s9269_s11 + $0x30c] ss:$16 sps:$4 sm:$0xff]   ;;  %v8126_v15 = vld [vmem:[%s9269_s11 + $0x108] ss:$16 sps:$4 sm:$0xff]  }
 0x19a   : > { %3896 = vmatprep.subr.bf16.mxu1 %v8059_v16  ;;  %v8129_v16 = vld [vmem:[%s9269_s11 + $0x308] ss:$16 sps:$4 sm:$0xff]  }
 0x19c   : > { %3854 = vmatpush1.bf16.msra.mxu0 %v8054_v17  ;;  %v8134_v17 = vld [vmem:[%s9269_s11 + $0x4ec] ss:$16 sps:$4 sm:$0xff]  }
 0x19d   : > { %3897 = vmatpush1.bf16.msra.mxu1 %v8057_v18  ;;  %3855 = vmatprep.subr.bf16.mxu0 %v8062_v54  ;;  %v8137_v18 = vld [vmem:[%s9269_s11 + $0x6ec] ss:$16 sps:$4 sm:$0xff]   ;;  %v8132_v54 = vld [vmem:[%s9269_s11 + $0x4e8] ss:$16 sps:$4 sm:$0xff]  }
 0x19e   : > { %3898 = vmatprep.subr.bf16.mxu1 %v8065_v56  ;;  %v8135_v56 = vld [vmem:[%s9269_s11 + $0x6e8] ss:$16 sps:$4 sm:$0xff]  }
 0x1a0   : > { %3856 = vmatpush1.bf16.msra.mxu0 %v8060_v19  ;;  %v8140_v19 = vld [vmem:[%s9269_s11 + $0x4cc] ss:$16 sps:$4 sm:$0xff]  }
 0x1a1   : > { %3899 = vmatpush1.bf16.msra.mxu1 %v8063_v20  ;;  %3857 = vmatprep.subr.bf16.mxu0 %v8068_v23  ;;  %v8143_v20 = vld [vmem:[%s9269_s11 + $0x6cc] ss:$16 sps:$4 sm:$0xff]   ;;  %v8138_v23 = vld [vmem:[%s9269_s11 + $0x4c8] ss:$16 sps:$4 sm:$0xff]  }
 0x1a2   : > { %3900 = vmatprep.subr.bf16.mxu1 %v8071_v24  ;;  %v8141_v24 = vld [vmem:[%s9269_s11 + $0x6c8] ss:$16 sps:$4 sm:$0xff]  }
 0x1a4   : > { %3858 = vmatpush1.bf16.msra.mxu0 %v8066_v25  ;;  %v8146_v25 = vld [vmem:[%s9269_s11 + $0x4ac] ss:$16 sps:$4 sm:$0xff]  }
 0x1a5   : > { %3901 = vmatpush1.bf16.msra.mxu1 %v8069_v26  ;;  %3859 = vmatprep.subr.bf16.mxu0 %v8074_v27  ;;  %v8149_v26 = vld [vmem:[%s9269_s11 + $0x6ac] ss:$16 sps:$4 sm:$0xff]  }
 0x1a6   : > { %3902 = vmatprep.subr.bf16.mxu1 %v8077_v28  ;;  %v8152_v27 = vld [vmem:[%s9269_s11 + $0x48c] ss:$16 sps:$4 sm:$0xff]  }
 0x1a7   : > { %v8155_v28 = vld [vmem:[%s9269_s11 + $0x68c] ss:$16 sps:$4 sm:$0xff]  }
 0x1a8   : > { %3860 = vmatpush1.bf16.msra.mxu0 %v8072_v33  ;;  %v8150_v33 = vld [vmem:[%s9269_s11 + $0x488] ss:$16 sps:$4 sm:$0xff]  }
 0x1a9   : > { %3903 = vmatpush1.bf16.msra.mxu1 %v8075_v35  ;;  %3861 = vmatprep.subr.bf16.mxu0 %v8080_v37  ;;  %v8161_v35 = vld [vmem:[%s9269_s11 + $0x66c] ss:$16 sps:$4 sm:$0xff]   ;;  %v8156_v37 = vld [vmem:[%s9269_s11 + $0x468] ss:$16 sps:$4 sm:$0xff]  }
 0x1aa   : > { %3904 = vmatprep.subr.bf16.mxu1 %v8083_v38  ;;  %v8159_v38 = vld [vmem:[%s9269_s11 + $0x668] ss:$16 sps:$4 sm:$0xff]  }
 0x1ac   : > { %3862 = vmatpush1.bf16.msra.mxu0 %v8078_v39  ;;  %v8164_v39 = vld [vmem:[%s9269_s11 + $0x44c] ss:$16 sps:$4 sm:$0xff]  }
 0x1ad   : > { %3905 = vmatpush1.bf16.msra.mxu1 %v8081_v40  ;;  %3863 = vmatprep.subr.bf16.mxu0 %v8086_v41  ;;  %v8167_v40 = vld [vmem:[%s9269_s11 + $0x64c] ss:$16 sps:$4 sm:$0xff]   ;;  %v8162_v41 = vld [vmem:[%s9269_s11 + $0x448] ss:$16 sps:$4 sm:$0xff]  }
 0x1ae   : > { %3906 = vmatprep.subr.bf16.mxu1 %v8089_v43  ;;  %v8165_v43 = vld [vmem:[%s9269_s11 + $0x648] ss:$16 sps:$4 sm:$0xff]  }
 0x1b0   : > { %3864 = vmatpush2.bf16.msra.mxu0 %v8084_v45  ;;  %v8170_v45 = vld [vmem:[%s9269_s11 + $0x42c] ss:$16 sps:$4 sm:$0xff]  }
 0x1b1   : > { %3907 = vmatpush2.bf16.msra.mxu1 %v8087_v46  ;;  %3865 = vmatprep.subr.bf16.mxu0 %v8092_v53  ;;  %v8173_v46 = vld [vmem:[%s9269_s11 + $0x62c] ss:$16 sps:$4 sm:$0xff]   ;;  %v8168_v53 = vld [vmem:[%s9269_s11 + $0x428] ss:$16 sps:$4 sm:$0xff]  }
 0x1b2   : > { %3908 = vmatprep.subr.bf16.mxu1 %v8095_v55  ;;  %v8171_v55 = vld [vmem:[%s9269_s11 + $0x628] ss:$16 sps:$4 sm:$0xff]  }
 0x1b4   : > { %3866 = vmatpush2.bf16.msra.mxu0 %v8090_v31  ;;  %v8176_v31 = vld [vmem:[%s9269_s11 + $0x40c] ss:$16 sps:$4 sm:$0xff]  }
 0x1b5   : > { %3909 = vmatpush2.bf16.msra.mxu1 %v8093_v32  ;;  %3867 = vmatprep.subr.bf16.mxu0 %v8098_v57  ;;  %v8179_v32 = vld [vmem:[%s9269_s11 + $0x60c] ss:$16 sps:$4 sm:$0xff]   ;;  %v8174_v57 = vld [vmem:[%s9269_s11 + $0x408] ss:$16 sps:$4 sm:$0xff]  }
 0x1b6   : > { %3910 = vmatprep.subr.bf16.mxu1 %v8101_v58  ;;  %v8177_v58 = vld [vmem:[%s9269_s11 + $0x608] ss:$16 sps:$4 sm:$0xff]  }
 0x1b8   : > { %3868 = vmatpush2.bf16.msra.mxu0 %v8096_v59  ;;  %v8182_v59 = vld [vmem:[%s9269_s11 + $0x5ec] ss:$16 sps:$4 sm:$0xff]  }
 0x1b9   : > { %3911 = vmatpush2.bf16.msra.mxu1 %v8099_v60  ;;  %3869 = vmatprep.subr.bf16.mxu0 %v8104_v61  ;;  %v8185_v60 = vld [vmem:[%s9269_s11 + $0x7ec] ss:$16 sps:$4 sm:$0xff]   ;;  %v8180_v61 = vld [vmem:[%s9269_s11 + $0x5e8] ss:$16 sps:$4 sm:$0xff]  }
 0x1ba   : > { %3912 = vmatprep.subr.bf16.mxu1 %v8107_v62  ;;  %v8183_v62 = vld [vmem:[%s9269_s11 + $0x7e8] ss:$16 sps:$4 sm:$0xff]  }
 0x1bc   : > { %3870 = vmatpush2.bf16.msra.mxu0 %v8102_v63  ;;  %v8188_v63 = vld [vmem:[%s9269_s11 + $0x5cc] ss:$16 sps:$4 sm:$0xff]  }
 0x1bd   : > { %3913 = vmatpush2.bf16.msra.mxu1 %v8105_v0  ;;  %3871 = vmatprep.subr.bf16.mxu0 %v8110_v1  ;;  %v8191_v0 = vld [vmem:[%s9269_s11 + $0x7cc] ss:$16 sps:$4 sm:$0xff]   ;;  %v8186_v1 = vld [vmem:[%s9269_s11 + $0x5c8] ss:$16 sps:$4 sm:$0xff]  }
 0x1be   : > { %3914 = vmatprep.subr.bf16.mxu1 %v8113_v2  ;;  %v8189_v2 = vld [vmem:[%s9269_s11 + $0x7c8] ss:$16 sps:$4 sm:$0xff]  }
 0x1c0   : > { %3872 = vmatpush2.bf16.msra.mxu0 %v8108_v3  ;;  %v8194_v3 = vld [vmem:[%s9269_s11 + $0x5ac] ss:$16 sps:$4 sm:$0xff]  }
 0x1c1   : > { %3915 = vmatpush2.bf16.msra.mxu1 %v8111_v4  ;;  %3873 = vmatprep.subr.bf16.mxu0 %v8116_v7  ;;  %v8197_v4 = vld [vmem:[%s9269_s11 + $0x7ac] ss:$16 sps:$4 sm:$0xff]   ;;  %v8192_v7 = vld [vmem:[%s9269_s11 + $0x5a8] ss:$16 sps:$4 sm:$0xff]  }
 0x1c2   : > { %3916 = vmatprep.subr.bf16.mxu1 %v8119_v8  ;;  %v8195_v8 = vld [vmem:[%s9269_s11 + $0x7a8] ss:$16 sps:$4 sm:$0xff]  }
 0x1c4   : > { %3874 = vmatpush2.bf16.msra.mxu0 %v8114_v11  ;;  %v8200_v11 = vld [vmem:[%s9269_s11 + $0x58c] ss:$16 sps:$4 sm:$0xff]  }
 0x1c5   : > { %3917 = vmatpush2.bf16.msra.mxu1 %v8117_v12  ;;  %3875 = vmatprep.subr.bf16.mxu0 %v8122_v47  ;;  %v8203_v12 = vld [vmem:[%s9269_s11 + $0x78c] ss:$16 sps:$4 sm:$0xff]   ;;  %v8198_v47 = vld [vmem:[%s9269_s11 + $0x588] ss:$16 sps:$4 sm:$0xff]  }
 0x1c6   : > { %3918 = vmatprep.subr.bf16.mxu1 %v8125_v48  ;;  %v8201_v48 = vld [vmem:[%s9269_s11 + $0x788] ss:$16 sps:$4 sm:$0xff]  }
 0x1c8   : > { %3876 = vmatpush2.bf16.msra.mxu0 %v8120_v51  ;;  %v8206_v51 = vld [vmem:[%s9269_s11 + $0x56c] ss:$16 sps:$4 sm:$0xff]  }
 0x1c9   : > { %3919 = vmatpush2.bf16.msra.mxu1 %v8123_v52  ;;  %3877 = vmatprep.subr.bf16.mxu0 %v8128_v13  ;;  %v8209_v52 = vld [vmem:[%s9269_s11 + $0x76c] ss:$16 sps:$4 sm:$0xff]   ;;  %v8204_v13 = vld [vmem:[%s9269_s11 + $0x568] ss:$16 sps:$4 sm:$0xff]  }
 0x1ca   : > { %3920 = vmatprep.subr.bf16.mxu1 %v8131_v14  ;;  %v8207_v14 = vld [vmem:[%s9269_s11 + $0x768] ss:$16 sps:$4 sm:$0xff]  }
 0x1cc   : > { %3878 = vmatpush2.bf16.msra.mxu0 %v8126_v15  ;;  %v8212_v15 = vld [vmem:[%s9269_s11 + $0x54c] ss:$16 sps:$4 sm:$0xff]  }
 0x1cd   : > { %3921 = vmatpush2.bf16.msra.mxu1 %v8129_v16  ;;  %3933 = vmatprep.subr.bf16.mxu0 %v8134_v17  ;;  %v8215_v16 = vld [vmem:[%s9269_s11 + $0x74c] ss:$16 sps:$4 sm:$0xff]   ;;  %v8210_v17 = vld [vmem:[%s9269_s11 + $0x548] ss:$16 sps:$4 sm:$0xff]  }
 0x1ce   : > { %3976 = vmatprep.subr.bf16.mxu1 %v8137_v18  ;;  %v8213_v18 = vld [vmem:[%s9269_s11 + $0x748] ss:$16 sps:$4 sm:$0xff]  }
 0x1cf   : > { %3880 = vmatmul.mubr.bf16.vlgmr.msra.gmra.mxu0 %v9361_v9  ;;  %v8144_v9 = vld [vmem:[%s9269_s11 + $0x4a8] ss:$16 sps:$4 sm:$0xff]  }
 0x1d0   : > { %3923 = vmatmul.mubr.bf16.vlgmr.msra.gmra.mxu1 %v9363_v10  ;;  %3934 = vmatpush1.bf16.msra.mxu0 %v8132_v54  ;;  %v8147_v10 = vld [vmem:[%s9269_s11 + $0x6a8] ss:$16 sps:$4 sm:$0xff]   ;;  %v8218_v54 = vld [vmem:[%s9269_s11 + $0x52c] ss:$16 sps:$4 sm:$0xff]  }
 0x1d1   : > { %3977 = vmatpush1.bf16.msra.mxu1 %v8135_v56  ;;  %3935 = vmatprep.subr.bf16.mxu0 %v8140_v19  ;;  %v8221_v56 = vld [vmem:[%s9269_s11 + $0x72c] ss:$16 sps:$4 sm:$0xff]   ;;  %v8216_v19 = vld [vmem:[%s9269_s11 + $0x528] ss:$16 sps:$4 sm:$0xff]  }
 0x1d2   : > { %3978 = vmatprep.subr.bf16.mxu1 %v8143_v20  ;;  %3965 = vmatprep.mubr.bf16.mxu0 %v9408_v42  ;;  %v8153_v42 = vld [vmem:[%s9269_s11 + $0x688] ss:$16 sps:$4 sm:$0xff]  }
 0x1d3   : > { %4008 = vmatprep.mubr.bf16.mxu1 %v9413_v44  ;;  %v8158_v44 = vld [vmem:[%s9269_s11 + $0x46c] ss:$16 sps:$4 sm:$0xff]   ;;  %v8219_v20 = vld [vmem:[%s9269_s11 + $0x728] ss:$16 sps:$4 sm:$0xff]  }
 0x1d4   : > { %3936 = vmatpush1.bf16.msra.mxu0 %v8138_v23  ;;  %v8224_v23 = vld [vmem:[%s9269_s11 + $0x50c] ss:$16 sps:$4 sm:$0xff]  }
 0x1d5   : > { %3979 = vmatpush1.bf16.msra.mxu1 %v8141_v24  ;;  %3937 = vmatprep.subr.bf16.mxu0 %v8146_v25  ;;  %v8227_v24 = vld [vmem:[%s9269_s11 + $0x70c] ss:$16 sps:$4 sm:$0xff]   ;;  %v8222_v25 = vld [vmem:[%s9269_s11 + $0x508] ss:$16 sps:$4 sm:$0xff]  }
 0x1d6   : > { %3980 = vmatprep.subr.bf16.mxu1 %v8149_v26  ;;  %v8225_v26 = vld [vmem:[%s9269_s11 + $0x708] ss:$16 sps:$4 sm:$0xff]  }
 0x1d8   : > { %3938 = vmatpush1.bf16.msra.mxu0 %v8144_v9  ;;  %v8230_v9 = vld [vmem:[%s9269_s11 + $0x8ec] ss:$16 sps:$4 sm:$0xff]  }
 0x1d9   : > { %3981 = vmatpush1.bf16.msra.mxu1 %v8147_v10  ;;  %3939 = vmatprep.subr.bf16.mxu0 %v8152_v27  ;;  %v8233_v10 = vld [vmem:[%s9269_s11 + $0xaec] ss:$16 sps:$4 sm:$0xff]   ;;  %v8228_v27 = vld [vmem:[%s9269_s11 + $0x8e8] ss:$16 sps:$4 sm:$0xff]  }
 0x1da   : > { %3982 = vmatprep.subr.bf16.mxu1 %v8155_v28  ;;  %v8231_v28 = vld [vmem:[%s9269_s11 + $0xae8] ss:$16 sps:$4 sm:$0xff]  }
 0x1dc   : > { %3940 = vmatpush1.bf16.msra.mxu0 %v8150_v33  ;;  %v8236_v33 = vld [vmem:[%s9269_s11 + $0x8cc] ss:$16 sps:$4 sm:$0xff]  }
 0x1dd   : > { %3983 = vmatpush1.bf16.msra.mxu1 %v8153_v42  ;;  %3941 = vmatprep.subr.bf16.mxu0 %v8158_v44  ;;  %v8239_v42 = vld [vmem:[%s9269_s11 + $0xacc] ss:$16 sps:$4 sm:$0xff]   ;;  %v8234_v44 = vld [vmem:[%s9269_s11 + $0x8c8] ss:$16 sps:$4 sm:$0xff]  }
 0x1de   : > { %3984 = vmatprep.subr.bf16.mxu1 %v8161_v35  ;;  %v8237_v35 = vld [vmem:[%s9269_s11 + $0xac8] ss:$16 sps:$4 sm:$0xff]  }
 0x1e0   : > { %3942 = vmatpush1.bf16.msra.mxu0 %v8156_v37  ;;  %v8242_v37 = vld [vmem:[%s9269_s11 + $0x8ac] ss:$16 sps:$4 sm:$0xff]  }
 0x1e1   : > { %3985 = vmatpush1.bf16.msra.mxu1 %v8159_v38  ;;  %3943 = vmatprep.subr.bf16.mxu0 %v8164_v39  ;;  %v8245_v38 = vld [vmem:[%s9269_s11 + $0xaac] ss:$16 sps:$4 sm:$0xff]  }
 0x1e2   : > { %3986 = vmatprep.subr.bf16.mxu1 %v8167_v40  ;;  %v8248_v39 = vld [vmem:[%s9269_s11 + $0x88c] ss:$16 sps:$4 sm:$0xff]  }
 0x1e3   : > { %v8251_v40 = vld [vmem:[%s9269_s11 + $0xa8c] ss:$16 sps:$4 sm:$0xff]  }
 0x1e4   : > { %3944 = vmatpush1.bf16.msra.mxu0 %v8162_v41  ;;  %v8246_v41 = vld [vmem:[%s9269_s11 + $0x888] ss:$16 sps:$4 sm:$0xff]  }
 0x1e5   : > { %3987 = vmatpush1.bf16.msra.mxu1 %v8165_v43  ;;  %3945 = vmatprep.subr.bf16.mxu0 %v8170_v45  ;;  %v8257_v43 = vld [vmem:[%s9269_s11 + $0xa6c] ss:$16 sps:$4 sm:$0xff]   ;;  %v8252_v45 = vld [vmem:[%s9269_s11 + $0x868] ss:$16 sps:$4 sm:$0xff]  }
 0x1e6   : > { %3988 = vmatprep.subr.bf16.mxu1 %v8173_v46  ;;  %v8255_v46 = vld [vmem:[%s9269_s11 + $0xa68] ss:$16 sps:$4 sm:$0xff]  }
 0x1e8   : > { %3946 = vmatpush1.bf16.msra.mxu0 %v8168_v53  ;;  %v8260_v53 = vld [vmem:[%s9269_s11 + $0x84c] ss:$16 sps:$4 sm:$0xff]  }
 0x1e9   : > { %3989 = vmatpush1.bf16.msra.mxu1 %v8171_v55  ;;  %3947 = vmatprep.subr.bf16.mxu0 %v8176_v31  ;;  %v8263_v55 = vld [vmem:[%s9269_s11 + $0xa4c] ss:$16 sps:$4 sm:$0xff]   ;;  %v8258_v31 = vld [vmem:[%s9269_s11 + $0x848] ss:$16 sps:$4 sm:$0xff]  }
 0x1ea   : > { %3990 = vmatprep.subr.bf16.mxu1 %v8179_v32  ;;  %v8261_v32 = vld [vmem:[%s9269_s11 + $0xa48] ss:$16 sps:$4 sm:$0xff]  }
 0x1ec   : > { %3948 = vmatpush1.bf16.msra.mxu0 %v8174_v57  ;;  %v8266_v57 = vld [vmem:[%s9269_s11 + $0x82c] ss:$16 sps:$4 sm:$0xff]  }
 0x1ed   : > { %3991 = vmatpush1.bf16.msra.mxu1 %v8177_v58  ;;  %3949 = vmatprep.subr.bf16.mxu0 %v8182_v59  ;;  %v8269_v58 = vld [vmem:[%s9269_s11 + $0xa2c] ss:$16 sps:$4 sm:$0xff]   ;;  %v9817_v59 = vpop.f32.mrf.mxu0 }
 0x1ee   : > { %3992 = vmatprep.subr.bf16.mxu1 %v8185_v60  ;;  %v8264_v60 = vld [vmem:[%s9269_s11 + $0x828] ss:$16 sps:$4 sm:$0xff]  }
 0x1f0   : > { %3950 = vmatpush2.bf16.msra.mxu0 %v8180_v61  ;;  %v8267_v61 = vld [vmem:[%s9269_s11 + $0xa28] ss:$16 sps:$4 sm:$0xff]  }
 0x1f1   : > { %3993 = vmatpush2.bf16.msra.mxu1 %v8183_v62  ;;  %3951 = vmatprep.subr.bf16.mxu0 %v8188_v63  ;;  %v9821_v62 = vpop.f32.mrf.mxu1  ;;  %v8272_v63 = vld [vmem:[%s9269_s11 + $0x80c] ss:$16 sps:$4 sm:$0xff]  }
 0x1f2   : > { %3994 = vmatprep.subr.bf16.mxu1 %v8191_v0  ;;  %v8275_v0 = vld [vmem:[%s9269_s11 + $0xa0c] ss:$16 sps:$4 sm:$0xff]  }
 0x1f4   : > { %3952 = vmatpush2.bf16.msra.mxu0 %v8186_v1  ;;  %v9825_v1 = vpop.f32.mrf.mxu0 }
 0x1f5   : > { %3995 = vmatpush2.bf16.msra.mxu1 %v8189_v2  ;;  %3953 = vmatprep.subr.bf16.mxu0 %v8194_v3  ;;  %v8270_v2 = vld [vmem:[%s9269_s11 + $0x808] ss:$16 sps:$4 sm:$0xff]  }
 0x1f6   : > { %3996 = vmatprep.subr.bf16.mxu1 %v8197_v4  ;;  %v8273_v3 = vld [vmem:[%s9269_s11 + $0xa08] ss:$16 sps:$4 sm:$0xff]   ;;  %v9829_v4 = vpop.f32.mrf.mxu1 }
 0x1f8   : > { %3954 = vmatpush2.bf16.msra.mxu0 %v8192_v7  ;;  %v8278_v7 = vld [vmem:[%s9269_s11 + $0x9ec] ss:$16 sps:$4 sm:$0xff]  }
 0x1f9   : > { %3997 = vmatpush2.bf16.msra.mxu1 %v8195_v8  ;;  %3955 = vmatprep.subr.bf16.mxu0 %v8200_v11  ;;  %v8281_v8 = vld [vmem:[%s9269_s11 + $0xbec] ss:$16 sps:$4 sm:$0xff]   ;;  %v9833_v11 = vpop.f32.mrf.mxu0 }
 0x1fa   : > { %3998 = vmatprep.subr.bf16.mxu1 %v8203_v12  ;;  %v8276_v12 = vld [vmem:[%s9269_s11 + $0x9e8] ss:$16 sps:$4 sm:$0xff]  }
 0x1fc   : > { %3956 = vmatpush2.bf16.msra.mxu0 %v8198_v47  ;;  %v8279_v47 = vld [vmem:[%s9269_s11 + $0xbe8] ss:$16 sps:$4 sm:$0xff]  }
 0x1fd   : > { %3999 = vmatpush2.bf16.msra.mxu1 %v8201_v48  ;;  %3957 = vmatprep.subr.bf16.mxu0 %v8206_v51  ;;  %v9837_v48 = vpop.f32.mrf.mxu1  ;;  %v8284_v51 = vld [vmem:[%s9269_s11 + $0x9cc] ss:$16 sps:$4 sm:$0xff]  }
 0x1fe   : > { %4000 = vmatprep.subr.bf16.mxu1 %v8209_v52  ;;  %v8287_v52 = vld [vmem:[%s9269_s11 + $0xbcc] ss:$16 sps:$4 sm:$0xff]  }
 0x200   : > { %3958 = vmatpush2.bf16.msra.mxu0 %v8204_v13  ;;  %v9841_v13 = vpop.f32.mrf.mxu0 }
 0x201   : > { %4001 = vmatpush2.bf16.msra.mxu1 %v8207_v14  ;;  %3959 = vmatprep.subr.bf16.mxu0 %v8212_v15  ;;  %v8282_v14 = vld [vmem:[%s9269_s11 + $0x9c8] ss:$16 sps:$4 sm:$0xff]  }
 0x202   : > { %4002 = vmatprep.subr.bf16.mxu1 %v8215_v16  ;;  %v8285_v15 = vld [vmem:[%s9269_s11 + $0xbc8] ss:$16 sps:$4 sm:$0xff]   ;;  %v3586_v16 = vpop.f32.mrf.mxu1 }
 0x204   : > { %3960 = vmatpush2.bf16.msra.mxu0 %v8210_v17  ;;  %v8290_v17 = vld [vmem:[%s9269_s11 + $0x9ac] ss:$16 sps:$4 sm:$0xff]  }
 0x205   : > { %4003 = vmatpush2.bf16.msra.mxu1 %v8213_v18  ;;  %3961 = vmatprep.subr.bf16.mxu0 %v8218_v54  ;;  %v8293_v18 = vld [vmem:[%s9269_s11 + $0xbac] ss:$16 sps:$4 sm:$0xff]   ;;  %v3623_v54 = vpop.f32.mrf.mxu0 }
 0x206   : > { %4004 = vmatprep.subr.bf16.mxu1 %v8221_v56  ;;  %v3666_v56 = vpop.f32.mrf.mxu1 }
 0x208   : > { %3962 = vmatpush2.bf16.msra.mxu0 %v8216_v19  ;;  %v8288_v19 = vld [vmem:[%s9269_s11 + $0x9a8] ss:$16 sps:$4 sm:$0xff]  }
 0x209   : > { %4005 = vmatpush2.bf16.msra.mxu1 %v8219_v20  ;;  %3963 = vmatprep.subr.bf16.mxu0 %v8224_v23  ;;  %v8291_v20 = vld [vmem:[%s9269_s11 + $0xba8] ss:$16 sps:$4 sm:$0xff]   ;;  %v8296_v23 = vld [vmem:[%s9269_s11 + $0x98c] ss:$16 sps:$4 sm:$0xff]  }
 0x20a   : > { %4006 = vmatprep.subr.bf16.mxu1 %v8227_v24  ;;  %v8299_v24 = vld [vmem:[%s9269_s11 + $0xb8c] ss:$16 sps:$4 sm:$0xff]  }
 0x20c   : > { %3964 = vmatpush2.bf16.msra.mxu0 %v8222_v25  ;;  %v3625_v25 = vpop.f32.mrf.mxu0 }
 0x20d   : > { %4007 = vmatpush2.bf16.msra.mxu1 %v8225_v26  ;;  %4019 = vmatprep.subr.bf16.mxu0 %v8230_v9  ;;  %v3668_v26 = vpop.f32.mrf.mxu1  ;;  %v8294_v9 = vld [vmem:[%s9269_s11 + $0x988] ss:$16 sps:$4 sm:$0xff]  }
 0x20e   : > { %4062 = vmatprep.subr.bf16.mxu1 %v8233_v10  ;;  %v8297_v10 = vld [vmem:[%s9269_s11 + $0xb88] ss:$16 sps:$4 sm:$0xff]  }
 0x20f   : > { %3966 = vmatmul.mubr.bf16.vlgmr.msra.gmra.mxu0 %v9455_v21  ;;  %v8240_v21 = vld [vmem:[%s9269_s11 + $0x8a8] ss:$16 sps:$4 sm:$0xff]  }
 0x210   : > { %4009 = vmatmul.mubr.bf16.vlgmr.msra.gmra.mxu1 %v9459_v22  ;;  %4020 = vmatpush1.bf16.msra.mxu0 %v8228_v27  ;;  %v8243_v22 = vld [vmem:[%s9269_s11 + $0xaa8] ss:$16 sps:$4 sm:$0xff]   ;;  %v8302_v27 = vld [vmem:[%s9269_s11 + $0x96c] ss:$16 sps:$4 sm:$0xff]  }
 0x211   : > { %4063 = vmatpush1.bf16.msra.mxu1 %v8231_v28  ;;  %4021 = vmatprep.subr.bf16.mxu0 %v8236_v33  ;;  %v8305_v28 = vld [vmem:[%s9269_s11 + $0xb6c] ss:$16 sps:$4 sm:$0xff]   ;;  %v3627_v33 = vpop.f32.mrf.mxu0 }
 0x212   : > { %4064 = vmatprep.subr.bf16.mxu1 %v8239_v42  ;;  %4051 = vmatprep.mubr.bf16.mxu0 %v9484_v34  ;;  %v8249_v34 = vld [vmem:[%s9269_s11 + $0xa88] ss:$16 sps:$4 sm:$0xff]   ;;  %v3670_v42 = vpop.f32.mrf.mxu1 }
 0x213   : > { %4094 = vmatprep.mubr.bf16.mxu1 %v9489_v36  ;;  %v8254_v36 = vld [vmem:[%s9269_s11 + $0x86c] ss:$16 sps:$4 sm:$0xff]  }
 0x214   : > { %4022 = vmatpush1.bf16.msra.mxu0 %v8234_v44  ;;  %v8300_v44 = vld [vmem:[%s9269_s11 + $0x968] ss:$16 sps:$4 sm:$0xff]  }
 0x215   : > { %4065 = vmatpush1.bf16.msra.mxu1 %v8237_v35  ;;  %4023 = vmatprep.subr.bf16.mxu0 %v8242_v37  ;;  %v8303_v35 = vld [vmem:[%s9269_s11 + $0xb68] ss:$16 sps:$4 sm:$0xff]   ;;  %v8308_v37 = vld [vmem:[%s9269_s11 + $0x94c] ss:$16 sps:$4 sm:$0xff]  }
 0x216   : > { %4066 = vmatprep.subr.bf16.mxu1 %v8245_v38  ;;  %v8311_v38 = vld [vmem:[%s9269_s11 + $0xb4c] ss:$16 sps:$4 sm:$0xff]  }
 0x218   : > { %4024 = vmatpush1.bf16.msra.mxu0 %v8240_v21  ;;  %v3629_v21 = vpop.f32.mrf.mxu0 }
 0x219   : > { %4067 = vmatpush1.bf16.msra.mxu1 %v8243_v22  ;;  %4025 = vmatprep.subr.bf16.mxu0 %v8248_v39  ;;  %v3672_v22 = vpop.f32.mrf.mxu1 }
 0x21a   : > { %4068 = vmatprep.subr.bf16.mxu1 %v8251_v40  ;;  %v3709_v39 = vpop.f32.mrf.mxu0  ;;  %v8306_v40 = vld [vmem:[%s9269_s11 + $0x948] ss:$16 sps:$4 sm:$0xff]  }
 0x21c   : > { %4026 = vmatpush1.bf16.msra.mxu0 %v8246_v41  ;;  %v8309_v41 = vld [vmem:[%s9269_s11 + $0xb48] ss:$16 sps:$4 sm:$0xff]  }
 0x21d   : > { %4069 = vmatpush1.bf16.msra.mxu1 %v8249_v34  ;;  %4027 = vmatprep.subr.bf16.mxu0 %v8254_v36  ;;  %v3752_v34 = vpop.f32.mrf.mxu1  ;;  %v8314_v36 = vld [vmem:[%s9269_s11 + $0x92c] ss:$16 sps:$4 sm:$0xff]  }
 0x21e   : > { %4070 = vmatprep.subr.bf16.mxu1 %v8257_v43  ;;  %v8317_v43 = vld [vmem:[%s9269_s11 + $0xb2c] ss:$16 sps:$4 sm:$0xff]  }
 0x220   : > { %4028 = vmatpush1.bf16.msra.mxu0 %v8252_v45  ;;  %v3581_v45 = vadd.f32 %v9821_v62, %v9817_v59  ;;  %v3585_v59 = vadd.f32 %v9837_v48, %v9833_v11  ;;  %v3587_v62 = vadd.f32 %v3586_v16, %v9841_v13  ;;  %v8329_v11 = vld [vmem:[%s9269_s11 + $0xeec] ss:$16 sps:$4 sm:$0xff]   ;;  %v8324_v13 = vld [vmem:[%s9269_s11 + $0xce8] ss:$16 sps:$4 sm:$0xff]  }
 0x221   : > { %4071 = vmatpush1.bf16.msra.mxu1 %v8255_v46  ;;  %4029 = vmatprep.subr.bf16.mxu0 %v8260_v53  ;;  %v3583_v46 = vadd.f32 %v9829_v4, %v9825_v1 }
 0x222   : > { %4072 = vmatprep.subr.bf16.mxu1 %v8263_v55  ;;  %v3624_v53 = vadd.f32 %v3623_v54, %v3581_v45  ;;  %v3711_v55 = vpop.f32.mrf.mxu0  ;;  %v3630_v4 = vadd.f32 %v3629_v21, %v3587_v62 }
 0x224   : > { %4030 = vmatpush1.bf16.msra.mxu0 %v8258_v31  ;;  %v8312_v31 = vld [vmem:[%s9269_s11 + $0x928] ss:$16 sps:$4 sm:$0xff]   ;;  %v3713_v1 = vpop.f32.mrf.mxu0 }
 0x225   : > { %4073 = vmatpush1.bf16.msra.mxu1 %v8261_v32  ;;  %4031 = vmatprep.subr.bf16.mxu0 %v8266_v57  ;;  %v8315_v32 = vld [vmem:[%s9269_s11 + $0xb28] ss:$16 sps:$4 sm:$0xff]   ;;  %v3754_v57 = vpop.f32.mrf.mxu1 }
 0x226   : > { %4074 = vmatprep.subr.bf16.mxu1 %v8269_v58  ;;  %v8320_v58 = vld [vmem:[%s9269_s11 + $0x90c] ss:$16 sps:$4 sm:$0xff]  }
 0x228   : > { %4032 = vmatpush1.bf16.msra.mxu0 %v8264_v60  ;;  %v8323_v60 = vld [vmem:[%s9269_s11 + $0xb0c] ss:$16 sps:$4 sm:$0xff]  }
 0x229   : > { %4075 = vmatpush1.bf16.msra.mxu1 %v8267_v61  ;;  %4033 = vmatprep.subr.bf16.mxu0 %v8272_v63  ;;  %v3626_v61 = vadd.f32 %v3625_v25, %v3583_v46  ;;  %v3667_v63 = vadd.f32 %v3666_v56, %v3624_v53 }
 0x22a   : > { %4076 = vmatprep.subr.bf16.mxu1 %v8275_v0  ;;  %v3628_v0 = vadd.f32 %v3627_v33, %v3585_v59  ;;  %v8338_v33 = vld [vmem:[%s9269_s11 + $0xcac] ss:$16 sps:$4 sm:$0xff]  }
 0x22b   : > { %v8350_v59 = vld [vmem:[%s9269_s11 + $0xc6c] ss:$16 sps:$4 sm:$0xff]  }
 0x22c   : > { %4034 = vmatpush1.bf16.msra.mxu0 %v8270_v2  ;;  %v8318_v2 = vld [vmem:[%s9269_s11 + $0x908] ss:$16 sps:$4 sm:$0xff]   ;;  %v3671_v48 = vadd.f32 %v3670_v42, %v3628_v0  ;;  %v8341_v42 = vld [vmem:[%s9269_s11 + $0xeac] ss:$16 sps:$4 sm:$0xff]  }
 0x22d   : > { %4077 = vmatpush1.bf16.msra.mxu1 %v8273_v3  ;;  %4035 = vmatprep.subr.bf16.mxu0 %v8278_v7  ;;  %v8321_v3 = vld [vmem:[%s9269_s11 + $0xb08] ss:$16 sps:$4 sm:$0xff]   ;;  %v3756_v7 = vpop.f32.mrf.mxu1 }
 0x22e   : > { %4078 = vmatprep.subr.bf16.mxu1 %v8281_v8  ;;  %v8326_v8 = vld [vmem:[%s9269_s11 + $0xcec] ss:$16 sps:$4 sm:$0xff]   ;;  %v3714_v56 = vadd.f32 %v3713_v1, %v3671_v48  ;;  %v8351_v0 = vld [vmem:[%s9269_s11 + $0xe68] ss:$16 sps:$4 sm:$0xff]  }
 0x22f   : > { %v3758_v16 = vpop.f32.mrf.mxu1  ;;  %v8356_v1 = vld [vmem:[%s9269_s11 + $0xc4c] ss:$16 sps:$4 sm:$0xff]  }
 0x230   : > { %4036 = vmatpush2.bf16.msra.mxu0 %v8276_v12  ;;  %v3669_v12 = vadd.f32 %v3668_v26, %v3626_v61  ;;  %v8330_v26 = vld [vmem:[%s9269_s11 + $0xcc8] ss:$16 sps:$4 sm:$0xff]   ;;  %v8353_v61 = vld [vmem:[%s9269_s11 + $0xe6c] ss:$16 sps:$4 sm:$0xff]  }
 0x231   : > { %4079 = vmatpush2.bf16.msra.mxu1 %v8279_v47  ;;  %4037 = vmatprep.subr.bf16.mxu0 %v8284_v51  ;;  %v3710_v47 = vadd.f32 %v3709_v39, %v3667_v63  ;;  %v8348_v63 = vld [vmem:[%s9269_s11 + $0xc68] ss:$16 sps:$4 sm:$0xff]   ;;  %v8371_v48 = vld [vmem:[%s9269_s11 + $0xe0c] ss:$16 sps:$4 sm:$0xff]  }
 0x232   : > { %4080 = vmatprep.subr.bf16.mxu1 %v8287_v52  ;;  %v3712_v51 = vadd.f32 %v3711_v55, %v3669_v12  ;;  %v3715_v52 = vpop.f32.mrf.mxu0  ;;  %v332_v55 = vld [vmem:[#allocation11 + $0x28] sm:$0xff] }
 0x233   : > { %v3753_v54 = vadd.f32 %v3752_v34, %v3710_v47  ;;  %v8339_v34 = vld [vmem:[%s9269_s11 + $0xea8] ss:$16 sps:$4 sm:$0xff]   ;;  %v8368_v47 = vld [vmem:[%s9269_s11 + $0xc0c] ss:$16 sps:$4 sm:$0xff]  }
 0x234   : > { %4038 = vmatpush2.bf16.msra.mxu0 %v8282_v14  ;;  %v8327_v14 = vld [vmem:[%s9269_s11 + $0xee8] ss:$16 sps:$4 sm:$0xff]  }
 0x235   : > { %4081 = vmatpush2.bf16.msra.mxu1 %v8285_v15  ;;  %4039 = vmatprep.subr.bf16.mxu0 %v8290_v17  ;;  %v3673_v15 = vadd.f32 %v3672_v22, %v3630_v4  ;;  %v8332_v17 = vld [vmem:[%s9269_s11 + $0xccc] ss:$16 sps:$4 sm:$0xff]   ;;  %v8357_v4 = vld [vmem:[%s9269_s11 + $0xe48] ss:$16 sps:$4 sm:$0xff]  }
 0x236   : > { %4082 = vmatprep.subr.bf16.mxu1 %v8293_v18  ;;  %v8335_v18 = vld [vmem:[%s9269_s11 + $0xecc] ss:$16 sps:$4 sm:$0xff]   ;;  %v8363_v12 = vld [vmem:[%s9269_s11 + $0xe28] ss:$16 sps:$4 sm:$0xff]  }
 0x238   : > { %4040 = vmatpush2.bf16.msra.mxu0 %v8288_v19  ;;  %v3716_v19 = vadd.f32 %v3715_v52, %v3673_v15  ;;  %v8369_v52 = vld [vmem:[%s9269_s11 + $0xe08] ss:$16 sps:$4 sm:$0xff]  }
 0x239   : > { %4083 = vmatpush2.bf16.msra.mxu1 %v8291_v20  ;;  %4041 = vmatprep.subr.bf16.mxu0 %v8296_v23  ;;  %v8372_v15 = vld [vmem:[%s9269_s11 + $0xde8] ss:$16 sps:$4 sm:$0xff]  }
 0x23a   : > { %4084 = vmatprep.subr.bf16.mxu1 %v8299_v24  ;;  %v3755_v24 = vadd.f32 %v3754_v57, %v3712_v51  ;;  %v8366_v51 = vld [vmem:[%s9269_s11 + $0xc08] ss:$16 sps:$4 sm:$0xff]  }
 0x23c   : > { %4042 = vmatpush2.bf16.msra.mxu0 %v8294_v9  ;;  %v8333_v9 = vld [vmem:[%s9269_s11 + $0xec8] ss:$16 sps:$4 sm:$0xff]  }
 0x23d   : > { %4085 = vmatpush2.bf16.msra.mxu1 %v8297_v10  ;;  %4043 = vmatprep.subr.bf16.mxu0 %v8302_v27  ;;  %v327_v10 = vld [vmem:[#allocation11] sm:$0xff] }
 0x23e   : > { %4086 = vmatprep.subr.bf16.mxu1 %v8305_v28 }
 0x240   : > { %4044 = vmatpush2.bf16.msra.mxu0 %v8300_v44  ;;  %v3757_v44 = vadd.f32 %v3756_v7, %v3714_v56  ;;  %v8362_v7 = vld [vmem:[%s9269_s11 + $0xc2c] ss:$16 sps:$4 sm:$0xff]   ;;  %v8381_v56 = vld [vmem:[%s9269_s11 + $0xfc8] ss:$16 sps:$4 sm:$0xff]  }
 0x241   : > { %4087 = vmatpush2.bf16.msra.mxu1 %v8303_v35  ;;  %4045 = vmatprep.subr.bf16.mxu0 %v8308_v37  ;;  %v328_v37 = vld [vmem:[#allocation11 + $0x8] sm:$0xff] }
 0x242   : > { %4088 = vmatprep.subr.bf16.mxu1 %v8311_v38 }
 0x244   : > { %4046 = vmatpush2.bf16.msra.mxu0 %v8306_v40 }
 0x245   : > { %4089 = vmatpush2.bf16.msra.mxu1 %v8309_v41  ;;  %4047 = vmatprep.subr.bf16.mxu0 %v8314_v36  ;;  %v8336_v41 = vld [vmem:[%s9269_s11 + $0xca8] ss:$16 sps:$4 sm:$0xff]   ;;  %v331_v36 = vld [vmem:[#allocation11 + $0x20] sm:$0xff] }
 0x246   : > { %4090 = vmatprep.subr.bf16.mxu1 %v8317_v43 }
 0x248   : > { %4048 = vmatpush2.bf16.msra.mxu0 %v8312_v31 }
 0x249   : > { %4091 = vmatpush2.bf16.msra.mxu1 %v8315_v32  ;;  %4049 = vmatprep.subr.bf16.mxu0 %v8320_v58  ;;  %v8342_v58 = vld [vmem:[%s9269_s11 + $0xc88] ss:$16 sps:$4 sm:$0xff]  }
 0x24a   : > { %4092 = vmatprep.subr.bf16.mxu1 %v8323_v60  ;;  %v8345_v60 = vld [vmem:[%s9269_s11 + $0xe88] ss:$16 sps:$4 sm:$0xff]  }
 0x24c   : > { %4050 = vmatpush2.bf16.msra.mxu0 %v8318_v2  ;;  %v8359_v2 = vld [vmem:[%s9269_s11 + $0xe4c] ss:$16 sps:$4 sm:$0xff]  }
 0x24d   : > { %4093 = vmatpush2.bf16.msra.mxu1 %v8321_v3  ;;  %4105 = vmatprep.subr.bf16.mxu0 %v8326_v8  ;;  %v8354_v3 = vld [vmem:[%s9269_s11 + $0xc48] ss:$16 sps:$4 sm:$0xff]   ;;  %v8365_v8 = vld [vmem:[%s9269_s11 + $0xe2c] ss:$16 sps:$4 sm:$0xff]  }
 0x24e   : > { %4148 = vmatprep.subr.bf16.mxu1 %v8329_v11  ;;  %v8360_v11 = vld [vmem:[%s9269_s11 + $0xc28] ss:$16 sps:$4 sm:$0xff]  }
 0x24f   : > { %v3795_v20 = vpop.f32.mrf.mxu0  ;;  %4052 = vmatmul.mubr.bf16.vlgmr.msra.gmra.mxu0 %v9559_v49 }
 0x250   : > { %v3838_v23 = vpop.f32.mrf.mxu1  ;;  %4095 = vmatmul.mubr.bf16.vlgmr.msra.gmra.mxu1 %v9563_v50  ;;  %v3796_v25 = vadd.f32 %v3795_v20, %v3753_v54  ;;  %4106 = vmatpush1.bf16.msra.mxu0 %v8324_v13  ;;  %v3759_v50 = vadd.f32 %v3758_v16, %v3716_v19  ;;  %v8374_v13 = vld [vmem:[%s9269_s11 + $0xdec] ss:$16 sps:$4 sm:$0xff]   ;;  %v8375_v16 = vld [vmem:[%s9269_s11 + $0xfe8] ss:$16 sps:$4 sm:$0xff]  }
 0x251   : > { %4149 = vmatpush1.bf16.msra.mxu1 %v8327_v14  ;;  %v3797_v27 = vpop.f32.mrf.mxu0  ;;  %4107 = vmatprep.subr.bf16.mxu0 %v8332_v17  ;;  %v8377_v14 = vld [vmem:[%s9269_s11 + $0xfec] ss:$16 sps:$4 sm:$0xff]   ;;  %v8378_v54 = vld [vmem:[%s9269_s11 + $0xdc8] ss:$16 sps:$4 sm:$0xff]  }
 0x252   : > { %v3840_v28 = vpop.f32.mrf.mxu1  ;;  %4150 = vmatprep.subr.bf16.mxu1 %v8335_v18  ;;  %v3839_v35 = vadd.f32 %v3838_v23, %v3796_v25  ;;  %v3798_v49 = vadd.f32 %v3797_v27, %v3755_v24  ;;  %4137 = vmatprep.mubr.bf16.mxu0 %v9575_v29  ;;  %v8344_v29 = vld [vmem:[%s9269_s11 + $0xc8c] ss:$16 sps:$4 sm:$0xff]   ;;  %v8384_v23 = vld [vmem:[%s9269_s11 + $0xda8] ss:$16 sps:$4 sm:$0xff]  }
 0x253   : > { %4180 = vmatprep.mubr.bf16.mxu1 %v9579_v30  ;;  %v3799_v38 = vpop.f32.mrf.mxu0  ;;  %v8347_v30 = vld [vmem:[%s9269_s11 + $0xe8c] ss:$16 sps:$4 sm:$0xff]   ;;  %v8387_v24 = vld [vmem:[%s9269_s11 + $0xfa8] ss:$16 sps:$4 sm:$0xff]  }
 0x254   : > { %v3842_v21 = vpop.f32.mrf.mxu1  ;;  %v4191_v22 = vadd.f32 %v3839_v35, %v327_v10  ;;  %v3841_v39 = vadd.f32 %v3840_v28, %v3798_v49  ;;  %v3800_v40 = vadd.f32 %v3799_v38, %v3757_v44  ;;  %4108 = vmatpush1.bf16.msra.mxu0 %v8330_v26  ;;  %v8380_v17 = vld [vmem:[%s9269_s11 + $0xdcc] ss:$16 sps:$4 sm:$0xff]   ;;  %v8393_v10 = vld [vmem:[%s9269_s11 + $0xf88] ss:$16 sps:$4 sm:$0xff]  }
 0x255   : > { %4151 = vmatpush1.bf16.msra.mxu1 %v8333_v9  ;;  %v3801_v43 = vpop.f32.mrf.mxu0  ;;  %4109 = vmatprep.subr.bf16.mxu0 %v8338_v33  ;;  %v8383_v18 = vld [vmem:[%s9269_s11 + $0xfcc] ss:$16 sps:$4 sm:$0xff]   ;;  %v8390_v9 = vld [vmem:[%s9269_s11 + $0xd88] ss:$16 sps:$4 sm:$0xff]  }
 0x256   : > { %4152 = vmatprep.subr.bf16.mxu1 %v8341_v42  ;;  %4199 = vst [vmem:[#allocation11] sm:$0xff] %v4191_v22  ;;  %v4192_v45 = vadd.f32 %v3841_v39, %v328_v37  ;;  %v3843_v46 = vadd.f32 %v3842_v21, %v3800_v40  ;;  %v3802_v53 = vadd.f32 %v3801_v43, %v3759_v50  ;;  %v3844_v31 = vpop.f32.mrf.mxu1  ;;  %v8386_v19 = vld [vmem:[%s9269_s11 + $0xdac] ss:$16 sps:$4 sm:$0xff]   ;;  %v8396_v33 = vld [vmem:[%s9269_s11 + $0xd68] ss:$16 sps:$4 sm:$0xff]  }
 0x257   : > { %v8389_v20 = vld [vmem:[%s9269_s11 + $0xfac] ss:$16 sps:$4 sm:$0xff]   ;;  %v8399_v42 = vld [vmem:[%s9269_s11 + $0xf68] ss:$16 sps:$4 sm:$0xff]  }
 0x258   : > { %4200 = vst [vmem:[#allocation11 + $0x8] sm:$0xff] %v4192_v45  ;;  %v4195_v32 = vadd.f32 %v3843_v46, %v331_v36  ;;  %v3845_v57 = vadd.f32 %v3844_v31, %v3802_v53  ;;  %4110 = vmatpush1.bf16.msra.mxu0 %v8336_v41  ;;  %v8392_v25 = vld [vmem:[%s9269_s11 + $0xd8c] ss:$16 sps:$4 sm:$0xff]   ;;  %v8402_v49 = vld [vmem:[%s9269_s11 + $0xd48] ss:$16 sps:$4 sm:$0xff]  }
 0x259   : > { %4153 = vmatpush1.bf16.msra.mxu1 %v8339_v34  ;;  %4111 = vmatprep.subr.bf16.mxu0 %v8344_v29  ;;  %v8395_v26 = vld [vmem:[%s9269_s11 + $0xf8c] ss:$16 sps:$4 sm:$0xff]   ;;  %v8405_v50 = vld [vmem:[%s9269_s11 + $0xf48] ss:$16 sps:$4 sm:$0xff]  }
 0x25a   : > { %4154 = vmatprep.subr.bf16.mxu1 %v8347_v30  ;;  %4203 = vst [vmem:[#allocation11 + $0x20] sm:$0xff] %v4195_v32  ;;  %v4196_v62 = vadd.f32 %v3845_v57, %v332_v55  ;;  %v8398_v27 = vld [vmem:[%s9269_s11 + $0xd6c] ss:$16 sps:$4 sm:$0xff]   ;;  %v8408_v21 = vld [vmem:[%s9269_s11 + $0xd28] ss:$16 sps:$4 sm:$0xff]  }
 0x25b   : > { %v8401_v28 = vld [vmem:[%s9269_s11 + $0xf6c] ss:$16 sps:$4 sm:$0xff]   ;;  %v8411_v22 = vld [vmem:[%s9269_s11 + $0xf28] ss:$16 sps:$4 sm:$0xff]  }
 0x25c   : > { %4204 = vst [vmem:[#allocation11 + $0x28] sm:$0xff] %v4196_v62  ;;  %4112 = vmatpush1.bf16.msra.mxu0 %v8342_v58  ;;  %v8404_v44 = vld [vmem:[%s9269_s11 + $0xd4c] ss:$16 sps:$4 sm:$0xff]   ;;  %v8414_v41 = vld [vmem:[%s9269_s11 + $0xd08] ss:$16 sps:$4 sm:$0xff]  }
 0x25d   : > { %4155 = vmatpush1.bf16.msra.mxu1 %v8345_v60  ;;  %4113 = vmatprep.subr.bf16.mxu0 %v8350_v59  ;;  %v8407_v35 = vld [vmem:[%s9269_s11 + $0xf4c] ss:$16 sps:$4 sm:$0xff]   ;;  %v8417_v34 = vld [vmem:[%s9269_s11 + $0xf08] ss:$16 sps:$4 sm:$0xff]  }
 0x25e   : > { %4156 = vmatprep.subr.bf16.mxu1 %v8353_v61  ;;  %v8410_v37 = vld [vmem:[%s9269_s11 + $0xd2c] ss:$16 sps:$4 sm:$0xff]  }
 0x25f   : > { %v8413_v38 = vld [vmem:[%s9269_s11 + $0xf2c] ss:$16 sps:$4 sm:$0xff]  }
 0x260   : > { %4114 = vmatpush1.bf16.msra.mxu0 %v8348_v63  ;;  %v8416_v39 = vld [vmem:[%s9269_s11 + $0xd0c] ss:$16 sps:$4 sm:$0xff]  }
 0x261   : > { %4157 = vmatpush1.bf16.msra.mxu1 %v8351_v0  ;;  %4115 = vmatprep.subr.bf16.mxu0 %v8356_v1  ;;  %v8419_v40 = vld [vmem:[%s9269_s11 + $0xf0c] ss:$16 sps:$4 sm:$0xff]  }
 0x262   : > { %4158 = vmatprep.subr.bf16.mxu1 %v8359_v2 }
 0x264   : > { %4116 = vmatpush1.bf16.msra.mxu0 %v8354_v3 }
 0x265   : > { %4159 = vmatpush1.bf16.msra.mxu1 %v8357_v4  ;;  %4117 = vmatprep.subr.bf16.mxu0 %v8362_v7 }
 0x266   : > { %4160 = vmatprep.subr.bf16.mxu1 %v8365_v8 }
 0x268   : > { %4118 = vmatpush1.bf16.msra.mxu0 %v8360_v11 }
 0x269   : > { %4161 = vmatpush1.bf16.msra.mxu1 %v8363_v12  ;;  %4119 = vmatprep.subr.bf16.mxu0 %v8368_v47 }
 0x26a   : > { %4162 = vmatprep.subr.bf16.mxu1 %v8371_v48 }
 0x26c   : > { %4120 = vmatpush1.bf16.msra.mxu0 %v8366_v51 }
 0x26d   : > { %4163 = vmatpush1.bf16.msra.mxu1 %v8369_v52  ;;  %4121 = vmatprep.subr.bf16.mxu0 %v8374_v13 }
 0x26e   : > { %4164 = vmatprep.subr.bf16.mxu1 %v8377_v14 }
 0x270   : > { %4122 = vmatpush2.bf16.msra.mxu0 %v8372_v15 }
 0x271   : > { %4165 = vmatpush2.bf16.msra.mxu1 %v8375_v16  ;;  %4123 = vmatprep.subr.bf16.mxu0 %v8380_v17 }
 0x272   : > { %4166 = vmatprep.subr.bf16.mxu1 %v8383_v18 }
 0x274   : > { %4124 = vmatpush2.bf16.msra.mxu0 %v8378_v54 }
 0x275   : > { %4167 = vmatpush2.bf16.msra.mxu1 %v8381_v56  ;;  %4125 = vmatprep.subr.bf16.mxu0 %v8386_v19 }
 0x276   : > { %4168 = vmatprep.subr.bf16.mxu1 %v8389_v20 }
 0x278   : > { %4126 = vmatpush2.bf16.msra.mxu0 %v8384_v23 }
 0x279   : > { %4169 = vmatpush2.bf16.msra.mxu1 %v8387_v24  ;;  %4127 = vmatprep.subr.bf16.mxu0 %v8392_v25 }
 0x27a   : > { %4170 = vmatprep.subr.bf16.mxu1 %v8395_v26  ;;  %v329_v26 = vld [vmem:[#allocation11 + $0x10] sm:$0xff] }
 0x27c   : > { %4128 = vmatpush2.bf16.msra.mxu0 %v8390_v9 }
 0x27d   : > { %4171 = vmatpush2.bf16.msra.mxu1 %v8393_v10  ;;  %4129 = vmatprep.subr.bf16.mxu0 %v8398_v27 }
 0x27e   : > { %4172 = vmatprep.subr.bf16.mxu1 %v8401_v28 }
 0x280   : > { %4130 = vmatpush2.bf16.msra.mxu0 %v8396_v33 }
 0x281   : > { %4173 = vmatpush2.bf16.msra.mxu1 %v8399_v42  ;;  %4131 = vmatprep.subr.bf16.mxu0 %v8404_v44  ;;  %v330_v42 = vld [vmem:[#allocation11 + $0x18] sm:$0xff] }
 0x282   : > { %4174 = vmatprep.subr.bf16.mxu1 %v8407_v35 }
 0x284   : > { %4132 = vmatpush2.bf16.msra.mxu0 %v8402_v49 }
 0x285   : > { %4175 = vmatpush2.bf16.msra.mxu1 %v8405_v50  ;;  %4133 = vmatprep.subr.bf16.mxu0 %v8410_v37 }
 0x286   : > { %4176 = vmatprep.subr.bf16.mxu1 %v8413_v38 }
 0x288   : > { %4134 = vmatpush2.bf16.msra.mxu0 %v8408_v21  ;;  %v333_v21 = vld [vmem:[#allocation11 + $0x30] sm:$0xff] }
 0x289   : > { %4177 = vmatpush2.bf16.msra.mxu1 %v8411_v22  ;;  %4135 = vmatprep.subr.bf16.mxu0 %v8416_v39 }
 0x28a   : > { %4178 = vmatprep.subr.bf16.mxu1 %v8419_v40 }
 0x28c   : > { %4136 = vmatpush2.bf16.msra.mxu0 %v8414_v41 }
 0x28d   : > { %4179 = vmatpush2.bf16.msra.mxu1 %v8417_v34  ;;  %v334_v34 = vld [vmem:[#allocation11 + $0x38] sm:$0xff] }
 0x28f   : > { %4138 = vmatmul.mubr.bf16.vlgmr.msra.gmra.mxu0 %v9647_v5  ;;  %v3881_v36 = vpop.f32.mrf.mxu0 }
 0x290   : > { %4181 = vmatmul.mubr.bf16.vlgmr.msra.gmra.mxu1 %v9651_v6  ;;  %v3924_v43 = vpop.f32.mrf.mxu1 }
 0x291   : > { %v3883_v29 = vpop.f32.mrf.mxu0  ;;  %v3925_v0 = vadd.f32 %v3924_v43, %v3881_v36 }
 0x292   : > { %v3926_v30 = vpop.f32.mrf.mxu1 }
 0x293   : > { %v3885_v45 = vpop.f32.mrf.mxu0  ;;  %v3927_v6 = vadd.f32 %v3926_v30, %v3883_v29 }
 0x294   : > { %v3928_v46 = vpop.f32.mrf.mxu1 }
 0x295   : > { %v3887_v53 = vpop.f32.mrf.mxu0  ;;  %v3929_v4 = vadd.f32 %v3928_v46, %v3885_v45 }
 0x296   : > { %v3930_v55 = vpop.f32.mrf.mxu1 }
 0x297   : > { %v3931_v8 = vadd.f32 %v3930_v55, %v3887_v53 }
 0x2cf   : > { %v3967_v31 = vpop.f32.mrf.mxu0 }
 0x2d0   : > { %v4010_v32 = vpop.f32.mrf.mxu1  ;;  %v3968_v1 = vadd.f32 %v3967_v31, %v3925_v0 }
 0x2d1   : > { %v3969_v57 = vpop.f32.mrf.mxu0 }
 0x2d2   : > { %v4012_v58 = vpop.f32.mrf.mxu1  ;;  %v3970_v7 = vadd.f32 %v3969_v57, %v3927_v6  ;;  %v4011_v11 = vadd.f32 %v4010_v32, %v3968_v1 }
 0x2d3   : > { %v3971_v60 = vpop.f32.mrf.mxu0 }
 0x2d4   : > { %v4014_v59 = vpop.f32.mrf.mxu1  ;;  %v3972_v12 = vadd.f32 %v3971_v60, %v3929_v4  ;;  %v4013_v51 = vadd.f32 %v4012_v58, %v3970_v7 }
 0x2d5   : > { %v3973_v61 = vpop.f32.mrf.mxu0 }
 0x2d6   : > { %v4016_v62 = vpop.f32.mrf.mxu1  ;;  %v3974_v52 = vadd.f32 %v3973_v61, %v3931_v8  ;;  %v4015_v14 = vadd.f32 %v4014_v59, %v3972_v12 }
 0x2d8   : > { %v4017_v18 = vadd.f32 %v4016_v62, %v3974_v52 }
 0x30f   : > { %v4053_v63 = vpop.f32.mrf.mxu0 }
 0x310   : > { %v4096_v5 = vpop.f32.mrf.mxu1  ;;  %v4054_v13 = vadd.f32 %v4053_v63, %v4011_v11 }
 0x311   : > { %v4055_v2 = vpop.f32.mrf.mxu0 }
 0x312   : > { %v4098_v3 = vpop.f32.mrf.mxu1  ;;  %v4056_v15 = vadd.f32 %v4055_v2, %v4013_v51  ;;  %v4097_v54 = vadd.f32 %v4096_v5, %v4054_v13 }
 0x313   : > { %v4057_v47 = vpop.f32.mrf.mxu0 }
 0x314   : > { %v4100_v48 = vpop.f32.mrf.mxu1  ;;  %v4058_v56 = vadd.f32 %v4057_v47, %v4015_v14  ;;  %v4099_v23 = vadd.f32 %v4098_v3, %v4056_v15 }
 0x315   : > { %v4059_v16 = vpop.f32.mrf.mxu0 }
 0x316   : > { %v4102_v17 = vpop.f32.mrf.mxu1  ;;  %v4060_v24 = vadd.f32 %v4059_v16, %v4017_v18  ;;  %v4101_v27 = vadd.f32 %v4100_v48, %v4058_v56 }
 0x318   : > { %v4103_v49 = vadd.f32 %v4102_v17, %v4060_v24 }
 0x34f   : > { %v4139_v19 = vpop.f32.mrf.mxu0 }
 0x350   : > { %v4182_v20 = vpop.f32.mrf.mxu1  ;;  %v4140_v25 = vadd.f32 %v4139_v19, %v4097_v54 }
 0x351   : > { %v4141_v9 = vpop.f32.mrf.mxu0 }
 0x352   : > { %v4184_v10 = vpop.f32.mrf.mxu1  ;;  %v4183_v28 = vadd.f32 %v4182_v20, %v4140_v25  ;;  %v4142_v33 = vadd.f32 %v4141_v9, %v4099_v23 }
 0x353   : > { %v4143_v44 = vpop.f32.mrf.mxu0 }
 0x354   : > { %v4186_v35 = vpop.f32.mrf.mxu1  ;;  %v4193_v50 = vadd.f32 %v4183_v28, %v329_v26  ;;  %v4185_v37 = vadd.f32 %v4184_v10, %v4142_v33  ;;  %v4144_v38 = vadd.f32 %v4143_v44, %v4101_v27 }
 0x355   : > { %v4145_v22 = vpop.f32.mrf.mxu0 }
 0x356   : > { %4201 = vst [vmem:[#allocation11 + $0x10] sm:$0xff] %v4193_v50  ;;  %v4194_v39 = vadd.f32 %v4185_v37, %v330_v42  ;;  %v4187_v40 = vadd.f32 %v4186_v35, %v4144_v38  ;;  %v4146_v41 = vadd.f32 %v4145_v22, %v4103_v49  ;;  %v4188_v36 = vpop.f32.mrf.mxu1 }
 0x358   : > { %4202 = vst [vmem:[#allocation11 + $0x18] sm:$0xff] %v4194_v39  ;;  %v4197_v43 = vadd.f32 %v4187_v40, %v333_v21  ;;  %v4189_v29 = vadd.f32 %v4188_v36, %v4146_v41  ;;  %4210 = sbr.rel (%p7298_p13) target bundleno = 1635 (0x663), region = 68 }
 0x35a   : > { %4205 = vst [vmem:[#allocation11 + $0x30] sm:$0xff] %v4197_v43  ;;  %v4198_v30 = vadd.f32 %v4189_v29, %v334_v34 }
 0x35c   : > { %4206 = vst [vmem:[#allocation11 + $0x38] sm:$0xff] %v4198_v30 }
 0x35d   : > { %v8420_v45 = vld [vmem:[#allocation7 + $0xe4] ss:$16 sps:$4 sm:$0xff]   ;;  %v8424_v53 = vld [vmem:[#allocation7 + $0xe0] ss:$16 sps:$4 sm:$0xff]   ;;  %v9947_v44 = vld [vmem:[#allocation11 + $0x8] sm:$0xff] }
 0x35e   : > { %v8422_v46 = vld [vmem:[#allocation7 + $0x2e4] ss:$16 sps:$4 sm:$0xff]   ;;  %5164 = vmatprep.subr.bf16.mxu0 %v8420_v45  ;;  %v8425_v55 = vld [vmem:[#allocation7 + $0x2e0] ss:$16 sps:$4 sm:$0xff]   ;;  %v9949_v35 = vld [vmem:[#allocation11 + $0x28] sm:$0xff] }
 0x35f   : > { %5207 = vmatprep.subr.bf16.mxu1 %v8422_v46  ;;  %v8426_v31 = vld [vmem:[#allocation7 + $0xc4] ss:$16 sps:$4 sm:$0xff]   ;;  %5165 = vmatpush1.bf16.msra.mxu0 %v8424_v53  ;;  %v8430_v57 = vld [vmem:[#allocation7 + $0xc0] ss:$16 sps:$4 sm:$0xff]   ;;  %v4230_v49 = vadd.f32 %v9949_v35, %v9947_v44  ;;  %v9953_v50 = vld [vmem:[#allocation11 + $0x18] sm:$0xff] }
 0x360   : > { %5208 = vmatpush1.bf16.msra.mxu1 %v8425_v55  ;;  %v8428_v32 = vld [vmem:[#allocation7 + $0x2c4] ss:$16 sps:$4 sm:$0xff]   ;;  %5166 = vmatprep.subr.bf16.mxu0 %v8426_v31  ;;  %v8431_v58 = vld [vmem:[#allocation7 + $0x2c0] ss:$16 sps:$4 sm:$0xff]  }
 0x361   : > { %5209 = vmatprep.subr.bf16.mxu1 %v8428_v32  ;;  %v8432_v60 = vld [vmem:[#allocation7 + $0xa4] ss:$16 sps:$4 sm:$0xff]   ;;  %v8436_v61 = vld [vmem:[#allocation7 + $0xa0] ss:$16 sps:$4 sm:$0xff]   ;;  %v4231_v40 = vrot.slane %v4230_v49, 4 }
 0x362   : > { %v8434_v59 = vld [vmem:[#allocation7 + $0x2a4] ss:$16 sps:$4 sm:$0xff]   ;;  %v8437_v62 = vld [vmem:[#allocation7 + $0x2a0] ss:$16 sps:$4 sm:$0xff]  }
 0x363   : > { %5167 = vmatpush1.bf16.msra.mxu0 %v8430_v57  ;;  %v8438_v63 = vld [vmem:[#allocation7 + $0x84] ss:$16 sps:$4 sm:$0xff]   ;;  %v8442_v0 = vld [vmem:[#allocation7 + $0x80] ss:$16 sps:$4 sm:$0xff]   ;;  %v9955_v37 = vld [vmem:[#allocation11 + $0x38] sm:$0xff]  ;;  %v4232_v30 = vadd.f32 %v4231_v40, %v4230_v49 }
 0x364   : > { %5210 = vmatpush1.bf16.msra.mxu1 %v8431_v58  ;;  %5168 = vmatprep.subr.bf16.mxu0 %v8432_v60  ;;  %v8440_v5 = vld [vmem:[#allocation7 + $0x284] ss:$16 sps:$4 sm:$0xff]   ;;  %v8443_v6 = vld [vmem:[#allocation7 + $0x280] ss:$16 sps:$4 sm:$0xff]   ;;  %v4244_v22 = vadd.f32 %v9955_v37, %v9953_v50 }
 0x365   : > { %5211 = vmatprep.subr.bf16.mxu1 %v8434_v59  ;;  %v8444_v1 = vld [vmem:[#allocation7 + $0x64] ss:$16 sps:$4 sm:$0xff]   ;;  %v8448_v3 = vld [vmem:[#allocation7 + $0x60] ss:$16 sps:$4 sm:$0xff]   ;;  %v4233_v32 = vrot.slane %v4232_v30, 2 }
 0x366   : > { %v8446_v2 = vld [vmem:[#allocation7 + $0x264] ss:$16 sps:$4 sm:$0xff]   ;;  %v8449_v4 = vld [vmem:[#allocation7 + $0x260] ss:$16 sps:$4 sm:$0xff]   ;;  %v4245_v36 = vrot.slane %v4244_v22, 4 }
 0x367   : > { %5169 = vmatpush1.bf16.msra.mxu0 %v8436_v61  ;;  %v8450_v7 = vld [vmem:[#allocation7 + $0x44] ss:$16 sps:$4 sm:$0xff]   ;;  %v8454_v11 = vld [vmem:[#allocation7 + $0x40] ss:$16 sps:$4 sm:$0xff]  }
 0x368   : > { %5212 = vmatpush1.bf16.msra.mxu1 %v8437_v62  ;;  %5170 = vmatprep.subr.bf16.mxu0 %v8438_v63  ;;  %v8452_v8 = vld [vmem:[#allocation7 + $0x244] ss:$16 sps:$4 sm:$0xff]   ;;  %v8455_v12 = vld [vmem:[#allocation7 + $0x240] ss:$16 sps:$4 sm:$0xff]   ;;  %v4246_v53 = vadd.f32 %v4245_v36, %v4244_v22  ;;  %v4234_v63 = vadd.f32 %v4233_v32, %v4232_v30 }
 0x369   : > { %5213 = vmatprep.subr.bf16.mxu1 %v8440_v5  ;;  %v8456_v47 = vld [vmem:[#allocation7 + $0x24] ss:$16 sps:$4 sm:$0xff]   ;;  %v8460_v51 = vld [vmem:[#allocation7 + $0x20] ss:$16 sps:$4 sm:$0xff]  }
 0x36a   : > { %v8458_v48 = vld [vmem:[#allocation7 + $0x224] ss:$16 sps:$4 sm:$0xff]   ;;  %v8461_v52 = vld [vmem:[#allocation7 + $0x220] ss:$16 sps:$4 sm:$0xff]   ;;  %v4247_v60 = vrot.slane %v4246_v53, 2 }
 0x36b   : > { %5171 = vmatpush1.bf16.msra.mxu0 %v8442_v0  ;;  %v8462_v13 = vld [vmem:[#allocation7 + $0x4] ss:$16 sps:$4 sm:$0xff]   ;;  %v8466_v15 = vld [vmem:[#allocation7] ss:$16 sps:$4 sm:$0xff]  }
 0x36c   : > { %5214 = vmatpush1.bf16.msra.mxu1 %v8443_v6  ;;  %5172 = vmatprep.subr.bf16.mxu0 %v8444_v1  ;;  %v8464_v14 = vld [vmem:[#allocation7 + $0x204] ss:$16 sps:$4 sm:$0xff]   ;;  %v8467_v16 = vld [vmem:[#allocation7 + $0x200] ss:$16 sps:$4 sm:$0xff]   ;;  %v4248_v6 = vadd.f32 %v4247_v60, %v4246_v53 }
 0x36d   : > { %5215 = vmatprep.subr.bf16.mxu1 %v8446_v2  ;;  %v8468_v17 = vld [vmem:[#allocation7 + $0x1e4] ss:$16 sps:$4 sm:$0xff]   ;;  %v8472_v54 = vld [vmem:[#allocation7 + $0x1e0] ss:$16 sps:$4 sm:$0xff]   ;;  %v4235_v2 = vrot.slane %v4234_v63, 1 }
 0x36e   : > { %v8470_v18 = vld [vmem:[#allocation7 + $0x3e4] ss:$16 sps:$4 sm:$0xff]   ;;  %v8473_v56 = vld [vmem:[#allocation7 + $0x3e0] ss:$16 sps:$4 sm:$0xff]  }
 0x36f   : > { %5173 = vmatpush1.bf16.msra.mxu0 %v8448_v3  ;;  %v8474_v19 = vld [vmem:[#allocation7 + $0x1c4] ss:$16 sps:$4 sm:$0xff]   ;;  %v8478_v23 = vld [vmem:[#allocation7 + $0x1c0] ss:$16 sps:$4 sm:$0xff]  }
 0x370   : > { %5216 = vmatpush1.bf16.msra.mxu1 %v8449_v4  ;;  %5174 = vmatprep.subr.bf16.mxu0 %v8450_v7  ;;  %v8476_v20 = vld [vmem:[#allocation7 + $0x3c4] ss:$16 sps:$4 sm:$0xff]   ;;  %v8479_v24 = vld [vmem:[#allocation7 + $0x3c0] ss:$16 sps:$4 sm:$0xff]   ;;  %v4249_v7 = vrot.slane %v4248_v6, 1 }
 0x371   : > { %5217 = vmatprep.subr.bf16.mxu1 %v8452_v8  ;;  %v8480_v25 = vld [vmem:[#allocation7 + $0x1a4] ss:$16 sps:$4 sm:$0xff]   ;;  %v8484_v9 = vld [vmem:[#allocation7 + $0x1a0] ss:$16 sps:$4 sm:$0xff]  }
 0x372   : > { %v8482_v26 = vld [vmem:[#allocation7 + $0x3a4] ss:$16 sps:$4 sm:$0xff]   ;;  %v8485_v10 = vld [vmem:[#allocation7 + $0x3a0] ss:$16 sps:$4 sm:$0xff]  }
 0x373   : > { %5175 = vmatpush1.bf16.msra.mxu0 %v8454_v11  ;;  %v8486_v27 = vld [vmem:[#allocation7 + $0x184] ss:$16 sps:$4 sm:$0xff]   ;;  %v8490_v33 = vld [vmem:[#allocation7 + $0x180] ss:$16 sps:$4 sm:$0xff]  }
 0x374   : > { %5218 = vmatpush1.bf16.msra.mxu1 %v8455_v12  ;;  %5176 = vmatprep.subr.bf16.mxu0 %v8456_v47  ;;  %v8488_v28 = vld [vmem:[#allocation7 + $0x384] ss:$16 sps:$4 sm:$0xff]   ;;  %v8491_v42 = vld [vmem:[#allocation7 + $0x380] ss:$16 sps:$4 sm:$0xff]   ;;  %v4236_v47 = vadd.f32 %v4235_v2, %v4234_v63 }
 0x375   : > { %5219 = vmatprep.subr.bf16.mxu1 %v8458_v48  ;;  %v8492_v38 = vld [vmem:[#allocation7 + $0x164] ss:$16 sps:$4 sm:$0xff]   ;;  %v8496_v39 = vld [vmem:[#allocation7 + $0x160] ss:$16 sps:$4 sm:$0xff]  }
 0x376   : > { %v8494_v21 = vld [vmem:[#allocation7 + $0x364] ss:$16 sps:$4 sm:$0xff]   ;;  %v8497_v41 = vld [vmem:[#allocation7 + $0x360] ss:$16 sps:$4 sm:$0xff]  }
 0x377   : > { %5177 = vmatpush1.bf16.msra.mxu0 %v8460_v51  ;;  %v8498_v34 = vld [vmem:[#allocation7 + $0x144] ss:$16 sps:$4 sm:$0xff]   ;;  %v8502_v58 = vld [vmem:[#allocation7 + $0x140] ss:$16 sps:$4 sm:$0xff]  }
 0x378   : > { %5220 = vmatpush1.bf16.msra.mxu1 %v8461_v52  ;;  %5178 = vmatprep.subr.bf16.mxu0 %v8462_v13  ;;  %v9959_v43 = vld [vmem:[#allocation11] sm:$0xff]  ;;  %v9963_v46 = vld [vmem:[#allocation11 + $0x10] sm:$0xff]  ;;  %v4250_v52 = vadd.f32 %v4249_v7, %v4248_v6 }
 0x379   : > { %5221 = vmatprep.subr.bf16.mxu1 %v8464_v14  ;;  %v8500_v29 = vld [vmem:[#allocation7 + $0x344] ss:$16 sps:$4 sm:$0xff]   ;;  %v8503_v61 = vld [vmem:[#allocation7 + $0x340] ss:$16 sps:$4 sm:$0xff]   ;;  %v9971_v14 = vmul.f32 0.0625, %v4236_v47 }
 0x37a   : > { %v9961_v45 = vld [vmem:[#allocation11 + $0x20] sm:$0xff]  ;;  %v9967_v31 = vld [vmem:[#allocation11 + $0x30] sm:$0xff] }
 0x37b   : > { %5179 = vmatpush1.bf16.msra.mxu0 %v8466_v15  ;;  %v4223_v55 = vadd.f32 %v9961_v45, %v9959_v43  ;;  %v4237_v57 = vadd.f32 %v9967_v31, %v9963_v46  ;;  %v8504_v62 = vld [vmem:[#allocation7 + $0x124] ss:$16 sps:$4 sm:$0xff]   ;;  %v8508_v4 = vld [vmem:[#allocation7 + $0x120] ss:$16 sps:$4 sm:$0xff]  }
 0x37c   : > { %5222 = vmatpush1.bf16.msra.mxu1 %v8467_v16  ;;  %5180 = vmatprep.subr.bf16.mxu0 %v8468_v17  ;;  %v8506_v0 = vld [vmem:[#allocation7 + $0x324] ss:$16 sps:$4 sm:$0xff]   ;;  %v8509_v11 = vld [vmem:[#allocation7 + $0x320] ss:$16 sps:$4 sm:$0xff]   ;;  %v9973_v17 = vmul.f32 0.0625, %v4250_v52 }
 0x37d   : > { %5223 = vmatprep.subr.bf16.mxu1 %v8470_v18  ;;  %v4224_v59 = vrot.slane %v4223_v55, 4  ;;  %v4238_v5 = vrot.slane %v4237_v57, 4  ;;  %v8510_v12 = vld [vmem:[#allocation7 + $0x104] ss:$16 sps:$4 sm:$0xff]   ;;  %v8514_v16 = vld [vmem:[#allocation7 + $0x100] ss:$16 sps:$4 sm:$0xff]  }
 0x37e   : > { %v8512_v51 = vld [vmem:[#allocation7 + $0x304] ss:$16 sps:$4 sm:$0xff]  }
 0x37f   : > { %5181 = vmatpush2.bf16.msra.mxu0 %v8472_v54  ;;  %v4225_v1 = vadd.f32 %v4224_v59, %v4223_v55  ;;  %v4239_v3 = vadd.f32 %v4238_v5, %v4237_v57  ;;  %v8515_v54 = vld [vmem:[#allocation7 + $0x300] ss:$16 sps:$4 sm:$0xff]  }
 0x380   : > { %5224 = vmatpush2.bf16.msra.mxu1 %v8473_v56  ;;  %5182 = vmatprep.subr.bf16.mxu0 %v8474_v19  ;;  %v4257_v56 = vsub.f32 %v9947_v44, %v9971_v14  ;;  %v4261_v19 = vsub.f32 %v9949_v35, %v9971_v14 }
 0x381   : > { %5225 = vmatprep.subr.bf16.mxu1 %v8476_v20  ;;  %v4226_v8 = vrot.slane %v4225_v1, 2  ;;  %v4240_v48 = vrot.slane %v4239_v3, 2  ;;  %v8518_v20 = vld [vmem:[#allocation7 + $0xec] ss:$16 sps:$4 sm:$0xff]  }
 0x383   : > { %5183 = vmatpush2.bf16.msra.mxu0 %v8478_v23  ;;  %v4227_v13 = vadd.f32 %v4226_v8, %v4225_v1  ;;  %v4241_v15 = vadd.f32 %v4240_v48, %v4239_v3 }
 0x384   : > { %5226 = vmatpush2.bf16.msra.mxu1 %v8479_v24  ;;  %5184 = vmatprep.subr.bf16.mxu0 %v8480_v25  ;;  %v4259_v24 = vsub.f32 %v9953_v50, %v9973_v17  ;;  %v4263_v25 = vsub.f32 %v9955_v37, %v9973_v17 }
 0x385   : > { %5227 = vmatprep.subr.bf16.mxu1 %v8482_v26  ;;  %v4228_v18 = vrot.slane %v4227_v13, 1  ;;  %v4242_v23 = vrot.slane %v4241_v15, 1  ;;  %v8521_v26 = vld [vmem:[#allocation7 + $0x2ec] ss:$16 sps:$4 sm:$0xff]  }
 0x387   : > { %5185 = vmatpush2.bf16.msra.mxu0 %v8484_v9  ;;  %v4229_v9 = vadd.f32 %v4228_v18, %v4227_v13 }
 0x388   : > { %5228 = vmatpush2.bf16.msra.mxu1 %v8485_v10  ;;  %5186 = vmatprep.subr.bf16.mxu0 %v8486_v27  ;;  %v4265_v10 = vmul.f32 %v4257_v56, %v4257_v56  ;;  %v4269_v27 = vmul.f32 %v4261_v19, %v4261_v19 }
 0x389   : > { %5229 = vmatprep.subr.bf16.mxu1 %v8488_v28  ;;  %v4243_v28 = vadd.f32 %v4242_v23, %v4241_v15  ;;  %v9983_v49 = vmul.f32 0.0625, %v4229_v9  ;;  %v4212_v9 = vld [vmem:[#allocation10 + $0x8] sm:$0x3f] }
 0x38b   : > { %5187 = vmatpush2.bf16.msra.mxu0 %v8490_v33  ;;  %v4267_v33 = vmul.f32 %v4259_v24, %v4259_v24  ;;  %v4260_v40 = vsub.f32 %v9961_v45, %v9983_v49  ;;  %v4336_v24 = vlaneseq }
 0x38c   : > { %5230 = vmatpush2.bf16.msra.mxu1 %v8491_v42  ;;  %5188 = vmatprep.subr.bf16.mxu0 %v8492_v38  ;;  %v4271_v42 = vmul.f32 %v4263_v25, %v4263_v25  ;;  %v4279_v38 = vadd.f32 %v4269_v27, %v4265_v10  ;;  %v4214_v10 = vld [vmem:[#allocation10 + $0x18] sm:$0x3f] }
 0x38d   : > { %5231 = vmatprep.subr.bf16.mxu1 %v8494_v21  ;;  %v9985_v21 = vmul.f32 0.0625, %v4243_v28  ;;  %v4268_v53 = vmul.f32 %v4260_v40, %v4260_v40 }
 0x38e   : > { %v4293_v22 = vadd.f32 %v4271_v42, %v4267_v33 }
 0x38f   : > { %5189 = vmatpush2.bf16.msra.mxu0 %v8496_v39  ;;  %v4256_v39 = vsub.f32 %v9959_v43, %v9983_v49  ;;  %v4262_v36 = vsub.f32 %v9967_v31, %v9985_v21 }
 0x390   : > { %5232 = vmatpush2.bf16.msra.mxu1 %v8497_v41  ;;  %5190 = vmatprep.subr.bf16.mxu0 %v8498_v34  ;;  %v4280_v41 = vrot.slane %v4279_v38, 4  ;;  %v4258_v34 = vsub.f32 %v9963_v46, %v9985_v21 }
 0x391   : > { %5233 = vmatprep.subr.bf16.mxu1 %v8500_v29  ;;  %v4294_v29 = vrot.slane %v4293_v22, 4  ;;  %v4264_v30 = vmul.f32 %v4256_v39, %v4256_v39  ;;  %v4270_v57 = vmul.f32 %v4262_v36, %v4262_v36  ;;  %v4213_v39 = vld [vmem:[#allocation10 + $0x10] sm:$0x3f] }
 0x392   : > { %v4281_v55 = vadd.f32 %v4280_v41, %v4279_v38  ;;  %v4266_v32 = vmul.f32 %v4258_v34, %v4258_v34  ;;  %v9998_v38 = vld [vmem:[#allocation10] sm:$0x3f] }
 0x393   : > { %5191 = vmatpush2.bf16.msra.mxu0 %v8502_v58  ;;  %v4295_v58 = vadd.f32 %v4294_v29, %v4293_v22  ;;  %v4272_v60 = vadd.f32 %v4268_v53, %v4264_v30 }
 0x394   : > { %5234 = vmatpush2.bf16.msra.mxu1 %v8503_v61  ;;  %5192 = vmatprep.subr.bf16.mxu0 %v8504_v62  ;;  %v4282_v59 = vrot.slane %v4281_v55, 2  ;;  %v4286_v61 = vadd.f32 %v4270_v57, %v4266_v32 }
 0x395   : > { %5235 = vmatprep.subr.bf16.mxu1 %v8506_v0  ;;  %v4296_v62 = vrot.slane %v4295_v58, 2  ;;  %v4273_v63 = vrot.slane %v4272_v60, 4 }
 0x396   : > { %v4283_v5 = vadd.f32 %v4282_v59, %v4281_v55  ;;  %v4287_v0 = vrot.slane %v4286_v61, 4 }
 0x397   : > { %5193 = vmatpush2.bf16.msra.mxu0 %v8508_v4  ;;  %v4297_v6 = vadd.f32 %v4296_v62, %v4295_v58  ;;  %v4274_v1 = vadd.f32 %v4273_v63, %v4272_v60 }
 0x398   : > { %5236 = vmatpush2.bf16.msra.mxu1 %v8509_v11  ;;  %5194 = vmatprep.subr.bf16.mxu0 %v8510_v12  ;;  %v4284_v2 = vrot.slane %v4283_v5, 1  ;;  %v4288_v3 = vadd.f32 %v4287_v0, %v4286_v61 }
 0x399   : > { %5237 = vmatprep.subr.bf16.mxu1 %v8512_v51  ;;  %v4298_v4 = vrot.slane %v4297_v6, 1  ;;  %v4275_v7 = vrot.slane %v4274_v1, 2 }
 0x39a   : > { %v4285_v8 = vadd.f32 %v4284_v2, %v4283_v5  ;;  %v4289_v11 = vrot.slane %v4288_v3, 2 }
 0x39b   : > { %5195 = vmatpush2.bf16.msra.mxu0 %v8514_v16  ;;  %v4299_v12 = vadd.f32 %v4298_v4, %v4297_v6  ;;  %v4276_v47 = vadd.f32 %v4275_v7, %v4274_v1 }
 0x39c   : > { %5238 = vmatpush2.bf16.msra.mxu1 %v8515_v54  ;;  %5250 = vmatprep.subr.bf16.mxu0 %v8518_v20  ;;  %v4301_v48 = vmul.f32 0.0625, %v4285_v8  ;;  %v4290_v51 = vadd.f32 %v4289_v11, %v4288_v3 }
 0x39d   : > { %5293 = vmatprep.subr.bf16.mxu1 %v8521_v26  ;;  %v4303_v52 = vmul.f32 0.0625, %v4299_v12  ;;  %v4277_v13 = vrot.slane %v4276_v47, 1  ;;  %v9995_v26 = vshrl.u32 %v4336_v24, 7 }
 0x39e   : > { %v4305_v15 = vadd.f32 1e-05, %v4301_v48  ;;  %v4291_v16 = vrot.slane %v4290_v51, 1 }
 0x39f   : > { %v4307_v18 = vadd.f32 1e-05, %v4303_v52  ;;  %v4278_v54 = vadd.f32 %v4277_v13, %v4276_v47  ;;  %v4338_v27 = vsub.s32 0, %v9995_v26  ;;  %v4362_v53 = vsub.s32 1, %v9995_v26 }
 0x3a0   : > { %8804 = vrsqrt.f32 %v4305_v15  ;;  %v4292_v56 = vadd.f32 %v4291_v16, %v4290_v51 }
 0x3a1   : > { %8806 = vrsqrt.f32 %v4307_v18  ;;  %v4300_v19 = vmul.f32 0.0625, %v4278_v54 }
 0x3a2   : > { %v4302_v20 = vmul.f32 0.0625, %v4292_v56  ;;  %v8519_v56 = vld [vmem:[#allocation7 + $0x2e8] ss:$16 sps:$4 sm:$0xff]  }
 0x3a3   : > { %v4304_v23 = vadd.f32 1e-05, %v4300_v19 }
 0x3a4   : > { %v4306_v25 = vadd.f32 1e-05, %v4302_v20 }
 0x3a5   : > { %8808 = vrsqrt.f32 %v4304_v23  ;;  %v8524_v23 = vld [vmem:[#allocation7 + $0xcc] ss:$16 sps:$4 sm:$0xff]  }
 0x3a6   : > { %8810 = vrsqrt.f32 %v4306_v25 }
 0x3ad   : > { %v8805_v28 = vpop.eup %8804 }
 0x3ae   : > { %v8807_v33 = vpop.eup %8806  ;;  %v4313_v42 = vmul.f32 %v8805_v28, %v4212_v9  ;;  %v8522_v28 = vld [vmem:[#allocation7 + $0xc8] ss:$16 sps:$4 sm:$0xff]  }
 0x3af   : > { %v4315_v22 = vmul.f32 %v8807_v33, %v4214_v10  ;;  %v8525_v33 = vld [vmem:[#allocation7 + $0x2c8] ss:$16 sps:$4 sm:$0xff]  }
 0x3b0   : > { %v4317_v40 = vmul.f32 %v4313_v42, %v9971_v14  ;;  %v4343_v41 = vrot.slane %v4313_v42, %v4338_v27  ;;  %v8530_v42 = vld [vmem:[#allocation7 + $0xac] ss:$16 sps:$4 sm:$0xff]  }
 0x3b1   : > { %v4319_v34 = vmul.f32 %v4315_v22, %v9973_v17  ;;  %v4351_v36 = vrot.slane %v4315_v22, %v4338_v27  ;;  %v8533_v22 = vld [vmem:[#allocation7 + $0x2ac] ss:$16 sps:$4 sm:$0xff]  }
 0x3b2   : > { %v8809_v29 = vpop.eup %8808  ;;  %v4325_v30 = vrot.slane %v4317_v40, 7  ;;  %v4353_v32 = vmul.f32 %v4343_v41, %v9947_v44  ;;  %v4357_v59 = vmul.f32 %v4343_v41, %v9949_v35  ;;  %v8531_v40 = vld [vmem:[#allocation7 + $0x2a8] ss:$16 sps:$4 sm:$0xff]   ;;  %v8536_v41 = vld [vmem:[#allocation7 + $0x8c] ss:$16 sps:$4 sm:$0xff]  }
 0x3b3   : > { %v8811_v55 = vpop.eup %8810  ;;  %v4327_v57 = vrot.slane %v4319_v34, 7  ;;  %v4312_v58 = vmul.f32 %v8809_v29, %v9998_v38  ;;  %v4355_v61 = vmul.f32 %v4351_v36, %v9953_v50  ;;  %v4359_v17 = vmul.f32 %v4351_v36, %v9955_v37  ;;  %v8539_v34 = vld [vmem:[#allocation7 + $0x28c] ss:$16 sps:$4 sm:$0xff]   ;;  %v8534_v36 = vld [vmem:[#allocation7 + $0x88] ss:$16 sps:$4 sm:$0xff]  }
 0x3b4   : > { %v4333_v60 = vsub.f32 %v4212_v9, %v4325_v30  ;;  %v4314_v14 = vmul.f32 %v8811_v55, %v4213_v39  ;;  %v8527_v9 = vld [vmem:[#allocation7 + $0x2cc] ss:$16 sps:$4 sm:$0xff]   ;;  %v8537_v29 = vld [vmem:[#allocation7 + $0x288] ss:$16 sps:$4 sm:$0xff]  }
 0x3b5   : > { %v4335_v62 = vsub.f32 %v4214_v10, %v4327_v57  ;;  %v4316_v63 = vmul.f32 %v4312_v58, %v9983_v49  ;;  %v4339_v5 = vrot.slane %v4312_v58, %v4338_v27  ;;  %v8542_v30 = vld [vmem:[#allocation7 + $0x6c] ss:$16 sps:$4 sm:$0xff]   ;;  %v8540_v55 = vld [vmem:[#allocation7 + $0x68] ss:$16 sps:$4 sm:$0xff]  }
 0x3b6   : > { %v4367_v0 = vrot.slane %v4333_v60, %v4362_v53  ;;  %v4318_v6 = vmul.f32 %v4314_v14, %v9985_v21  ;;  %v4347_v1 = vrot.slane %v4314_v14, %v4338_v27  ;;  %v8548_v57 = vld [vmem:[#allocation7 + $0x4c] ss:$16 sps:$4 sm:$0xff]   ;;  %v8546_v60 = vld [vmem:[#allocation7 + $0x48] ss:$16 sps:$4 sm:$0xff]  }
 0x3b7   : > { %v4375_v44 = vrot.slane %v4335_v62, %v4362_v53  ;;  %v4324_v2 = vrot.slane %v4316_v63, 7  ;;  %v4352_v3 = vmul.f32 %v4339_v5, %v9959_v43  ;;  %v4356_v50 = vmul.f32 %v4339_v5, %v9961_v45  ;;  %v8551_v58 = vld [vmem:[#allocation7 + $0x24c] ss:$16 sps:$4 sm:$0xff]   ;;  %v8552_v62 = vld [vmem:[#allocation7 + $0x28] ss:$16 sps:$4 sm:$0xff]  }
 0x3b8   : > { %v10011_v4 = vadd.f32 %v4367_v0, %v4353_v32  ;;  %v10013_v35 = vadd.f32 %v4367_v0, %v4357_v59  ;;  %v4326_v7 = vrot.slane %v4318_v6, 7  ;;  %v4354_v21 = vmul.f32 %v4347_v1, %v9963_v46  ;;  %v8543_v32 = vld [vmem:[#allocation7 + $0x268] ss:$16 sps:$4 sm:$0xff]   ;;  %v8557_v14 = vld [vmem:[#allocation7 + $0x22c] ss:$16 sps:$4 sm:$0xff]  }
 0x3b9   : > { %v10016_v8 = vadd.f32 %v4375_v44, %v4355_v61  ;;  %v10018_v37 = vadd.f32 %v4375_v44, %v4359_v17  ;;  %v4332_v49 = vsub.f32 %v9998_v38, %v4324_v2  ;;  %v4358_v47 = vmul.f32 %v4347_v1, %v9967_v31  ;;  %v8516_v31 = vld [vmem:[#allocation7 + $0xe8] ss:$16 sps:$4 sm:$0xff]   ;;  %v8554_v61 = vld [vmem:[#allocation7 + $0x2c] ss:$16 sps:$4 sm:$0xff]  }
 0x3ba   : > { %v4385_v11 = vmax.f32 %v10011_v4, 0.0  ;;  %v4389_v12 = vmax.f32 %v10013_v35, 0.0  ;;  %v4334_v43 = vsub.f32 %v4213_v39, %v4326_v7  ;;  %v8528_v39 = vld [vmem:[#allocation7 + $0xa8] ss:$16 sps:$4 sm:$0xff]   ;;  %v8560_v63 = vld [vmem:[#allocation7 + $0xc] ss:$16 sps:$4 sm:$0xff]  }
 0x3bb   : > { %v4387_v48 = vmax.f32 %v10016_v8, 0.0  ;;  %v4391_v45 = vmax.f32 %v10018_v37, 0.0  ;;  %v4363_v51 = vrot.slane %v4332_v49, %v4362_v53  ;;  %v8549_v59 = vld [vmem:[#allocation7 + $0x248] ss:$16 sps:$4 sm:$0xff]   ;;  %v8563_v5 = vld [vmem:[#allocation7 + $0x20c] ss:$16 sps:$4 sm:$0xff]  }
 0x3bc   : > { %v4393_v52 = vpack.c.bf16 %v4389_v12, %v4385_v11  ;;  %v4371_v13 = vrot.slane %v4334_v43, %v4362_v53  ;;  %v8545_v53 = vld [vmem:[#allocation7 + $0x26c] ss:$16 sps:$4 sm:$0xff]   ;;  %v8555_v17 = vld [vmem:[#allocation7 + $0x228] ss:$16 sps:$4 sm:$0xff]  }
 0x3bd   : > { %v4395_v46 = vpack.c.bf16 %v4391_v45, %v4387_v48  ;;  %v10035_v15 = vadd.f32 %v4363_v51, %v4352_v3  ;;  %v10037_v16 = vadd.f32 %v4363_v51, %v4356_v50  ;;  %v8558_v0 = vld [vmem:[#allocation7 + $0x8] ss:$16 sps:$4 sm:$0xff]   ;;  %v8566_v1 = vld [vmem:[#allocation7 + $0x1ec] ss:$16 sps:$4 sm:$0xff]  }
 0x3be   : > { %5196 = vmatprep.mubr.bf16.mxu0 %v4393_v52  ;;  %v10039_v18 = vadd.f32 %v4371_v13, %v4354_v21  ;;  %v10041_v54 = vadd.f32 %v4371_v13, %v4358_v47  ;;  %v8561_v6 = vld [vmem:[#allocation7 + $0x208] ss:$16 sps:$4 sm:$0xff]   ;;  %v8569_v44 = vld [vmem:[#allocation7 + $0x3ec] ss:$16 sps:$4 sm:$0xff]  }
 0x3bf   : > { %5239 = vmatprep.mubr.bf16.mxu1 %v4395_v46  ;;  %v4384_v19 = vmax.f32 %v10035_v15, 0.0  ;;  %v4388_v20 = vmax.f32 %v10037_v16, 0.0  ;;  %v8564_v2 = vld [vmem:[#allocation7 + $0x1e8] ss:$16 sps:$4 sm:$0xff]   ;;  %v8572_v50 = vld [vmem:[#allocation7 + $0x1cc] ss:$16 sps:$4 sm:$0xff]  }
 0x3c0   : > { %v4386_v24 = vmax.f32 %v10039_v18, 0.0  ;;  %v4390_v25 = vmax.f32 %v10041_v54, 0.0  ;;  %v8567_v3 = vld [vmem:[#allocation7 + $0x3e8] ss:$16 sps:$4 sm:$0xff]   ;;  %v8575_v7 = vld [vmem:[#allocation7 + $0x3cc] ss:$16 sps:$4 sm:$0xff]  }
 0x3c1   : > { %v10051_v10 = vpack.c.bf16 %v4388_v20, %v4384_v19  ;;  %v8570_v49 = vld [vmem:[#allocation7 + $0x1c8] ss:$16 sps:$4 sm:$0xff]   ;;  %v8578_v43 = vld [vmem:[#allocation7 + $0x1ac] ss:$16 sps:$4 sm:$0xff]  }
 0x3c2   : > { %v10057_v27 = vpack.c.bf16 %v4390_v25, %v4386_v24  ;;  %v8573_v21 = vld [vmem:[#allocation7 + $0x3c8] ss:$16 sps:$4 sm:$0xff]   ;;  %v8581_v47 = vld [vmem:[#allocation7 + $0x3ac] ss:$16 sps:$4 sm:$0xff]  }
 0x3c3   : > { %5197 = vmatmul.mubr.bf16.vlgmr.msra.gmra.mxu0 %v10051_v10  ;;  %v8576_v51 = vld [vmem:[#allocation7 + $0x1a8] ss:$16 sps:$4 sm:$0xff]   ;;  %v8584_v13 = vld [vmem:[#allocation7 + $0x18c] ss:$16 sps:$4 sm:$0xff]  }
 0x3c4   : > { %5240 = vmatmul.mubr.bf16.vlgmr.msra.gmra.mxu1 %v10057_v27  ;;  %5251 = vmatpush1.bf16.msra.mxu0 %v8516_v31  ;;  %v8582_v31 = vld [vmem:[#allocation7 + $0x188] ss:$16 sps:$4 sm:$0xff]   ;;  %v8761_v54 = vld [vmem:[#allocation8 + $0x2cc] ss:$16 sps:$4 sm:$0xff]  }
 0x3c5   : > { %5294 = vmatpush1.bf16.msra.mxu1 %v8519_v56  ;;  %5252 = vmatprep.subr.bf16.mxu0 %v8524_v23  ;;  %v8585_v56 = vld [vmem:[#allocation7 + $0x388] ss:$16 sps:$4 sm:$0xff]   ;;  %v8590_v23 = vld [vmem:[#allocation7 + $0x16c] ss:$16 sps:$4 sm:$0xff]  }
 0x3c6   : > { %5295 = vmatprep.subr.bf16.mxu1 %v8527_v9  ;;  %5282 = vmatprep.mubr.bf16.mxu0 %v4393_v52  ;;  %v8579_v52 = vld [vmem:[#allocation7 + $0x3a8] ss:$16 sps:$4 sm:$0xff]   ;;  %v8593_v9 = vld [vmem:[#allocation7 + $0x36c] ss:$16 sps:$4 sm:$0xff]  }
 0x3c7   : > { %5325 = vmatprep.mubr.bf16.mxu1 %v4395_v46  ;;  %v8587_v46 = vld [vmem:[#allocation7 + $0x38c] ss:$16 sps:$4 sm:$0xff]   ;;  %v8669_v4 = vld [vmem:[#allocation8 + $0xc8] ss:$16 sps:$4 sm:$0xff]  }
 0x3c8   : > { %5253 = vmatpush1.bf16.msra.mxu0 %v8522_v28  ;;  %v8588_v28 = vld [vmem:[#allocation7 + $0x168] ss:$16 sps:$4 sm:$0xff]   ;;  %v8764_v37 = vld [vmem:[#allocation8 + $0x2ac] ss:$16 sps:$4 sm:$0xff]  }
 0x3c9   : > { %5296 = vmatpush1.bf16.msra.mxu1 %v8525_v33  ;;  %5254 = vmatprep.subr.bf16.mxu0 %v8530_v42  ;;  %v8591_v33 = vld [vmem:[#allocation7 + $0x368] ss:$16 sps:$4 sm:$0xff]   ;;  %v8596_v42 = vld [vmem:[#allocation7 + $0x14c] ss:$16 sps:$4 sm:$0xff]  }
 0x3ca   : > { %5297 = vmatprep.subr.bf16.mxu1 %v8533_v22  ;;  %v8599_v22 = vld [vmem:[#allocation7 + $0x34c] ss:$16 sps:$4 sm:$0xff]   ;;  %v8759_v8 = vld [vmem:[#allocation8 + $0x2c8] ss:$16 sps:$4 sm:$0xff]  }
 0x3cc   : > { %5255 = vmatpush1.bf16.msra.mxu0 %v8528_v39  ;;  %v8594_v39 = vld [vmem:[#allocation7 + $0x148] ss:$16 sps:$4 sm:$0xff]  }
 0x3cd   : > { %5298 = vmatpush1.bf16.msra.mxu1 %v8531_v40  ;;  %5256 = vmatprep.subr.bf16.mxu0 %v8536_v41  ;;  %v8597_v40 = vld [vmem:[#allocation7 + $0x348] ss:$16 sps:$4 sm:$0xff]   ;;  %v8602_v41 = vld [vmem:[#allocation7 + $0x12c] ss:$16 sps:$4 sm:$0xff]  }
 0x3ce   : > { %5299 = vmatprep.subr.bf16.mxu1 %v8539_v34  ;;  %v8605_v34 = vld [vmem:[#allocation7 + $0x32c] ss:$16 sps:$4 sm:$0xff]  }
 0x3d0   : > { %5257 = vmatpush1.bf16.msra.mxu0 %v8534_v36  ;;  %v8600_v36 = vld [vmem:[#allocation7 + $0x128] ss:$16 sps:$4 sm:$0xff]  }
 0x3d1   : > { %5300 = vmatpush1.bf16.msra.mxu1 %v8537_v29  ;;  %5258 = vmatprep.subr.bf16.mxu0 %v8542_v30  ;;  %v8603_v29 = vld [vmem:[#allocation7 + $0x328] ss:$16 sps:$4 sm:$0xff]   ;;  %v8608_v30 = vld [vmem:[#allocation7 + $0x10c] ss:$16 sps:$4 sm:$0xff]  }
 0x3d2   : > { %5301 = vmatprep.subr.bf16.mxu1 %v8545_v53  ;;  %v8611_v53 = vld [vmem:[#allocation7 + $0x30c] ss:$16 sps:$4 sm:$0xff]  }
 0x3d4   : > { %5259 = vmatpush1.bf16.msra.mxu0 %v8540_v55  ;;  %v8606_v55 = vld [vmem:[#allocation7 + $0x108] ss:$16 sps:$4 sm:$0xff]  }
 0x3d5   : > { %5302 = vmatpush1.bf16.msra.mxu1 %v8543_v32  ;;  %5260 = vmatprep.subr.bf16.mxu0 %v8548_v57  ;;  %v8609_v32 = vld [vmem:[#allocation7 + $0x308] ss:$16 sps:$4 sm:$0xff]   ;;  %v8614_v57 = vld [vmem:[#allocation8 + $0xe4] ss:$16 sps:$4 sm:$0xff]  }
 0x3d6   : > { %5303 = vmatprep.subr.bf16.mxu1 %v8551_v58  ;;  %v8612_v58 = vld [vmem:[#allocation8 + $0xe0] ss:$16 sps:$4 sm:$0xff]  }
 0x3d8   : > { %5261 = vmatpush1.bf16.msra.mxu0 %v8546_v60  ;;  %v8617_v60 = vld [vmem:[#allocation8 + $0xc4] ss:$16 sps:$4 sm:$0xff]  }
 0x3d9   : > { %5304 = vmatpush1.bf16.msra.mxu1 %v8549_v59  ;;  %5262 = vmatprep.subr.bf16.mxu0 %v8554_v61  ;;  %v8615_v59 = vld [vmem:[#allocation8 + $0xc0] ss:$16 sps:$4 sm:$0xff]   ;;  %v8620_v61 = vld [vmem:[#allocation8 + $0xa4] ss:$16 sps:$4 sm:$0xff]  }
 0x3da   : > { %5305 = vmatprep.subr.bf16.mxu1 %v8557_v14  ;;  %v8618_v14 = vld [vmem:[#allocation8 + $0xa0] ss:$16 sps:$4 sm:$0xff]  }
 0x3dc   : > { %5263 = vmatpush1.bf16.msra.mxu0 %v8552_v62  ;;  %v8623_v62 = vld [vmem:[#allocation8 + $0x84] ss:$16 sps:$4 sm:$0xff]  }
 0x3dd   : > { %5306 = vmatpush1.bf16.msra.mxu1 %v8555_v17  ;;  %5264 = vmatprep.subr.bf16.mxu0 %v8560_v63  ;;  %v8621_v17 = vld [vmem:[#allocation8 + $0x80] ss:$16 sps:$4 sm:$0xff]   ;;  %v8626_v63 = vld [vmem:[#allocation8 + $0x64] ss:$16 sps:$4 sm:$0xff]  }
 0x3de   : > { %5307 = vmatprep.subr.bf16.mxu1 %v8563_v5  ;;  %v8627_v5 = vld [vmem:[#allocation8 + $0x40] ss:$16 sps:$4 sm:$0xff]  }
 0x3e0   : > { %5265 = vmatpush1.bf16.msra.mxu0 %v8558_v0  ;;  %v8632_v0 = vld [vmem:[#allocation8 + $0x24] ss:$16 sps:$4 sm:$0xff]  }
 0x3e1   : > { %5308 = vmatpush1.bf16.msra.mxu1 %v8561_v6  ;;  %5266 = vmatprep.subr.bf16.mxu0 %v8566_v1  ;;  %v8630_v6 = vld [vmem:[#allocation8 + $0x20] ss:$16 sps:$4 sm:$0xff]   ;;  %v8635_v1 = vld [vmem:[#allocation8 + $0x4] ss:$16 sps:$4 sm:$0xff]  }
 0x3e2   : > { %5309 = vmatprep.subr.bf16.mxu1 %v8569_v44  ;;  %v8633_v44 = vld [vmem:[#allocation8] ss:$16 sps:$4 sm:$0xff]  }
 0x3e4   : > { %5267 = vmatpush2.bf16.msra.mxu0 %v8564_v2  ;;  %v8638_v2 = vld [vmem:[#allocation8 + $0x1e4] ss:$16 sps:$4 sm:$0xff]  }
 0x3e5   : > { %5310 = vmatpush2.bf16.msra.mxu1 %v8567_v3  ;;  %5268 = vmatprep.subr.bf16.mxu0 %v8572_v50  ;;  %v8636_v3 = vld [vmem:[#allocation8 + $0x1e0] ss:$16 sps:$4 sm:$0xff]   ;;  %v8641_v50 = vld [vmem:[#allocation8 + $0x1c4] ss:$16 sps:$4 sm:$0xff]  }
 0x3e6   : > { %5311 = vmatprep.subr.bf16.mxu1 %v8575_v7  ;;  %v8639_v7 = vld [vmem:[#allocation8 + $0x1c0] ss:$16 sps:$4 sm:$0xff]  }
 0x3e8   : > { %5269 = vmatpush2.bf16.msra.mxu0 %v8570_v49  ;;  %v8644_v49 = vld [vmem:[#allocation8 + $0x1a4] ss:$16 sps:$4 sm:$0xff]  }
 0x3e9   : > { %5312 = vmatpush2.bf16.msra.mxu1 %v8573_v21  ;;  %5270 = vmatprep.subr.bf16.mxu0 %v8578_v43  ;;  %v8642_v21 = vld [vmem:[#allocation8 + $0x1a0] ss:$16 sps:$4 sm:$0xff]   ;;  %v8647_v43 = vld [vmem:[#allocation8 + $0x184] ss:$16 sps:$4 sm:$0xff]  }
 0x3ea   : > { %5313 = vmatprep.subr.bf16.mxu1 %v8581_v47  ;;  %v8645_v47 = vld [vmem:[#allocation8 + $0x180] ss:$16 sps:$4 sm:$0xff]  }
 0x3ec   : > { %5271 = vmatpush2.bf16.msra.mxu0 %v8576_v51  ;;  %v8650_v51 = vld [vmem:[#allocation8 + $0x164] ss:$16 sps:$4 sm:$0xff]  }
 0x3ed   : > { %5314 = vmatpush2.bf16.msra.mxu1 %v8579_v52  ;;  %5272 = vmatprep.subr.bf16.mxu0 %v8584_v13  ;;  %v8648_v52 = vld [vmem:[#allocation8 + $0x160] ss:$16 sps:$4 sm:$0xff]   ;;  %v8653_v13 = vld [vmem:[#allocation8 + $0x144] ss:$16 sps:$4 sm:$0xff]  }
 0x3ee   : > { %5315 = vmatprep.subr.bf16.mxu1 %v8587_v46  ;;  %v8651_v46 = vld [vmem:[#allocation8 + $0x140] ss:$16 sps:$4 sm:$0xff]  }
 0x3f0   : > { %5273 = vmatpush2.bf16.msra.mxu0 %v8582_v31  ;;  %v8656_v31 = vld [vmem:[#allocation8 + $0x124] ss:$16 sps:$4 sm:$0xff]  }
 0x3f1   : > { %5316 = vmatpush2.bf16.msra.mxu1 %v8585_v56  ;;  %5274 = vmatprep.subr.bf16.mxu0 %v8590_v23  ;;  %v8654_v56 = vld [vmem:[#allocation8 + $0x120] ss:$16 sps:$4 sm:$0xff]   ;;  %v8659_v23 = vld [vmem:[#allocation8 + $0x104] ss:$16 sps:$4 sm:$0xff]  }
 0x3f2   : > { %5317 = vmatprep.subr.bf16.mxu1 %v8593_v9  ;;  %v8657_v9 = vld [vmem:[#allocation8 + $0x100] ss:$16 sps:$4 sm:$0xff]  }
 0x3f4   : > { %5275 = vmatpush2.bf16.msra.mxu0 %v8588_v28  ;;  %v8662_v28 = vld [vmem:[#allocation8 + $0x2e4] ss:$16 sps:$4 sm:$0xff]  }
 0x3f5   : > { %5318 = vmatpush2.bf16.msra.mxu1 %v8591_v33  ;;  %5276 = vmatprep.subr.bf16.mxu0 %v8596_v42  ;;  %v8660_v33 = vld [vmem:[#allocation8 + $0x2e0] ss:$16 sps:$4 sm:$0xff]   ;;  %v8665_v42 = vld [vmem:[#allocation8 + $0xec] ss:$16 sps:$4 sm:$0xff]  }
 0x3f6   : > { %5319 = vmatprep.subr.bf16.mxu1 %v8599_v22  ;;  %v8668_v22 = vld [vmem:[#allocation8 + $0x2c4] ss:$16 sps:$4 sm:$0xff]  }
 0x3f8   : > { %5277 = vmatpush2.bf16.msra.mxu0 %v8594_v39  ;;  %v8666_v39 = vld [vmem:[#allocation8 + $0x2c0] ss:$16 sps:$4 sm:$0xff]  }
 0x3f9   : > { %5320 = vmatpush2.bf16.msra.mxu1 %v8597_v40  ;;  %5278 = vmatprep.subr.bf16.mxu0 %v8602_v41  ;;  %v8674_v40 = vld [vmem:[#allocation8 + $0x2a4] ss:$16 sps:$4 sm:$0xff]   ;;  %v8672_v41 = vld [vmem:[#allocation8 + $0x2a0] ss:$16 sps:$4 sm:$0xff]  }
 0x3fa   : > { %5321 = vmatprep.subr.bf16.mxu1 %v8605_v34  ;;  %v8680_v34 = vld [vmem:[#allocation8 + $0x284] ss:$16 sps:$4 sm:$0xff]  }
 0x3fc   : > { %5279 = vmatpush2.bf16.msra.mxu0 %v8600_v36  ;;  %v8678_v36 = vld [vmem:[#allocation8 + $0x280] ss:$16 sps:$4 sm:$0xff]  }
 0x3fd   : > { %5322 = vmatpush2.bf16.msra.mxu1 %v8603_v29  ;;  %5280 = vmatprep.subr.bf16.mxu0 %v8608_v30  ;;  %v8686_v29 = vld [vmem:[#allocation8 + $0x264] ss:$16 sps:$4 sm:$0xff]   ;;  %v8684_v30 = vld [vmem:[#allocation8 + $0x260] ss:$16 sps:$4 sm:$0xff]  }
 0x3fe   : > { %5323 = vmatprep.subr.bf16.mxu1 %v8611_v53  ;;  %v8692_v53 = vld [vmem:[#allocation8 + $0x244] ss:$16 sps:$4 sm:$0xff]  }
 0x400   : > { %5281 = vmatpush2.bf16.msra.mxu0 %v8606_v55  ;;  %v8690_v55 = vld [vmem:[#allocation8 + $0x240] ss:$16 sps:$4 sm:$0xff]  }
 0x401   : > { %5324 = vmatpush2.bf16.msra.mxu1 %v8609_v32  ;;  %6284 = vmatprep.subr.bf16.mxu0 %v8614_v57  ;;  %v8698_v32 = vld [vmem:[#allocation8 + $0x224] ss:$16 sps:$4 sm:$0xff]   ;;  %v8696_v57 = vld [vmem:[#allocation8 + $0x220] ss:$16 sps:$4 sm:$0xff]  }
 0x402   : > { %6327 = vmatprep.subr.bf16.mxu1 %v8662_v28  ;;  %v8750_v28 = vld [vmem:[#allocation8 + $0x300] ss:$16 sps:$4 sm:$0xff]  }
 0x403   : > { %5283 = vmatmul.mubr.bf16.vlgmr.msra.gmra.mxu0 %v10051_v10  ;;  %v8624_v10 = vld [vmem:[#allocation8 + $0x60] ss:$16 sps:$4 sm:$0xff]  }
 0x404   : > { %5326 = vmatmul.mubr.bf16.vlgmr.msra.gmra.mxu1 %v10057_v27  ;;  %6285 = vmatpush1.bf16.msra.mxu0 %v8612_v58  ;;  %v8629_v27 = vld [vmem:[#allocation8 + $0x44] ss:$16 sps:$4 sm:$0xff]  }
 0x405   : > { %6286 = vmatprep.subr.bf16.mxu0 %v8617_v60  ;;  %6328 = vmatpush1.bf16.msra.mxu1 %v8660_v33  ;;  %v8704_v58 = vld [vmem:[#allocation8 + $0x204] ss:$16 sps:$4 sm:$0xff]   ;;  %v8702_v60 = vld [vmem:[#allocation8 + $0x200] ss:$16 sps:$4 sm:$0xff]  }
 0x406   : > { %6329 = vmatprep.subr.bf16.mxu1 %v8668_v22  ;;  %v8752_v33 = vld [vmem:[#allocation8 + $0x304] ss:$16 sps:$4 sm:$0xff]  }
 0x408   : > { %6287 = vmatpush1.bf16.msra.mxu0 %v8615_v59  ;;  %v8710_v59 = vld [vmem:[#allocation8 + $0x3e4] ss:$16 sps:$4 sm:$0xff]  }
 0x409   : > { %6288 = vmatprep.subr.bf16.mxu0 %v8620_v61  ;;  %6330 = vmatpush1.bf16.msra.mxu1 %v8666_v39  ;;  %v8708_v61 = vld [vmem:[#allocation8 + $0x3e0] ss:$16 sps:$4 sm:$0xff]  }
 0x40a   : > { %6331 = vmatprep.subr.bf16.mxu1 %v8674_v40 }
 0x40c   : > { %6289 = vmatpush1.bf16.msra.mxu0 %v8618_v14  ;;  %v8716_v14 = vld [vmem:[#allocation8 + $0x3c4] ss:$16 sps:$4 sm:$0xff]  }
 0x40d   : > { %6290 = vmatprep.subr.bf16.mxu0 %v8623_v62  ;;  %6332 = vmatpush1.bf16.msra.mxu1 %v8672_v41  ;;  %v8714_v62 = vld [vmem:[#allocation8 + $0x3c0] ss:$16 sps:$4 sm:$0xff]   ;;  %v8758_v41 = vld [vmem:[#allocation8 + $0x2ec] ss:$16 sps:$4 sm:$0xff]  }
 0x40e   : > { %6333 = vmatprep.subr.bf16.mxu1 %v8680_v34 }
 0x410   : > { %6291 = vmatpush1.bf16.msra.mxu0 %v8621_v17  ;;  %v8722_v17 = vld [vmem:[#allocation8 + $0x3a4] ss:$16 sps:$4 sm:$0xff]  }
 0x411   : > { %6292 = vmatprep.subr.bf16.mxu0 %v8626_v63  ;;  %6334 = vmatpush1.bf16.msra.mxu1 %v8678_v36  ;;  %v8720_v63 = vld [vmem:[#allocation8 + $0x3a0] ss:$16 sps:$4 sm:$0xff]  }
 0x412   : > { %6335 = vmatprep.subr.bf16.mxu1 %v8686_v29 }
 0x414   : > { %6293 = vmatpush1.bf16.msra.mxu0 %v8624_v10  ;;  %v8728_v10 = vld [vmem:[#allocation8 + $0x384] ss:$16 sps:$4 sm:$0xff]  }
 0x415   : > { %6294 = vmatprep.subr.bf16.mxu0 %v8629_v27  ;;  %6336 = vmatpush1.bf16.msra.mxu1 %v8684_v30  ;;  %v8726_v27 = vld [vmem:[#allocation8 + $0x380] ss:$16 sps:$4 sm:$0xff]  }
 0x416   : > { %6337 = vmatprep.subr.bf16.mxu1 %v8692_v53 }
 0x418   : > { %6295 = vmatpush1.bf16.msra.mxu0 %v8627_v5  ;;  %v8734_v5 = vld [vmem:[#allocation8 + $0x364] ss:$16 sps:$4 sm:$0xff]  }
 0x419   : > { %6296 = vmatprep.subr.bf16.mxu0 %v8632_v0  ;;  %6338 = vmatpush1.bf16.msra.mxu1 %v8690_v55 }
 0x41a   : > { %6339 = vmatprep.subr.bf16.mxu1 %v8698_v32 }
 0x41c   : > { %6297 = vmatpush1.bf16.msra.mxu0 %v8630_v6  ;;  %v8732_v6 = vld [vmem:[#allocation8 + $0x360] ss:$16 sps:$4 sm:$0xff]  }
 0x41d   : > { %6298 = vmatprep.subr.bf16.mxu0 %v8635_v1  ;;  %6340 = vmatpush1.bf16.msra.mxu1 %v8696_v57 }
 0x41e   : > { %6341 = vmatprep.subr.bf16.mxu1 %v8704_v58 }
 0x420   : > { %6299 = vmatpush1.bf16.msra.mxu0 %v8633_v44 }
 0x421   : > { %6300 = vmatprep.subr.bf16.mxu0 %v8638_v2  ;;  %6342 = vmatpush1.bf16.msra.mxu1 %v8702_v60 }
 0x422   : > { %6343 = vmatprep.subr.bf16.mxu1 %v8710_v59 }
 0x424   : > { %6301 = vmatpush2.bf16.msra.mxu0 %v8636_v3  ;;  %v8740_v3 = vld [vmem:[#allocation8 + $0x344] ss:$16 sps:$4 sm:$0xff]  }
 0x425   : > { %6302 = vmatprep.subr.bf16.mxu0 %v8641_v50  ;;  %6344 = vmatpush2.bf16.msra.mxu1 %v8708_v61 }
 0x426   : > { %6345 = vmatprep.subr.bf16.mxu1 %v8716_v14 }
 0x428   : > { %6303 = vmatpush2.bf16.msra.mxu0 %v8639_v7  ;;  %v8738_v7 = vld [vmem:[#allocation8 + $0x340] ss:$16 sps:$4 sm:$0xff]  }
 0x429   : > { %6304 = vmatprep.subr.bf16.mxu0 %v8644_v49  ;;  %6346 = vmatpush2.bf16.msra.mxu1 %v8714_v62 }
 0x42a   : > { %6347 = vmatprep.subr.bf16.mxu1 %v8722_v17 }
 0x42c   : > { %6305 = vmatpush2.bf16.msra.mxu0 %v8642_v21 }
 0x42d   : > { %6306 = vmatprep.subr.bf16.mxu0 %v8647_v43  ;;  %6348 = vmatpush2.bf16.msra.mxu1 %v8720_v63 }
 0x42e   : > { %6349 = vmatprep.subr.bf16.mxu1 %v8728_v10 }
 0x430   : > { %6307 = vmatpush2.bf16.msra.mxu0 %v8645_v47 }
 0x431   : > { %6308 = vmatprep.subr.bf16.mxu0 %v8650_v51  ;;  %6350 = vmatpush2.bf16.msra.mxu1 %v8726_v27 }
 0x432   : > { %6351 = vmatprep.subr.bf16.mxu1 %v8734_v5 }
 0x434   : > { %6309 = vmatpush2.bf16.msra.mxu0 %v8648_v52  ;;  %v8746_v52 = vld [vmem:[#allocation8 + $0x324] ss:$16 sps:$4 sm:$0xff]  }
 0x435   : > { %6310 = vmatprep.subr.bf16.mxu0 %v8653_v13  ;;  %6352 = vmatpush2.bf16.msra.mxu1 %v8732_v6 }
 0x436   : > { %6353 = vmatprep.subr.bf16.mxu1 %v8740_v3 }
 0x438   : > { %6311 = vmatpush2.bf16.msra.mxu0 %v8651_v46 }
 0x439   : > { %6312 = vmatprep.subr.bf16.mxu0 %v8656_v31  ;;  %6354 = vmatpush2.bf16.msra.mxu1 %v8738_v7 }
 0x43a   : > { %6355 = vmatprep.subr.bf16.mxu1 %v8746_v52 }
 0x43c   : > { %6313 = vmatpush2.bf16.msra.mxu0 %v8654_v56  ;;  %v8744_v56 = vld [vmem:[#allocation8 + $0x320] ss:$16 sps:$4 sm:$0xff]  }
 0x43d   : > { %6314 = vmatprep.subr.bf16.mxu0 %v8659_v23  ;;  %6356 = vmatpush2.bf16.msra.mxu1 %v8744_v56 }
 0x43e   : > { %6357 = vmatprep.subr.bf16.mxu1 %v8752_v33 }
 0x440   : > { %6315 = vmatpush2.bf16.msra.mxu0 %v8657_v9 }
 0x441   : > { %6370 = vmatprep.subr.bf16.mxu0 %v8665_v42  ;;  %6358 = vmatpush2.bf16.msra.mxu1 %v8750_v28 }
 0x442   : > { %6413 = vmatprep.subr.bf16.mxu1 %v8758_v41 }
 0x483   : > { %v5198_v0 = vpop.f32.mrf.mxu0 }
 0x484   : > { %v5241_v1 = vpop.f32.mrf.mxu1 }
 0x485   : > { %v5200_v44 = vpop.f32.mrf.mxu0  ;;  %v10063_v21 = vadd.f32 %v5241_v1, %v5198_v0 }
 0x486   : > { %v5243_v2 = vpop.f32.mrf.mxu1 }
 0x487   : > { %v5202_v50 = vpop.f32.mrf.mxu0  ;;  %v10067_v13 = vadd.f32 %v5243_v2, %v5200_v44 }
 0x488   : > { %v5245_v49 = vpop.f32.mrf.mxu1 }
 0x489   : > { %v10065_v43 = vadd.f32 %v5245_v49, %v5202_v50  ;;  %v5204_v47 = vpop.f32.mrf.mxu0 }
 0x48a   : > { %v5247_v51 = vpop.f32.mrf.mxu1 }
 0x48b   : > { %v5336_v46 = vadd.f32 %v10065_v43, %v10063_v21  ;;  %v10071_v31 = vadd.f32 %v5247_v51, %v5204_v47 }
 0x48d   : > { %v5337_v23 = vrot.slane %v5336_v46, 4  ;;  %v5343_v9 = vadd.f32 %v10071_v31, %v10067_v13 }
 0x48f   : > { %v5338_v42 = vadd.f32 %v5337_v23, %v5336_v46  ;;  %v5344_v22 = vrot.slane %v5343_v9, 4 }
 0x491   : > { %v5339_v39 = vrot.slane %v5338_v42, 2  ;;  %v5345_v40 = vadd.f32 %v5344_v22, %v5343_v9 }
 0x493   : > { %v5340_v34 = vadd.f32 %v5339_v39, %v5338_v42  ;;  %v5346_v36 = vrot.slane %v5345_v40, 2  ;;  %v10081_v42 = vsub.s32 2, %v9995_v26 }
 0x495   : > { %v5341_v29 = vrot.slane %v5340_v34, 1  ;;  %v5347_v30 = vadd.f32 %v5346_v36, %v5345_v40  ;;  %v10083_v40 = vld [vmem:[#allocation10 + $0x8] sm:$0x3f] }
 0x497   : > { %v5342_v53 = vadd.f32 %v5341_v29, %v5340_v34  ;;  %v5348_v55 = vrot.slane %v5347_v30, 1  ;;  %v10088_v29 = vsub.s32 3, %v9995_v26 }
 0x499   : > { %v5364_v32 = vmul.f32 0.0625, %v5342_v53  ;;  %v5349_v57 = vadd.f32 %v5348_v55, %v5347_v30 }
 0x49b   : > { %v5368_v58 = vsub.f32 %v10063_v21, %v5364_v32  ;;  %v5372_v60 = vsub.f32 %v10065_v43, %v5364_v32  ;;  %v5365_v59 = vmul.f32 0.0625, %v5349_v57 }
 0x49d   : > { %v5376_v61 = vmul.f32 %v5368_v58, %v5368_v58  ;;  %v5380_v14 = vmul.f32 %v5372_v60, %v5372_v60  ;;  %v5369_v62 = vsub.f32 %v10067_v13, %v5365_v59  ;;  %v5373_v17 = vsub.f32 %v10071_v31, %v5365_v59 }
 0x49f   : > { %v5384_v63 = vadd.f32 %v5380_v14, %v5376_v61  ;;  %v5377_v10 = vmul.f32 %v5369_v62, %v5369_v62  ;;  %v5381_v27 = vmul.f32 %v5373_v17, %v5373_v17 }
 0x4a1   : > { %v5385_v5 = vrot.slane %v5384_v63, 4  ;;  %v5391_v0 = vadd.f32 %v5381_v27, %v5377_v10 }
 0x4a3   : > { %v5386_v6 = vadd.f32 %v5385_v5, %v5384_v63  ;;  %v5392_v1 = vrot.slane %v5391_v0, 4 }
 0x4a5   : > { %v5387_v44 = vrot.slane %v5386_v6, 2  ;;  %v5393_v2 = vadd.f32 %v5392_v1, %v5391_v0 }
 0x4a7   : > { %v5388_v3 = vadd.f32 %v5387_v44, %v5386_v6  ;;  %v5394_v50 = vrot.slane %v5393_v2, 2 }
 0x4a9   : > { %v5389_v7 = vrot.slane %v5388_v3, 1  ;;  %v5395_v49 = vadd.f32 %v5394_v50, %v5393_v2 }
 0x4ab   : > { %v5390_v47 = vadd.f32 %v5389_v7, %v5388_v3  ;;  %v5396_v51 = vrot.slane %v5395_v49, 1 }
 0x4ad   : > { %v5412_v52 = vmul.f32 0.0625, %v5390_v47  ;;  %v5397_v46 = vadd.f32 %v5396_v51, %v5395_v49 }
 0x4af   : > { %v5416_v56 = vadd.f32 1e-05, %v5412_v52  ;;  %v5413_v23 = vmul.f32 0.0625, %v5397_v46 }
 0x4b1   : > { %8812 = vrsqrt.f32 %v5416_v56  ;;  %v5417_v9 = vadd.f32 1e-05, %v5413_v23 }
 0x4b3   : > { %8814 = vrsqrt.f32 %v5417_v9 }
 0x4be   : > { %v8813_v28 = vpop.eup %8812 }
 0x4bf   : > { %v5424_v33 = vmul.f32 %v8813_v28, %v9998_v38 }
 0x4c0   : > { %v8815_v22 = vpop.eup %8814 }
 0x4c1   : > { %v5428_v39 = vmul.f32 %v5424_v33, %v5364_v32  ;;  %v5425_v41 = vmul.f32 %v10083_v40, %v8815_v22  ;;  %v5451_v36 = vrot.slane %v5424_v33, %v10081_v42 }
 0x4c3   : > { %v5436_v34 = vrot.slane %v5428_v39, 7  ;;  %v5429_v30 = vmul.f32 %v5425_v41, %v5365_v59  ;;  %v5284_v53 = vpop.f32.mrf.mxu0  ;;  %v5455_v55 = vrot.slane %v5425_v41, %v10081_v42  ;;  %v5464_v14 = vmul.f32 %v5451_v36, %v10063_v21 }
 0x4c4   : > { %v5327_v57 = vpop.f32.mrf.mxu1  ;;  %v5468_v62 = vmul.f32 %v5451_v36, %v10065_v43 }
 0x4c5   : > { %v5444_v58 = vsub.f32 %v9998_v38, %v5436_v34  ;;  %v5437_v60 = vrot.slane %v5429_v30, 7  ;;  %v5286_v61 = vpop.f32.mrf.mxu0  ;;  %v5469_v59 = vmul.f32 %v5455_v55, %v10071_v31  ;;  %v10097_v27 = vadd.f32 %v5327_v57, %v5284_v53  ;;  %v8677_v53 = vld [vmem:[#allocation8 + $0xac] ss:$16 sps:$4 sm:$0xff]  }
 0x4c6   : > { %v5329_v32 = vpop.f32.mrf.mxu1  ;;  %v5465_v21 = vmul.f32 %v5455_v55, %v10067_v13 }
 0x4c7   : > { %v5475_v17 = vrot.slane %v5444_v58, %v10088_v29  ;;  %v5445_v63 = vsub.f32 %v10083_v40, %v5437_v60  ;;  %v5288_v10 = vpop.f32.mrf.mxu0  ;;  %v10103_v43 = vadd.f32 %v5329_v32, %v5286_v61  ;;  %v8675_v58 = vld [vmem:[#allocation8 + $0xa8] ss:$16 sps:$4 sm:$0xff]  }
 0x4c8   : > { %v5331_v5 = vpop.f32.mrf.mxu1 }
 0x4c9   : > { %v5488_v0 = vadd.f32 %v5475_v17, %v5464_v14  ;;  %v5492_v6 = vadd.f32 %v5475_v17, %v5468_v62  ;;  %v5479_v38 = vrot.slane %v5445_v63, %v10088_v29  ;;  %v10100_v1 = vadd.f32 %v5331_v5, %v5288_v10  ;;  %v5290_v44 = vpop.f32.mrf.mxu0  ;;  %v8683_v14 = vld [vmem:[#allocation8 + $0x8c] ss:$16 sps:$4 sm:$0xff]  }
 0x4ca   : > { %v5333_v2 = vpop.f32.mrf.mxu1 }
 0x4cb   : > { %v5500_v3 = vmax.f32 %v5492_v6, 0.0  ;;  %v5493_v50 = vadd.f32 %v5479_v38, %v5469_v59  ;;  %v5350_v31 = vadd.f32 %v10100_v1, %v10097_v27  ;;  %v10107_v7 = vadd.f32 %v5333_v2, %v5290_v44  ;;  %v8681_v59 = vld [vmem:[#allocation8 + $0x88] ss:$16 sps:$4 sm:$0xff]  }
 0x4cc   : > { %v5489_v49 = vadd.f32 %v5479_v38, %v5465_v21  ;;  %v5496_v47 = vmax.f32 %v5488_v0, 0.0  ;;  %v8689_v38 = vld [vmem:[#allocation8 + $0x6c] ss:$16 sps:$4 sm:$0xff]   ;;  %v8687_v2 = vld [vmem:[#allocation8 + $0x68] ss:$16 sps:$4 sm:$0xff]  }
 0x4cd   : > { %v5501_v51 = vmax.f32 %v5493_v50, 0.0  ;;  %v5351_v52 = vrot.slane %v5350_v31, 4  ;;  %v5357_v46 = vadd.f32 %v10107_v7, %v10103_v43  ;;  %v10113_v13 = vadd.f32 %v5500_v3, %v4388_v20  ;;  %v8663_v20 = vld [vmem:[#allocation8 + $0xe8] ss:$16 sps:$4 sm:$0xff]  }
 0x4ce   : > { %v5497_v56 = vmax.f32 %v5489_v49, 0.0  ;;  %v10121_v33 = vadd.f32 %v5496_v47, %v4384_v19 }
 0x4cf   : > { %v5352_v23 = vadd.f32 %v5351_v52, %v5350_v31  ;;  %v5358_v9 = vrot.slane %v5357_v46, 4  ;;  %v10117_v28 = vadd.f32 %v5501_v51, %v4389_v12  ;;  %v8671_v12 = vld [vmem:[#allocation8 + $0xcc] ss:$16 sps:$4 sm:$0xff]   ;;  %v8693_v51 = vld [vmem:[#allocation8 + $0x48] ss:$16 sps:$4 sm:$0xff]  }
 0x4d0   : > { %v10125_v22 = vadd.f32 %v5497_v56, %v4385_v11  ;;  %v10131_v35 = vpack.c.bf16 %v10113_v13, %v10121_v33  ;;  %v8695_v31 = vld [vmem:[#allocation8 + $0x4c] ss:$16 sps:$4 sm:$0xff]  }
 0x4d1   : > { %v5353_v39 = vrot.slane %v5352_v23, 2  ;;  %v5359_v41 = vadd.f32 %v5358_v9, %v5357_v46  ;;  %v8701_v56 = vld [vmem:[#allocation8 + $0x2c] ss:$16 sps:$4 sm:$0xff]  }
 0x4d2   : > { %v5513_v16 = vpack.c.bf16 %v10117_v28, %v10125_v22 }
 0x4d3   : > { %v5354_v34 = vadd.f32 %v5353_v39, %v5352_v23  ;;  %v5360_v36 = vrot.slane %v5359_v41, 2  ;;  %v8699_v39 = vld [vmem:[#allocation8 + $0x28] ss:$16 sps:$4 sm:$0xff]  }
 0x4d4   : > { %6316 = vmatprep.mubr.bf16.mxu0 %v5513_v16 }
 0x4d5   : > { %v5355_v15 = vrot.slane %v5354_v34, 1  ;;  %v5361_v19 = vadd.f32 %v5360_v36, %v5359_v41  ;;  %6317 = vmatmul.mubr.bf16.vlgmr.msra.gmra.mxu0 %v10131_v35 }
 0x4d6   : > { %6371 = vmatpush1.bf16.msra.mxu0 %v8663_v20  ;;  %6402 = vmatprep.mubr.bf16.mxu0 %v5513_v16  ;;  %v8707_v20 = vld [vmem:[#allocation8 + $0xc] ss:$16 sps:$4 sm:$0xff]  }
 0x4d7   : > { %v5356_v11 = vadd.f32 %v5355_v15, %v5354_v34  ;;  %v5362_v30 = vrot.slane %v5361_v19, 1  ;;  %6372 = vmatprep.subr.bf16.mxu0 %v8671_v12  ;;  %v8705_v12 = vld [vmem:[#allocation8 + $0x8] ss:$16 sps:$4 sm:$0xff]  }
 0x4d9   : > { %v10134_v55 = vmul.f32 0.0625, %v5356_v11  ;;  %v5363_v57 = vadd.f32 %v5362_v30, %v5361_v19  ;;  %v8711_v30 = vld [vmem:[#allocation8 + $0x1e8] ss:$16 sps:$4 sm:$0xff]  }
 0x4da   : > { %6373 = vmatpush1.bf16.msra.mxu0 %v8669_v4  ;;  %v8713_v4 = vld [vmem:[#allocation8 + $0x1ec] ss:$16 sps:$4 sm:$0xff]  }
 0x4db   : > { %v5370_v60 = vsub.f32 %v10097_v27, %v10134_v55  ;;  %v5374_v61 = vsub.f32 %v10100_v1, %v10134_v55  ;;  %v10140_v32 = vmul.f32 0.0625, %v5363_v57  ;;  %6374 = vmatprep.subr.bf16.mxu0 %v8677_v53  ;;  %v8719_v53 = vld [vmem:[#allocation8 + $0x1cc] ss:$16 sps:$4 sm:$0xff]   ;;  %v8717_v57 = vld [vmem:[#allocation8 + $0x1c8] ss:$16 sps:$4 sm:$0xff]  }
 0x4dd   : > { %v5378_v62 = vmul.f32 %v5370_v60, %v5370_v60  ;;  %v5382_v17 = vmul.f32 %v5374_v61, %v5374_v61  ;;  %v5371_v63 = vsub.f32 %v10103_v43, %v10140_v32  ;;  %v5375_v10 = vsub.f32 %v10107_v7, %v10140_v32  ;;  %v8723_v60 = vld [vmem:[#allocation8 + $0x1a8] ss:$16 sps:$4 sm:$0xff]   ;;  %v8731_v61 = vld [vmem:[#allocation8 + $0x18c] ss:$16 sps:$4 sm:$0xff]  }
 0x4de   : > { %6375 = vmatpush1.bf16.msra.mxu0 %v8675_v58  ;;  %v8725_v58 = vld [vmem:[#allocation8 + $0x1ac] ss:$16 sps:$4 sm:$0xff]  }
 0x4df   : > { %v5398_v5 = vadd.f32 %v5382_v17, %v5378_v62  ;;  %v5379_v0 = vmul.f32 %v5371_v63, %v5371_v63  ;;  %v5383_v6 = vmul.f32 %v5375_v10, %v5375_v10  ;;  %6376 = vmatprep.subr.bf16.mxu0 %v8683_v14  ;;  %v8729_v62 = vld [vmem:[#allocation8 + $0x188] ss:$16 sps:$4 sm:$0xff]   ;;  %v10146_v17 = vld [vmem:[#allocation10 + $0x10] sm:$0x3f]  ;;  %v8737_v10 = vld [vmem:[#allocation8 + $0x16c] ss:$16 sps:$4 sm:$0xff]  }
 0x4e1   : > { %v5399_v44 = vrot.slane %v5398_v5, 4  ;;  %v5405_v21 = vadd.f32 %v5383_v6, %v5379_v0  ;;  %v10150_v0 = vld [vmem:[#allocation10 + $0x18] sm:$0x3f] }
 0x4e2   : > { %6377 = vmatpush1.bf16.msra.mxu0 %v8681_v59 }
 0x4e3   : > { %v5400_v3 = vadd.f32 %v5399_v44, %v5398_v5  ;;  %v5406_v50 = vrot.slane %v5405_v21, 4  ;;  %6378 = vmatprep.subr.bf16.mxu0 %v8689_v38  ;;  %v8735_v38 = vld [vmem:[#allocation8 + $0x168] ss:$16 sps:$4 sm:$0xff]  }
 0x4e5   : > { %v5401_v49 = vrot.slane %v5400_v3, 2  ;;  %v5407_v47 = vadd.f32 %v5406_v50, %v5405_v21 }
 0x4e6   : > { %6379 = vmatpush1.bf16.msra.mxu0 %v8687_v2 }
 0x4e7   : > { %v5402_v52 = vadd.f32 %v5401_v49, %v5400_v3  ;;  %v5408_v46 = vrot.slane %v5407_v47, 2  ;;  %6380 = vmatprep.subr.bf16.mxu0 %v8695_v31  ;;  %v8743_v3 = vld [vmem:[#allocation8 + $0x14c] ss:$16 sps:$4 sm:$0xff]  }
 0x4e9   : > { %v5403_v23 = vrot.slane %v5402_v52, 1  ;;  %v5409_v9 = vadd.f32 %v5408_v46, %v5407_v47 }
 0x4ea   : > { %6381 = vmatpush1.bf16.msra.mxu0 %v8693_v51 }
 0x4eb   : > { %v5404_v41 = vadd.f32 %v5403_v23, %v5402_v52  ;;  %v5410_v16 = vrot.slane %v5409_v9, 1  ;;  %6382 = vmatprep.subr.bf16.mxu0 %v8701_v56  ;;  %v8749_v56 = vld [vmem:[#allocation8 + $0x12c] ss:$16 sps:$4 sm:$0xff]  }
 0x4ed   : > { %v5414_v34 = vmul.f32 0.0625, %v5404_v41  ;;  %v5411_v36 = vadd.f32 %v5410_v16, %v5409_v9  ;;  %v8747_v41 = vld [vmem:[#allocation8 + $0x128] ss:$16 sps:$4 sm:$0xff]  }
 0x4ee   : > { %6383 = vmatpush1.bf16.msra.mxu0 %v8699_v39 }
 0x4ef   : > { %v5418_v15 = vadd.f32 1e-05, %v5414_v34  ;;  %v5415_v19 = vmul.f32 0.0625, %v5411_v36  ;;  %6384 = vmatprep.subr.bf16.mxu0 %v8707_v20 }
 0x4f1   : > { %8816 = vrsqrt.f32 %v5418_v15  ;;  %v5419_v11 = vadd.f32 1e-05, %v5415_v19  ;;  %v8753_v15 = vld [vmem:[#allocation8 + $0x108] ss:$16 sps:$4 sm:$0xff]  }
 0x4f2   : > { %6385 = vmatpush1.bf16.msra.mxu0 %v8705_v12 }
 0x4f3   : > { %8818 = vrsqrt.f32 %v5419_v11  ;;  %6386 = vmatprep.subr.bf16.mxu0 %v8713_v4  ;;  %v8756_v11 = vld [vmem:[#allocation8 + $0x2e8] ss:$16 sps:$4 sm:$0xff]  }
 0x4f6   : > { %6387 = vmatpush2.bf16.msra.mxu0 %v8711_v30  ;;  %v8768_v30 = vld [vmem:[#allocation8 + $0x268] ss:$16 sps:$4 sm:$0xff]  }
 0x4f7   : > { %6388 = vmatprep.subr.bf16.mxu0 %v8719_v53  ;;  %v8773_v53 = vld [vmem:[#allocation8 + $0x24c] ss:$16 sps:$4 sm:$0xff]  }
 0x4fa   : > { %6389 = vmatpush2.bf16.msra.mxu0 %v8717_v57  ;;  %v8771_v57 = vld [vmem:[#allocation8 + $0x248] ss:$16 sps:$4 sm:$0xff]  }
 0x4fb   : > { %6390 = vmatprep.subr.bf16.mxu0 %v8725_v58  ;;  %v8774_v58 = vld [vmem:[#allocation8 + $0x228] ss:$16 sps:$4 sm:$0xff]  }
 0x4fe   : > { %v8817_v14 = vpop.eup %8816  ;;  %6391 = vmatpush2.bf16.msra.mxu0 %v8723_v60  ;;  %v8779_v60 = vld [vmem:[#allocation8 + $0x20c] ss:$16 sps:$4 sm:$0xff]  }
 0x4ff   : > { %v5426_v63 = vmul.f32 %v10146_v17, %v8817_v14  ;;  %6392 = vmatprep.subr.bf16.mxu0 %v8731_v61  ;;  %v8777_v61 = vld [vmem:[#allocation8 + $0x208] ss:$16 sps:$4 sm:$0xff]   ;;  %v8782_v14 = vld [vmem:[#allocation8 + $0x3ec] ss:$16 sps:$4 sm:$0xff]  }
 0x500   : > { %v8819_v59 = vpop.eup %8818 }
 0x501   : > { %v5430_v5 = vmul.f32 %v5426_v63, %v10134_v55  ;;  %v5427_v6 = vmul.f32 %v10150_v0, %v8819_v59  ;;  %v5459_v21 = vrot.slane %v5426_v63, %v10081_v42  ;;  %v8741_v55 = vld [vmem:[#allocation8 + $0x148] ss:$16 sps:$4 sm:$0xff]   ;;  %v8785_v63 = vld [vmem:[#allocation8 + $0x3cc] ss:$16 sps:$4 sm:$0xff]  }
 0x502   : > { %6393 = vmatpush2.bf16.msra.mxu0 %v8729_v62  ;;  %v8780_v62 = vld [vmem:[#allocation8 + $0x3e8] ss:$16 sps:$4 sm:$0xff]   ;;  %v8788_v59 = vld [vmem:[#allocation8 + $0x3ac] ss:$16 sps:$4 sm:$0xff]  }
 0x503   : > { %v5438_v44 = vrot.slane %v5430_v5, 7  ;;  %v5431_v2 = vmul.f32 %v5427_v6, %v10140_v32  ;;  %6394 = vmatprep.subr.bf16.mxu0 %v8737_v10  ;;  %v5463_v50 = vrot.slane %v5427_v6, %v10081_v42  ;;  %v5466_v47 = vmul.f32 %v5459_v21, %v10097_v27  ;;  %v8783_v10 = vld [vmem:[#allocation8 + $0x3c8] ss:$16 sps:$4 sm:$0xff]   ;;  %v8791_v6 = vld [vmem:[#allocation8 + $0x38c] ss:$16 sps:$4 sm:$0xff]  }
 0x504   : > { %v5470_v51 = vmul.f32 %v5459_v21, %v10100_v1  ;;  %v8755_v1 = vld [vmem:[#allocation8 + $0x10c] ss:$16 sps:$4 sm:$0xff]   ;;  %v8786_v5 = vld [vmem:[#allocation8 + $0x3a8] ss:$16 sps:$4 sm:$0xff]  }
 0x505   : > { %v5446_v31 = vsub.f32 %v10146_v17, %v5438_v44  ;;  %v5439_v49 = vrot.slane %v5431_v2, 7  ;;  %v5467_v32 = vmul.f32 %v5463_v50, %v10103_v43  ;;  %v5471_v42 = vmul.f32 %v5463_v50, %v10107_v7  ;;  %v8794_v44 = vld [vmem:[#allocation8 + $0x36c] ss:$16 sps:$4 sm:$0xff]   ;;  %v8792_v21 = vld [vmem:[#allocation8 + $0x368] ss:$16 sps:$4 sm:$0xff]  }
 0x506   : > { %6395 = vmatpush2.bf16.msra.mxu0 %v8735_v38  ;;  %v8789_v38 = vld [vmem:[#allocation8 + $0x388] ss:$16 sps:$4 sm:$0xff]   ;;  %v8797_v2 = vld [vmem:[#allocation8 + $0x34c] ss:$16 sps:$4 sm:$0xff]  }
 0x507   : > { %v5483_v52 = vrot.slane %v5446_v31, %v10088_v29  ;;  %v5447_v46 = vsub.f32 %v10150_v0, %v5439_v49  ;;  %6396 = vmatprep.subr.bf16.mxu0 %v8743_v3  ;;  %v8795_v3 = vld [vmem:[#allocation8 + $0x348] ss:$16 sps:$4 sm:$0xff]   ;;  %v8800_v50 = vld [vmem:[#allocation8 + $0x32c] ss:$16 sps:$4 sm:$0xff]  }
 0x508   : > { %v8798_v31 = vld [vmem:[#allocation8 + $0x328] ss:$16 sps:$4 sm:$0xff]   ;;  %v8803_v49 = vld [vmem:[#allocation8 + $0x30c] ss:$16 sps:$4 sm:$0xff]  }
 0x509   : > { %v5490_v23 = vadd.f32 %v5483_v52, %v5466_v47  ;;  %v5494_v9 = vadd.f32 %v5483_v52, %v5470_v51  ;;  %v5487_v39 = vrot.slane %v5447_v46, %v10088_v29 }
 0x50a   : > { %6397 = vmatpush2.bf16.msra.mxu0 %v8741_v55  ;;  %v8801_v55 = vld [vmem:[#allocation8 + $0x308] ss:$16 sps:$4 sm:$0xff]  }
 0x50b   : > { %v5502_v16 = vmax.f32 %v5494_v9, 0.0  ;;  %v5495_v27 = vadd.f32 %v5487_v39, %v5471_v42  ;;  %6398 = vmatprep.subr.bf16.mxu0 %v8749_v56  ;;  %v5491_v20 = vadd.f32 %v5487_v39, %v5467_v32  ;;  %v5498_v34 = vmax.f32 %v5490_v23, 0.0 }
 0x50d   : > { %v5503_v36 = vmax.f32 %v5495_v27, 0.0  ;;  %v5499_v12 = vmax.f32 %v5491_v20, 0.0  ;;  %v10166_v43 = vadd.f32 %v5498_v34, %v4386_v24  ;;  %v10170_v7 = vadd.f32 %v5502_v16, %v4390_v25  ;;  %v8765_v24 = vld [vmem:[#allocation8 + $0x288] ss:$16 sps:$4 sm:$0xff]   ;;  %v8770_v25 = vld [vmem:[#allocation8 + $0x26c] ss:$16 sps:$4 sm:$0xff]  }
 0x50e   : > { %6399 = vmatpush2.bf16.msra.mxu0 %v8747_v41 }
 0x50f   : > { %6400 = vmatprep.subr.bf16.mxu0 %v8755_v1  ;;  %v10174_v29 = vadd.f32 %v5499_v12, %v4387_v48  ;;  %v10178_v19 = vadd.f32 %v5503_v36, %v4391_v45  ;;  %v10184_v18 = vpack.c.bf16 %v10170_v7, %v10166_v43  ;;  %v8762_v48 = vld [vmem:[#allocation8 + $0x2a8] ss:$16 sps:$4 sm:$0xff]   ;;  %v8767_v45 = vld [vmem:[#allocation8 + $0x28c] ss:$16 sps:$4 sm:$0xff]  }
 0x511   : > { %v5515_v4 = vpack.c.bf16 %v10178_v19, %v10174_v29 }
 0x512   : > { %6401 = vmatpush2.bf16.msra.mxu0 %v8753_v15 }
 0x513   : > { %6359 = vmatprep.mubr.bf16.mxu1 %v5515_v4 }
 0x514   : > { %6360 = vmatmul.mubr.bf16.vlgmr.msra.gmra.mxu1 %v10184_v18 }
 0x515   : > { %6403 = vmatmul.mubr.bf16.vlgmr.msra.gmra.mxu0 %v10131_v35  ;;  %6414 = vmatpush1.bf16.msra.mxu1 %v8756_v11  ;;  %v8776_v35 = vld [vmem:[#allocation8 + $0x22c] ss:$16 sps:$4 sm:$0xff]  }
 0x516   : > { %6445 = vmatprep.mubr.bf16.mxu1 %v5515_v4  ;;  %6415 = vmatprep.subr.bf16.mxu1 %v8761_v54 }
 0x519   : > { %6416 = vmatpush1.bf16.msra.mxu1 %v8759_v8 }
 0x51a   : > { %6417 = vmatprep.subr.bf16.mxu1 %v8764_v37 }
 0x51d   : > { %6418 = vmatpush1.bf16.msra.mxu1 %v8762_v48 }
 0x51e   : > { %6419 = vmatprep.subr.bf16.mxu1 %v8767_v45 }
 0x521   : > { %6420 = vmatpush1.bf16.msra.mxu1 %v8765_v24 }
 0x522   : > { %6421 = vmatprep.subr.bf16.mxu1 %v8770_v25 }
 0x525   : > { %6422 = vmatpush1.bf16.msra.mxu1 %v8768_v30 }
 0x526   : > { %6423 = vmatprep.subr.bf16.mxu1 %v8773_v53 }
 0x529   : > { %6424 = vmatpush1.bf16.msra.mxu1 %v8771_v57 }
 0x52a   : > { %6425 = vmatprep.subr.bf16.mxu1 %v8776_v35 }
 0x52d   : > { %6426 = vmatpush1.bf16.msra.mxu1 %v8774_v58 }
 0x52e   : > { %6427 = vmatprep.subr.bf16.mxu1 %v8779_v60 }
 0x531   : > { %6428 = vmatpush1.bf16.msra.mxu1 %v8777_v61 }
 0x532   : > { %6429 = vmatprep.subr.bf16.mxu1 %v8782_v14 }
 0x535   : > { %6430 = vmatpush2.bf16.msra.mxu1 %v8780_v62 }
 0x536   : > { %6431 = vmatprep.subr.bf16.mxu1 %v8785_v63 }
 0x539   : > { %6432 = vmatpush2.bf16.msra.mxu1 %v8783_v10 }
 0x53a   : > { %6433 = vmatprep.subr.bf16.mxu1 %v8788_v59 }
 0x53d   : > { %6434 = vmatpush2.bf16.msra.mxu1 %v8786_v5 }
 0x53e   : > { %6435 = vmatprep.subr.bf16.mxu1 %v8791_v6 }
 0x541   : > { %6436 = vmatpush2.bf16.msra.mxu1 %v8789_v38 }
 0x542   : > { %6437 = vmatprep.subr.bf16.mxu1 %v8794_v44 }
 0x545   : > { %6438 = vmatpush2.bf16.msra.mxu1 %v8792_v21 }
 0x546   : > { %6439 = vmatprep.subr.bf16.mxu1 %v8797_v2 }
 0x549   : > { %6440 = vmatpush2.bf16.msra.mxu1 %v8795_v3 }
 0x54a   : > { %6441 = vmatprep.subr.bf16.mxu1 %v8800_v50 }
 0x54d   : > { %6442 = vmatpush2.bf16.msra.mxu1 %v8798_v31 }
 0x54e   : > { %6443 = vmatprep.subr.bf16.mxu1 %v8803_v49 }
 0x551   : > { %6444 = vmatpush2.bf16.msra.mxu1 %v8801_v55 }
 0x554   : > { %6446 = vmatmul.mubr.bf16.vlgmr.msra.gmra.mxu1 %v10184_v18 }
 0x595   : > { %v6318_v47 = vpop.f32.mrf.mxu0 }
 0x597   : > { %v6320_v51 = vpop.f32.mrf.mxu0 }
 0x599   : > { %v6322_v46 = vpop.f32.mrf.mxu0 }
 0x59b   : > { %v6324_v42 = vpop.f32.mrf.mxu0 }
 0x5d4   : > { %v6361_v52 = vpop.f32.mrf.mxu1 }
 0x5d5   : > { %v10189_v23 = vadd.f32 %v6361_v52, %v6318_v47 }
 0x5d6   : > { %v6363_v56 = vpop.f32.mrf.mxu1 }
 0x5d7   : > { %v10193_v41 = vadd.f32 %v6363_v56, %v6320_v51  ;;  %v8831_v56 = vld [vmem:[#allocation10] sm:$0x3f] }
 0x5d8   : > { %v6365_v32 = vpop.f32.mrf.mxu1 }
 0x5d9   : > { %v10191_v9 = vadd.f32 %v6365_v32, %v6322_v46  ;;  %v6404_v46 = vpop.f32.mrf.mxu0 }
 0x5da   : > { %v6367_v39 = vpop.f32.mrf.mxu1 }
 0x5db   : > { %v6456_v16 = vadd.f32 %v10191_v9, %v10189_v23  ;;  %v10197_v27 = vadd.f32 %v6367_v39, %v6324_v42  ;;  %v10206_v42 = vsub.s32 4, %v9995_v26 }
 0x5dd   : > { %v6457_v1 = vrot.slane %v6456_v16, 4  ;;  %v6463_v20 = vadd.f32 %v10197_v27, %v10193_v41 }
 0x5df   : > { %v6458_v34 = vadd.f32 %v6457_v1, %v6456_v16  ;;  %v6464_v36 = vrot.slane %v6463_v20, 4 }
 0x5e1   : > { %v6459_v12 = vrot.slane %v6458_v34, 2  ;;  %v6465_v15 = vadd.f32 %v6464_v36, %v6463_v20  ;;  %v6406_v20 = vpop.f32.mrf.mxu0 }
 0x5e3   : > { %v6460_v4 = vadd.f32 %v6459_v12, %v6458_v34  ;;  %v6466_v11 = vrot.slane %v6465_v15, 2  ;;  %v10211_v12 = vsub.s32 5, %v9995_v26 }
 0x5e5   : > { %v6461_v18 = vrot.slane %v6460_v4, 1  ;;  %v6467_v54 = vadd.f32 %v6466_v11, %v6465_v15 }
 0x5e7   : > { %v6462_v8 = vadd.f32 %v6461_v18, %v6460_v4  ;;  %v6468_v37 = vrot.slane %v6467_v54, 1 }
 0x5e9   : > { %v6484_v48 = vmul.f32 0.0625, %v6462_v8  ;;  %v6469_v45 = vadd.f32 %v6468_v37, %v6467_v54 }
 0x5eb   : > { %v6488_v24 = vsub.f32 %v10189_v23, %v6484_v48  ;;  %v6492_v25 = vsub.f32 %v10191_v9, %v6484_v48  ;;  %v6485_v30 = vmul.f32 0.0625, %v6469_v45 }
 0x5ed   : > { %v6496_v53 = vmul.f32 %v6488_v24, %v6488_v24  ;;  %v6500_v57 = vmul.f32 %v6492_v25, %v6492_v25  ;;  %v6489_v35 = vsub.f32 %v10193_v41, %v6485_v30  ;;  %v6493_v58 = vsub.f32 %v10197_v27, %v6485_v30  ;;  %v6408_v24 = vpop.f32.mrf.mxu0 }
 0x5ef   : > { %v6504_v60 = vadd.f32 %v6500_v57, %v6496_v53  ;;  %v6497_v61 = vmul.f32 %v6489_v35, %v6489_v35  ;;  %v6501_v14 = vmul.f32 %v6493_v58, %v6493_v58 }
 0x5f1   : > { %v6505_v62 = vrot.slane %v6504_v60, 4  ;;  %v6511_v63 = vadd.f32 %v6501_v14, %v6497_v61 }
 0x5f3   : > { %v6506_v10 = vadd.f32 %v6505_v62, %v6504_v60  ;;  %v6512_v59 = vrot.slane %v6511_v63, 4 }
 0x5f5   : > { %v6507_v5 = vrot.slane %v6506_v10, 2  ;;  %v6513_v6 = vadd.f32 %v6512_v59, %v6511_v63 }
 0x5f7   : > { %v6508_v38 = vadd.f32 %v6507_v5, %v6506_v10  ;;  %v6514_v44 = vrot.slane %v6513_v6, 2  ;;  %v6410_v10 = vpop.f32.mrf.mxu0 }
 0x5f9   : > { %v6509_v21 = vrot.slane %v6508_v38, 1  ;;  %v6515_v2 = vadd.f32 %v6514_v44, %v6513_v6 }
 0x5fb   : > { %v6510_v3 = vadd.f32 %v6509_v21, %v6508_v38  ;;  %v6516_v50 = vrot.slane %v6515_v2, 1 }
 0x5fd   : > { %v6532_v31 = vmul.f32 0.0625, %v6510_v3  ;;  %v6517_v49 = vadd.f32 %v6516_v50, %v6515_v2 }
 0x5ff   : > { %v6536_v55 = vadd.f32 1e-05, %v6532_v31  ;;  %v6533_v47 = vmul.f32 0.0625, %v6517_v49 }
 0x601   : > { %8820 = vrsqrt.f32 %v6536_v55  ;;  %v6537_v51 = vadd.f32 1e-05, %v6533_v47 }
 0x603   : > { %8822 = vrsqrt.f32 %v6537_v51 }
 0x60e   : > { %v8821_v52 = vpop.eup %8820 }
 0x60f   : > { %v6544_v32 = vmul.f32 %v8831_v56, %v8821_v52 }
 0x610   : > { %v8823_v39 = vpop.eup %8822 }
 0x611   : > { %v6548_v16 = vmul.f32 %v6544_v32, %v6484_v48  ;;  %v6545_v1 = vmul.f32 %v10083_v40, %v8823_v39  ;;  %v6571_v36 = vrot.slane %v6544_v32, %v10206_v42 }
 0x613   : > { %v6556_v34 = vrot.slane %v6548_v16, 7  ;;  %v6549_v15 = vmul.f32 %v6545_v1, %v6485_v30  ;;  %v6575_v4 = vrot.slane %v6545_v1, %v10206_v42  ;;  %v6584_v37 = vmul.f32 %v6571_v36, %v10189_v23 }
 0x614   : > { %v6447_v11 = vpop.f32.mrf.mxu1  ;;  %v6588_v48 = vmul.f32 %v6571_v36, %v10191_v9 }
 0x615   : > { %v6564_v18 = vsub.f32 %v8831_v56, %v6556_v34  ;;  %v6557_v54 = vrot.slane %v6549_v15, 7  ;;  %v6585_v53 = vmul.f32 %v6575_v4, %v10193_v41  ;;  %v6589_v26 = vmul.f32 %v6575_v4, %v10197_v27 }
 0x616   : > { %v6449_v8 = vpop.f32.mrf.mxu1  ;;  %v10223_v61 = vadd.f32 %v6447_v11, %v6404_v46 }
 0x617   : > { %v6595_v45 = vrot.slane %v6564_v18, %v10211_v12  ;;  %v6565_v25 = vsub.f32 %v10083_v40, %v6557_v54  ;;  %v10225_v40 = vadd.f32 %v6449_v8, %v6406_v20 }
 0x618   : > { %v6451_v30 = vpop.f32.mrf.mxu1 }
 0x619   : > { %v6608_v57 = vadd.f32 %v6595_v45, %v6584_v37  ;;  %v6612_v35 = vadd.f32 %v6595_v45, %v6588_v48  ;;  %v6599_v58 = vrot.slane %v6565_v25, %v10211_v12  ;;  %v10221_v60 = vadd.f32 %v6451_v30, %v6408_v24 }
 0x61a   : > { %v6453_v23 = vpop.f32.mrf.mxu1 }
 0x61b   : > { %v6616_v9 = vmax.f32 %v6608_v57, 0.0  ;;  %v6620_v14 = vmax.f32 %v6612_v35, 0.0  ;;  %v6609_v62 = vadd.f32 %v6599_v58, %v6585_v53  ;;  %v6613_v63 = vadd.f32 %v6599_v58, %v6589_v26 }
 0x61c   : > { %v6470_v41 = vadd.f32 %v10221_v60, %v10223_v61  ;;  %v10229_v27 = vadd.f32 %v6453_v23, %v6410_v10 }
 0x61d   : > { %v6624_v59 = vadd.f32 %v6616_v9, %v10121_v33  ;;  %v6628_v5 = vadd.f32 %v6620_v14, %v10113_v13  ;;  %v6617_v6 = vmax.f32 %v6609_v62, 0.0  ;;  %v6621_v38 = vmax.f32 %v6613_v63, 0.0 }
 0x61e   : > { %v6471_v44 = vrot.slane %v6470_v41, 4  ;;  %v6477_v21 = vadd.f32 %v10229_v27, %v10225_v40 }
 0x61f   : > { %6632 = vst [vmem:[#allocation11] sm:$0xff] %v6624_v59  ;;  %6636 = vst [vmem:[#allocation11 + $0x20] sm:$0xff] %v6628_v5  ;;  %v6625_v2 = vadd.f32 %v6617_v6, %v10125_v22  ;;  %v6629_v3 = vadd.f32 %v6621_v38, %v10117_v28 }
 0x620   : > { %v6472_v50 = vadd.f32 %v6471_v44, %v6470_v41  ;;  %v6478_v31 = vrot.slane %v6477_v21, 4 }
 0x621   : > { %6633 = vst [vmem:[#allocation11 + $0x8] sm:$0xff] %v6625_v2  ;;  %6637 = vst [vmem:[#allocation11 + $0x28] sm:$0xff] %v6629_v3 }
 0x622   : > { %v6473_v49 = vrot.slane %v6472_v50, 2  ;;  %v6479_v33 = vadd.f32 %v6478_v31, %v6477_v21 }
 0x624   : > { %v6474_v55 = vadd.f32 %v6473_v49, %v6472_v50  ;;  %v6480_v13 = vrot.slane %v6479_v33, 2 }
 0x626   : > { %v6475_v47 = vrot.slane %v6474_v55, 1  ;;  %v6481_v51 = vadd.f32 %v6480_v13, %v6479_v33 }
 0x628   : > { %v6476_v52 = vadd.f32 %v6475_v47, %v6474_v55  ;;  %v6482_v46 = vrot.slane %v6481_v51, 1 }
 0x62a   : > { %v6486_v56 = vmul.f32 0.0625, %v6476_v52  ;;  %v6483_v32 = vadd.f32 %v6482_v46, %v6481_v51 }
 0x62c   : > { %v6490_v39 = vsub.f32 %v10223_v61, %v6486_v56  ;;  %v6494_v22 = vsub.f32 %v10221_v60, %v6486_v56  ;;  %v6487_v16 = vmul.f32 0.0625, %v6483_v32 }
 0x62e   : > { %v6498_v28 = vmul.f32 %v6490_v39, %v6490_v39  ;;  %v6502_v1 = vmul.f32 %v6494_v22, %v6494_v22  ;;  %v6491_v20 = vsub.f32 %v10225_v40, %v6487_v16  ;;  %v6495_v34 = vsub.f32 %v10229_v27, %v6487_v16 }
 0x630   : > { %v6518_v36 = vadd.f32 %v6502_v1, %v6498_v28  ;;  %v6499_v15 = vmul.f32 %v6491_v20, %v6491_v20  ;;  %v6503_v4 = vmul.f32 %v6495_v34, %v6495_v34 }
 0x632   : > { %v6519_v11 = vrot.slane %v6518_v36, 4  ;;  %v6525_v18 = vadd.f32 %v6503_v4, %v6499_v15 }
 0x634   : > { %v6520_v54 = vadd.f32 %v6519_v11, %v6518_v36  ;;  %v6526_v8 = vrot.slane %v6525_v18, 4 }
 0x636   : > { %v6521_v37 = vrot.slane %v6520_v54, 2  ;;  %v6527_v48 = vadd.f32 %v6526_v8, %v6525_v18 }
 0x638   : > { %v6522_v45 = vadd.f32 %v6521_v37, %v6520_v54  ;;  %v6528_v24 = vrot.slane %v6527_v48, 2 }
 0x63a   : > { %v6523_v25 = vrot.slane %v6522_v45, 1  ;;  %v6529_v53 = vadd.f32 %v6528_v24, %v6527_v48 }
 0x63c   : > { %v6524_v26 = vadd.f32 %v6523_v25, %v6522_v45  ;;  %v6530_v30 = vrot.slane %v6529_v53, 1 }
 0x63e   : > { %v6534_v57 = vmul.f32 0.0625, %v6524_v26  ;;  %v6531_v35 = vadd.f32 %v6530_v30, %v6529_v53 }
 0x640   : > { %v6538_v58 = vadd.f32 1e-05, %v6534_v57  ;;  %v6535_v23 = vmul.f32 0.0625, %v6531_v35 }
 0x642   : > { %8824 = vrsqrt.f32 %v6538_v58  ;;  %v6539_v9 = vadd.f32 1e-05, %v6535_v23 }
 0x644   : > { %8826 = vrsqrt.f32 %v6539_v9 }
 0x64f   : > { %v8825_v14 = vpop.eup %8824 }
 0x650   : > { %v6546_v62 = vmul.f32 %v10146_v17, %v8825_v14 }
 0x651   : > { %v8827_v63 = vpop.eup %8826 }
 0x652   : > { %v6550_v10 = vmul.f32 %v6546_v62, %v6486_v56  ;;  %v6547_v41 = vmul.f32 %v10150_v0, %v8827_v63  ;;  %v6579_v5 = vrot.slane %v6546_v62, %v10206_v42 }
 0x654   : > { %v6558_v59 = vrot.slane %v6550_v10, 7  ;;  %v6551_v6 = vmul.f32 %v6547_v41, %v6487_v16  ;;  %v6583_v38 = vrot.slane %v6547_v41, %v10206_v42  ;;  %v6586_v2 = vmul.f32 %v6579_v5, %v10223_v61 }
 0x655   : > { %v6590_v3 = vmul.f32 %v6579_v5, %v10221_v60 }
 0x656   : > { %v6566_v44 = vsub.f32 %v10146_v17, %v6558_v59  ;;  %v6559_v21 = vrot.slane %v6551_v6, 7  ;;  %v6587_v49 = vmul.f32 %v6583_v38, %v10225_v40  ;;  %v6591_v13 = vmul.f32 %v6583_v38, %v10229_v27 }
 0x658   : > { %v6603_v50 = vrot.slane %v6566_v44, %v10211_v12  ;;  %v6567_v31 = vsub.f32 %v10150_v0, %v6559_v21 }
 0x65a   : > { %v6610_v33 = vadd.f32 %v6603_v50, %v6586_v2  ;;  %v6614_v55 = vadd.f32 %v6603_v50, %v6590_v3  ;;  %v6607_v47 = vrot.slane %v6567_v31, %v10211_v12 }
 0x65c   : > { %v6618_v42 = vmax.f32 %v6610_v33, 0.0  ;;  %v6622_v51 = vmax.f32 %v6614_v55, 0.0  ;;  %v6611_v17 = vadd.f32 %v6607_v47, %v6587_v49  ;;  %v6615_v52 = vadd.f32 %v6607_v47, %v6591_v13 }
 0x65e   : > { %v6626_v61 = vadd.f32 %v6618_v42, %v10166_v43  ;;  %v6630_v60 = vadd.f32 %v6622_v51, %v10170_v7  ;;  %v6619_v46 = vmax.f32 %v6611_v17, 0.0  ;;  %v6623_v56 = vmax.f32 %v6615_v52, 0.0 }
 0x660   : > { %6634 = vst [vmem:[#allocation11 + $0x10] sm:$0xff] %v6626_v61  ;;  %6638 = vst [vmem:[#allocation11 + $0x30] sm:$0xff] %v6630_v60  ;;  %v6627_v0 = vadd.f32 %v6619_v46, %v10174_v29  ;;  %v6631_v40 = vadd.f32 %v6623_v56, %v10178_v19 }
 0x662   : > { %6635 = vst [vmem:[#allocation11 + $0x18] sm:$0xff] %v6627_v0  ;;  %6639 = vst [vmem:[#allocation11 + $0x38] sm:$0xff] %v6631_v40 }
 0x663 PF: > { %p7606_p2 = scmp.eq.s32.totalorder %s9105_s22, 1  ;;  %s9053_s28 = smov [#allocation11]  }
 0x664   : > { %s6646_s29 = sshll.u32 %s9053_s28, 4  ;;  %s6647_s29 = int_to_ptr.vmem [resolvable:$true] %s6646_s29 }
 0x665   : > { %s8966_s14 = scalar_lea.vmem %s6647_s29, 1024  ;;  %p8973_p8 = scmp.lt.s32.totalorder %s6647_s29, %s6647_s29 }
 0x666   : > { %p8967_p1 = scmp.ne.s32.totalorder %s6647_s29, %s8966_s14  ;;  %p8974_p6 = scmp.lt.s32.totalorder %s8966_s14, %s8966_s14 }
 0x668   : > { %p8968_p12 = pnand %p8967_p1, %p7606_p2  ;;  %p8975_p4 = por %p8974_p6, %p8973_p8 }
 0x66a   : > { %p8969_p7 = pneg %p8968_p12 }
 0x66c   : > { %p8976_p3 = pnand %p8975_p4, %p8969_p7 }
 0x66e   : > { %8979 = shalt.err (!%p8976_p3)
}
 0x66f   : > { %s9054_s27 = smov 512   ;;  %s9055_s16 = smov 32  }
 0x670   : > { %7579 = dma.vmem_to_hbm [thread:$0]  (%p7606_p2), %s6647_s29, 1024, %s10287_s5, [#allocation4], %s9054_s27, %s9054_s27, %s9055_s16  }
 0x671   : > { %9023 = dma.done.wait (%p7606_p2), [#allocation4], 1024  }
 0x672   : > { %9025 = vsyncadd (%p7606_p2), [#allocation4], 4294966272 }
 0x673 PF: > { %p20_p10 = scmp.ge.s32.totalorder %s9108_s23, 4   ;;  %s10307_s18 = smov %s9032_s19 }
 0x674   : > { %s10308_s19 = smov %s9036_s20  ;;  %s10309_s20 = smov %s9118_s26 }
 0x675   : > { %s10310_s21 = smov %s9108_s23  ;;  %22 = sbr.rel (!%p20_p10) target bundleno = 9 (0x9), region = 110 }
 0x67a   :  { %6662 = vsyncpa [#allocation3], 1 }
 0x67b   :  { %6664 = vsyncpa [#allocation3 + $0x1], 1 }
 0x67c   :  { %6665 = vsyncpa [#allocation6], 1 }
 0x67d   :  { %6667 = vsyncpa [#allocation6 + $0x1], 1 }
 0x67e   :  { %6668 = vsyncpa [#allocation9], 1 }
 0x67f   :  { %6669 = vsyncpa [#allocation4], 1 }
 0x680   :  { %6671 = vsyncpa [#allocation4 + $0x1], 1 }

</bundles_post_ra>
